<compile_context>
chip_gen: v5e
topology: v5e:2x2
jax: 0.10.0
libtpu: 0.0.40
codegen_flags: <defaults>
</compile_context>

<pallas_src>
import functools

import jax
import jax.numpy as jnp
from jax.experimental import pallas as pl
from jax.experimental.pallas import tpu as pltpu


def _round_up(x, m):
    return (x + m - 1) // m * m


def _pick_time_block(T):
    """Largest time-block size (caps in-kernel unroll) that divides T."""
    for cand in (32, 16, 8, 4, 2, 1):
        if T % cand == 0:
            return cand
    return 1


# ---------------------------------------------------------------------------
# Fused kernel: per-block layer-0 input projection + nlayers LSTM recurrence
# (h/c carried in VMEM scratch across time blocks) + final FC on the last
# timestep of the top layer.
# ---------------------------------------------------------------------------
def _make_fused_kernel(nlayers, tb, bp, hp):
    def kernel(*refs):
        it = iter(refs)
        x_ref = next(it)            # (tb*bp, D)  bf16, streamed per block
        wih0_ref = next(it)         # (D, 4hp)    bf16, resident
        b0_ref = next(it)           # (1, 4hp)    f32,  resident
        whh0_ref = next(it)         # (hp, 4hp)   bf16, resident
        deep_refs = []
        for _ in range(nlayers - 1):
            deep_refs.append((next(it), next(it), next(it)))  # wih, whh, b
        wfc_ref = next(it)          # (hp, cp)    bf16, resident
        bfc_ref = next(it)          # (1, cp)     f32,  resident
        logits_ref = next(it)       # (bp, cp)    f32 out, resident
        h_refs = [next(it) for _ in range(nlayers)]   # (bp, hp) f32 scratch
        c_refs = [next(it) for _ in range(nlayers)]   # (bp, hp) f32 scratch

        tblk = pl.program_id(0)

        @pl.when(tblk == 0)
        def _init():
            for l in range(nlayers):
                h_refs[l][...] = jnp.zeros_like(h_refs[l])
                c_refs[l][...] = jnp.zeros_like(c_refs[l])

        # ---- loop-invariant hoists (once per time block, not per step) ----
        whh0 = whh0_ref[...]
        deep_w = []
        for wih_r, whh_r, b_r in deep_refs:
            deep_w.append((wih_r[...], whh_r[...],
                           jnp.broadcast_to(b_r[...], (bp, 4 * hp))))

        # Layer-0 input projection for the whole time block: one big MXU
        # matmul, bias folded in.  gx never round-trips HBM.
        gx = (jnp.dot(x_ref[...], wih0_ref[...],
                      preferred_element_type=jnp.float32)
              + b0_ref[...])                                 # (tb*bp, 4hp) f32

        def lstm_cell(gates, c_prev):
            # torch.nn.LSTM gate order: i, f, g, o.  Each gate occupies a
            # whole 128-lane-aligned block of hp columns.  Element-wise math
            # stays in f32 (v5e VPU/EUP have no bf16 path).
            i_g = jax.nn.sigmoid(gates[:, 0 * hp:1 * hp])
            f_g = jax.nn.sigmoid(gates[:, 1 * hp:2 * hp])
            g_g = jnp.tanh(gates[:, 2 * hp:3 * hp])
            o_g = jax.nn.sigmoid(gates[:, 3 * hp:4 * hp])
            c_new = f_g * c_prev + i_g * g_g
            h_new = o_g * jnp.tanh(c_new)
            return h_new, c_new

        hs = [h_refs[l][...] for l in range(nlayers)]
        cs = [c_refs[l][...] for l in range(nlayers)]

        # Static unroll over the (small, grid-bounded) time block.
        for i in range(tb):
            gates0 = gx[i * bp:(i + 1) * bp, :] + jnp.dot(
                hs[0].astype(whh0.dtype), whh0,
                preferred_element_type=jnp.float32)
            hs[0], cs[0] = lstm_cell(gates0, cs[0])
            for l in range(1, nlayers):
                wih_l, whh_l, bb_l = deep_w[l - 1]
                # Two accumulating dots instead of a per-step lane concat.
                gates = (jnp.dot(hs[l - 1].astype(wih_l.dtype), wih_l,
                                 preferred_element_type=jnp.float32)
                         + jnp.dot(hs[l].astype(whh_l.dtype), whh_l,
                                   preferred_element_type=jnp.float32)
                         + bb_l)
                hs[l], cs[l] = lstm_cell(gates, cs[l])
            # TODO(synk): training-mode inter-layer dropout not applied
            # (eval-mode forward -> identity, matching module.eval()).

        for l in range(nlayers):
            h_refs[l][...] = hs[l]
            c_refs[l][...] = cs[l]

        @pl.when(tblk == pl.num_programs(0) - 1)
        def _finalize():
            # Fused FC on the last timestep of the top layer (pre-FC dropout
            # is identity in eval).  Lane-dense store (cp multiple of 128).
            logits_ref[...] = (
                jnp.dot(hs[-1].astype(wfc_ref.dtype), wfc_ref[...],
                        preferred_element_type=jnp.float32)
                + bfc_ref[...])

    return kernel


def fused_rnn_fc(x_tb2d, prepped, nlayers, seq_len, bp):
    """x_tb2d: (T*Bp, D) bf16, time-major flattened.  Returns (Bp, Cp) f32."""
    D = x_tb2d.shape[1]
    hp = prepped["w_hh_0"].shape[0]
    cp = prepped["w_fc"].shape[1]
    tb = _pick_time_block(seq_len)
    n_blocks = seq_len // tb

    def const2d(arr):
        return pl.BlockSpec(arr.shape, lambda t: (0, 0))

    args = [x_tb2d, prepped["w_ih_0"], prepped["b_0"], prepped["w_hh_0"]]
    in_specs = [pl.BlockSpec((tb * bp, D), lambda t: (t, 0)),
                const2d(prepped["w_ih_0"]),
                const2d(prepped["b_0"]),
                const2d(prepped["w_hh_0"])]
    for wih, whh, b in prepped["deep"]:
        args += [wih, whh, b]
        in_specs += [const2d(wih), const2d(whh), const2d(b)]
    args += [prepped["w_fc"], prepped["b_fc"]]
    in_specs += [const2d(prepped["w_fc"]), const2d(prepped["b_fc"])]

    scratch = [pltpu.VMEM((bp, hp), jnp.float32)] * (2 * nlayers)

    # Explicit VMEM budget: double-buffered blocks + scratch + gx temp +
    # slack; above the 16/32 MiB scoped defaults, under v7x's 64 MiB.
    def nbytes(a):
        return int(a.size) * a.dtype.itemsize
    block_bytes = sum(nbytes(a) for a in args[1:]) \
        + tb * bp * D * 2 + bp * cp * 4
    scratch_bytes = 2 * nlayers * bp * hp * 4 + tb * bp * 4 * hp * 4
    vmem_budget = int(min(max(2 * block_bytes + scratch_bytes + (4 << 20),
                              16 << 20), 48 << 20))

    # TODO(synk): for large batches, add a leading "parallel" batch-block grid
    # axis so both v7x TensorCores get work; for very wide/deep configs,
    # stream per-layer weights instead of holding all layers resident.
    return pl.pallas_call(
        _make_fused_kernel(nlayers, tb, bp, hp),
        out_shape=jax.ShapeDtypeStruct((bp, cp), jnp.float32),
        grid_spec=pltpu.PrefetchScalarGridSpec(
            num_scalar_prefetch=0,
            grid=(n_blocks,),
            in_specs=in_specs,
            out_specs=pl.BlockSpec((bp, cp), lambda t: (0, 0)),
            scratch_shapes=scratch,
        ),
        compiler_params=pltpu.CompilerParams(
            dimension_semantics=("arbitrary",),   # time = sequential axis
            vmem_limit_bytes=vmem_budget,
        ),
    )(*args)


# ------------------------------- Full forward --------------------------------
@functools.partial(jax.jit, static_argnames=("nlayers", "num_classes"))
def rnn_model_forward(x_btd, prepped, nlayers, num_classes):
    """x_btd: (B, T, input_size) batch_first, like the PyTorch module."""
    B, T, D = x_btd.shape
    bp = max(8, _round_up(B, 8))       # fill all 8 vreg sublanes
    x_p = jnp.pad(x_btd, ((0, bp - B), (0, 0), (0, 0)))
    # Time-major, flatten (T, Bp) rows; bf16 storage halves HBM traffic and
    # matches the MXU's default-precision bf16 pass.
    x_tb2d = (jnp.transpose(x_p, (1, 0, 2))
              .reshape(T * bp, D)
              .astype(jnp.bfloat16))
    logits_p = fused_rnn_fc(x_tb2d, prepped, nlayers, T, bp)
    return logits_p[:B, :num_classes]


# ----------------------------- Parameter helpers ------------------------------
def init_params(key, input_size, hidden_size, num_classes, nlayers):
    """Deterministic synthetic parameters (PyTorch-style uniform(-k, k)).

    Stored transposed: (d_in, 4H) / (H, 4H); gate order i, f, g, o; the two
    LSTM biases are pre-summed.  NOTE: real nn.LSTM checkpoints store
    weight_ih/hh as (4H, d_in)/(4H, H) — importing them needs a transpose.
    """
    params = {}
    k = 1.0 / jnp.sqrt(hidden_size)
    for l in range(nlayers):
        d_in = input_size if l == 0 else hidden_size
        key, k1, k2, k3, k4 = jax.random.split(key, 5)
        params[f"w_ih_l{l}"] = jax.random.uniform(
            k1, (d_in, 4 * hidden_size), jnp.float32, -k, k)
        params[f"w_hh_l{l}"] = jax.random.uniform(
            k2, (hidden_size, 4 * hidden_size), jnp.float32, -k, k)
        b_ih = jax.random.uniform(k3, (4 * hidden_size,), jnp.float32, -k, k)
        b_hh = jax.random.uniform(k4, (4 * hidden_size,), jnp.float32, -k, k)
        params[f"b_l{l}"] = b_ih + b_hh
    key, k5, k6 = jax.random.split(key, 3)
    params["w_fc"] = jax.random.uniform(
        k5, (hidden_size, num_classes), jnp.float32, -k, k)
    params["b_fc"] = jax.random.uniform(
        k6, (1, num_classes), jnp.float32, -k, k)
    return params


def prepare_params(params, input_size, hidden_size, num_classes, nlayers):
    """Pad/pack params into the kernel layout (once, outside the kernel).

    H and num_classes are zero-padded to 128-lane multiples so every gate /
    logit block is lane-tile aligned; zero padding is exact (padded hidden
    units stay identically 0 through the recurrence).  Matmul weights are
    stored bf16; biases stay f32.
    """
    H = hidden_size
    Hp = _round_up(H, 128)
    Cp = _round_up(num_classes, 128)

    def pad_gate_cols(w):                      # (rows, 4H) -> (rows, 4Hp)
        rows = w.shape[0]
        w4 = w.reshape(rows, 4, H)
        w4 = jnp.pad(w4, ((0, 0), (0, 0), (0, Hp - H)))
        return w4.reshape(rows, 4 * Hp)

    def pad_rows(w, new_rows):
        return jnp.pad(w, ((0, new_rows - w.shape[0]), (0, 0)))

    out = {
        "w_ih_0": pad_gate_cols(params["w_ih_l0"]).astype(jnp.bfloat16),
        "b_0": pad_gate_cols(params["b_l0"].reshape(1, 4 * H)),        # f32
        "w_hh_0": pad_rows(pad_gate_cols(params["w_hh_l0"]),
                           Hp).astype(jnp.bfloat16),
    }
    deep = []
    for l in range(1, nlayers):
        w_ih = pad_rows(pad_gate_cols(params[f"w_ih_l{l}"]),
                        Hp).astype(jnp.bfloat16)
        w_hh = pad_rows(pad_gate_cols(params[f"w_hh_l{l}"]),
                        Hp).astype(jnp.bfloat16)
        b = pad_gate_cols(params[f"b_l{l}"].reshape(1, 4 * H))          # f32
        deep.append((w_ih, w_hh, b))
    out["deep"] = tuple(deep)
    out["w_fc"] = jnp.pad(
        params["w_fc"],
        ((0, Hp - H), (0, Cp - num_classes))).astype(jnp.bfloat16)
    out["b_fc"] = jnp.pad(params["b_fc"], ((0, 0), (0, Cp - num_classes)))
    return out


# --------------------------- Pure-JAX reference -------------------------------
def rnn_model_reference(x_btd, params, nlayers):
    """Un-padded, un-fused f32 reference (same math) for correctness."""
    B, T, _ = x_btd.shape
    H = params["w_hh_l0"].shape[0]
    h_seq = x_btd
    for l in range(nlayers):
        w_ih, w_hh, b = (params[f"w_ih_l{l}"], params[f"w_hh_l{l}"],
                         params[f"b_l{l}"])
        h = jnp.zeros((B, H), jnp.float32)
        c = jnp.zeros((B, H), jnp.float32)
        outs = []
        for t in range(T):
            gates = h_seq[:, t, :] @ w_ih + h @ w_hh + b
            i = jax.nn.sigmoid(gates[:, 0 * H:1 * H])
            f = jax.nn.sigmoid(gates[:, 1 * H:2 * H])
            g = jnp.tanh(gates[:, 2 * H:3 * H])
            o = jax.nn.sigmoid(gates[:, 3 * H:4 * H])
            c = f * c + i * g
            h = o * jnp.tanh(c)
            outs.append(h)
        h_seq = jnp.stack(outs, axis=1)
    return h_seq[:, -1, :] @ params["w_fc"] + params["b_fc"]


if __name__ == "__main__":
    # Small shapes consistent with the module's forward.
    B, T = 2, 8
    INPUT_SIZE, HIDDEN_SIZE, NLAYERS, NUM_CLASSES = 16, 32, 2, 5

    key = jax.random.PRNGKey(0)
    key, kx = jax.random.split(key)
    x = jax.random.normal(kx, (B, T, INPUT_SIZE), jnp.float32)

    params = init_params(key, INPUT_SIZE, HIDDEN_SIZE, NUM_CLASSES, NLAYERS)
    prepped = prepare_params(params, INPUT_SIZE, HIDDEN_SIZE, NUM_CLASSES,
                             NLAYERS)

    out = rnn_model_forward(x, prepped, NLAYERS, NUM_CLASSES)
    jax.block_until_ready(out)
    assert out.shape == (B, NUM_CLASSES)

    # Loose tolerance: bf16 weight storage + default-precision MXU passes.
    ref = rnn_model_reference(x, params, NLAYERS)
    max_err = float(jnp.max(jnp.abs(out - ref)))
    assert max_err < 5e-2, f"mismatch vs reference: max abs err {max_err}"

    print("KERNEL_OK")
</pallas_src>

<mosaic_0001>
module attributes {stable_mosaic.version = 11 : i64} {
  func.func @kernel(%arg0: i32, %arg1: memref<64x16xbf16, #tpu.memory_space<vmem>>, %arg2: memref<16x512xbf16, #tpu.memory_space<vmem>>, %arg3: memref<1x512xf32, #tpu.memory_space<vmem>>, %arg4: memref<128x512xbf16, #tpu.memory_space<vmem>>, %arg5: memref<128x512xbf16, #tpu.memory_space<vmem>>, %arg6: memref<128x512xbf16, #tpu.memory_space<vmem>>, %arg7: memref<1x512xf32, #tpu.memory_space<vmem>>, %arg8: memref<128x128xbf16, #tpu.memory_space<vmem>>, %arg9: memref<1x128xf32, #tpu.memory_space<vmem>>, %arg10: memref<8x128xf32, #tpu.memory_space<vmem>>, %arg11: memref<8x128xf32, #tpu.memory_space<vmem>>, %arg12: memref<8x128xf32, #tpu.memory_space<vmem>>, %arg13: memref<8x128xf32, #tpu.memory_space<vmem>>, %arg14: memref<8x128xf32, #tpu.memory_space<vmem>>) attributes {dimension_semantics = [#tpu.dimension_semantics<arbitrary>], iteration_bounds = array<i64: 1>, scalar_prefetch = 0 : i64, scratch_operands = 4 : i64, tpu.core_type = #tpu.core_type<tc>, window_params = [{transform_indices = @transform_0, window_bounds = array<i64: 64, 16>}, {pipeline_mode = #tpu.pipeline_mode<synchronous>, transform_indices = @transform_1, window_bounds = array<i64: 16, 512>}, {pipeline_mode = #tpu.pipeline_mode<synchronous>, transform_indices = @transform_2, window_bounds = array<i64: 1, 512>}, {pipeline_mode = #tpu.pipeline_mode<synchronous>, transform_indices = @transform_3, window_bounds = array<i64: 128, 512>}, {pipeline_mode = #tpu.pipeline_mode<synchronous>, transform_indices = @transform_4, window_bounds = array<i64: 128, 512>}, {pipeline_mode = #tpu.pipeline_mode<synchronous>, transform_indices = @transform_5, window_bounds = array<i64: 128, 512>}, {pipeline_mode = #tpu.pipeline_mode<synchronous>, transform_indices = @transform_6, window_bounds = array<i64: 1, 512>}, {pipeline_mode = #tpu.pipeline_mode<synchronous>, transform_indices = @transform_7, window_bounds = array<i64: 128, 128>}, {pipeline_mode = #tpu.pipeline_mode<synchronous>, transform_indices = @transform_8, window_bounds = array<i64: 1, 128>}, {pipeline_mode = #tpu.pipeline_mode<synchronous>, transform_indices = @transform_9, window_bounds = array<i64: 8, 128>}]} {
    %c0_i32 = arith.constant 0 : i32
    %0 = arith.cmpi eq, %arg0, %c0_i32 : i32
    %1 = arith.extui %0 : i1 to i32
    %c0_i32_0 = arith.constant 0 : i32
    %2 = arith.cmpi ne, %1, %c0_i32_0 : i32
    scf.if %2 {
      %cst_104 = arith.constant 0.000000e+00 : f32
      %506 = vector.broadcast %cst_104 : f32 to vector<8x128xf32>
      %c0_105 = arith.constant 0 : index
      %c0_106 = arith.constant 0 : index
      %507 = vector.load %arg11[%c0_105, %c0_106] : memref<8x128xf32, #tpu.memory_space<vmem>>, vector<8x128xf32>
      tpu.vector_store %arg11[%c0_105, %c0_106], %506 {strides = array<i32>} : memref<8x128xf32, #tpu.memory_space<vmem>>, vector<8x128xf32>,
      %cst_107 = arith.constant 0.000000e+00 : f32
      %508 = vector.broadcast %cst_107 : f32 to vector<8x128xf32>
      %c0_108 = arith.constant 0 : index
      %c0_109 = arith.constant 0 : index
      %509 = vector.load %arg13[%c0_108, %c0_109] : memref<8x128xf32, #tpu.memory_space<vmem>>, vector<8x128xf32>
      tpu.vector_store %arg13[%c0_108, %c0_109], %508 {strides = array<i32>} : memref<8x128xf32, #tpu.memory_space<vmem>>, vector<8x128xf32>,
      %cst_110 = arith.constant 0.000000e+00 : f32
      %510 = vector.broadcast %cst_110 : f32 to vector<8x128xf32>
      %c0_111 = arith.constant 0 : index
      %c0_112 = arith.constant 0 : index
      %511 = vector.load %arg12[%c0_111, %c0_112] : memref<8x128xf32, #tpu.memory_space<vmem>>, vector<8x128xf32>
      tpu.vector_store %arg12[%c0_111, %c0_112], %510 {strides = array<i32>} : memref<8x128xf32, #tpu.memory_space<vmem>>, vector<8x128xf32>,
      %cst_113 = arith.constant 0.000000e+00 : f32
      %512 = vector.broadcast %cst_113 : f32 to vector<8x128xf32>
      %c0_114 = arith.constant 0 : index
      %c0_115 = arith.constant 0 : index
      %513 = vector.load %arg14[%c0_114, %c0_115] : memref<8x128xf32, #tpu.memory_space<vmem>>, vector<8x128xf32>
      tpu.vector_store %arg14[%c0_114, %c0_115], %512 {strides = array<i32>} : memref<8x128xf32, #tpu.memory_space<vmem>>, vector<8x128xf32>,
    } else {
    }
    %c0 = arith.constant 0 : index
    %c0_1 = arith.constant 0 : index
    %3 = vector.load %arg4[%c0, %c0_1] : memref<128x512xbf16, #tpu.memory_space<vmem>>, vector<128x512xbf16>
    %c0_2 = arith.constant 0 : index
    %c0_3 = arith.constant 0 : index
    %4 = vector.load %arg5[%c0_2, %c0_3] : memref<128x512xbf16, #tpu.memory_space<vmem>>, vector<128x512xbf16>
    %c0_4 = arith.constant 0 : index
    %c0_5 = arith.constant 0 : index
    %5 = vector.load %arg6[%c0_4, %c0_5] : memref<128x512xbf16, #tpu.memory_space<vmem>>, vector<128x512xbf16>
    %c0_6 = arith.constant 0 : index
    %c0_7 = arith.constant 0 : index
    %6 = vector.load %arg7[%c0_6, %c0_7] : memref<1x512xf32, #tpu.memory_space<vmem>>, vector<1x512xf32>
    %7 = vector.shape_cast %6 : vector<1x512xf32> to vector<1x512xf32>
    %8 = vector.broadcast %7 : vector<1x512xf32> to vector<8x512xf32>
    %c0_8 = arith.constant 0 : index
    %c0_9 = arith.constant 0 : index
    %9 = vector.load %arg1[%c0_8, %c0_9] : memref<64x16xbf16, #tpu.memory_space<vmem>>, vector<64x16xbf16>
    %c0_10 = arith.constant 0 : index
    %c0_11 = arith.constant 0 : index
    %10 = vector.load %arg2[%c0_10, %c0_11] : memref<16x512xbf16, #tpu.memory_space<vmem>>, vector<16x512xbf16>
    %cst = arith.constant dense<0.000000e+00> : vector<64x512xf32>
    %11 = tpu.matmul %9, %10, %cst {dimension_numbers = #tpu.dot_dimension_numbers<[1], [0], [0], [1], [0, 0, 1, 1], [], []>} : vector<64x16xbf16>, vector<16x512xbf16>, vector<64x512xf32> -> vector<64x512xf32>
    %c0_12 = arith.constant 0 : index
    %c0_13 = arith.constant 0 : index
    %12 = vector.load %arg3[%c0_12, %c0_13] : memref<1x512xf32, #tpu.memory_space<vmem>>, vector<1x512xf32>
    %13 = vector.broadcast %12 : vector<1x512xf32> to vector<64x512xf32>
    %14 = arith.addf %11, %13 : vector<64x512xf32>
    %c0_14 = arith.constant 0 : index
    %c0_15 = arith.constant 0 : index
    %15 = vector.load %arg11[%c0_14, %c0_15] : memref<8x128xf32, #tpu.memory_space<vmem>>, vector<8x128xf32>
    %c0_16 = arith.constant 0 : index
    %c0_17 = arith.constant 0 : index
    %16 = vector.load %arg12[%c0_16, %c0_17] : memref<8x128xf32, #tpu.memory_space<vmem>>, vector<8x128xf32>
    %c0_18 = arith.constant 0 : index
    %c0_19 = arith.constant 0 : index
    %17 = vector.load %arg13[%c0_18, %c0_19] : memref<8x128xf32, #tpu.memory_space<vmem>>, vector<8x128xf32>
    %c0_20 = arith.constant 0 : index
    %c0_21 = arith.constant 0 : index
    %18 = vector.load %arg14[%c0_20, %c0_21] : memref<8x128xf32, #tpu.memory_space<vmem>>, vector<8x128xf32>
    %19 = vector.extract_strided_slice %14 {offsets = [0, 0], sizes = [8, 512], strides = [1, 1]} : vector<64x512xf32> to vector<8x512xf32>
    %20 = arith.truncf %15 : vector<8x128xf32> to vector<8x128xbf16>
    %cst_22 = arith.constant dense<0.000000e+00> : vector<8x512xf32>
    %21 = tpu.matmul %20, %3, %cst_22 {dimension_numbers = #tpu.dot_dimension_numbers<[1], [0], [0], [1], [0, 0, 1, 1], [], []>} : vector<8x128xbf16>, vector<128x512xbf16>, vector<8x512xf32> -> vector<8x512xf32>
    %22 = arith.addf %19, %21 : vector<8x512xf32>
    %23 = vector.extract_strided_slice %22 {offsets = [0, 0], sizes = [8, 128], strides = [1, 1]} : vector<8x512xf32> to vector<8x128xf32>
    %24 = arith.negf %23 : vector<8x128xf32>
    %25 = math.exp %24 : vector<8x128xf32>
    %cst_23 = arith.constant 1.000000e+00 : f32
    %26 = vector.broadcast %cst_23 : f32 to vector<8x128xf32>
    %27 = arith.addf %26, %25 : vector<8x128xf32>
    %28 = arith.divf %26, %27 : vector<8x128xf32>
    %29 = vector.extract_strided_slice %22 {offsets = [0, 128], sizes = [8, 128], strides = [1, 1]} : vector<8x512xf32> to vector<8x128xf32>
    %30 = arith.negf %29 : vector<8x128xf32>
    %31 = math.exp %30 : vector<8x128xf32>
    %cst_24 = arith.constant 1.000000e+00 : f32
    %32 = vector.broadcast %cst_24 : f32 to vector<8x128xf32>
    %33 = arith.addf %32, %31 : vector<8x128xf32>
    %34 = arith.divf %32, %33 : vector<8x128xf32>
    %35 = vector.extract_strided_slice %22 {offsets = [0, 256], sizes = [8, 128], strides = [1, 1]} : vector<8x512xf32> to vector<8x128xf32>
    %36 = math.tanh %35 : vector<8x128xf32>
    %37 = vector.extract_strided_slice %22 {offsets = [0, 384], sizes = [8, 128], strides = [1, 1]} : vector<8x512xf32> to vector<8x128xf32>
    %38 = arith.negf %37 : vector<8x128xf32>
    %39 = math.exp %38 : vector<8x128xf32>
    %cst_25 = arith.constant 1.000000e+00 : f32
    %40 = vector.broadcast %cst_25 : f32 to vector<8x128xf32>
    %41 = arith.addf %40, %39 : vector<8x128xf32>
    %42 = arith.divf %40, %41 : vector<8x128xf32>
    %43 = arith.mulf %34, %17 : vector<8x128xf32>
    %44 = arith.mulf %28, %36 : vector<8x128xf32>
    %45 = arith.addf %43, %44 : vector<8x128xf32>
    %46 = math.tanh %45 : vector<8x128xf32>
    %47 = arith.mulf %42, %46 : vector<8x128xf32>
    %48 = arith.truncf %47 : vector<8x128xf32> to vector<8x128xbf16>
    %cst_26 = arith.constant dense<0.000000e+00> : vector<8x512xf32>
    %49 = tpu.matmul %48, %4, %cst_26 {dimension_numbers = #tpu.dot_dimension_numbers<[1], [0], [0], [1], [0, 0, 1, 1], [], []>} : vector<8x128xbf16>, vector<128x512xbf16>, vector<8x512xf32> -> vector<8x512xf32>
    %50 = arith.truncf %16 : vector<8x128xf32> to vector<8x128xbf16>
    %cst_27 = arith.constant dense<0.000000e+00> : vector<8x512xf32>
    %51 = tpu.matmul %50, %5, %cst_27 {dimension_numbers = #tpu.dot_dimension_numbers<[1], [0], [0], [1], [0, 0, 1, 1], [], []>} : vector<8x128xbf16>, vector<128x512xbf16>, vector<8x512xf32> -> vector<8x512xf32>
    %52 = arith.addf %49, %51 : vector<8x512xf32>
    %53 = arith.addf %52, %8 : vector<8x512xf32>
    %54 = vector.extract_strided_slice %53 {offsets = [0, 0], sizes = [8, 128], strides = [1, 1]} : vector<8x512xf32> to vector<8x128xf32>
    %55 = arith.negf %54 : vector<8x128xf32>
    %56 = math.exp %55 : vector<8x128xf32>
    %cst_28 = arith.constant 1.000000e+00 : f32
    %57 = vector.broadcast %cst_28 : f32 to vector<8x128xf32>
    %58 = arith.addf %57, %56 : vector<8x128xf32>
    %59 = arith.divf %57, %58 : vector<8x128xf32>
    %60 = vector.extract_strided_slice %53 {offsets = [0, 128], sizes = [8, 128], strides = [1, 1]} : vector<8x512xf32> to vector<8x128xf32>
    %61 = arith.negf %60 : vector<8x128xf32>
    %62 = math.exp %61 : vector<8x128xf32>
    %cst_29 = arith.constant 1.000000e+00 : f32
    %63 = vector.broadcast %cst_29 : f32 to vector<8x128xf32>
    %64 = arith.addf %63, %62 : vector<8x128xf32>
    %65 = arith.divf %63, %64 : vector<8x128xf32>
    %66 = vector.extract_strided_slice %53 {offsets = [0, 256], sizes = [8, 128], strides = [1, 1]} : vector<8x512xf32> to vector<8x128xf32>
    %67 = math.tanh %66 : vector<8x128xf32>
    %68 = vector.extract_strided_slice %53 {offsets = [0, 384], sizes = [8, 128], strides = [1, 1]} : vector<8x512xf32> to vector<8x128xf32>
    %69 = arith.negf %68 : vector<8x128xf32>
    %70 = math.exp %69 : vector<8x128xf32>
    %cst_30 = arith.constant 1.000000e+00 : f32
    %71 = vector.broadcast %cst_30 : f32 to vector<8x128xf32>
    %72 = arith.addf %71, %70 : vector<8x128xf32>
    %73 = arith.divf %71, %72 : vector<8x128xf32>
    %74 = arith.mulf %65, %18 : vector<8x128xf32>
    %75 = arith.mulf %59, %67 : vector<8x128xf32>
    %76 = arith.addf %74, %75 : vector<8x128xf32>
    %77 = math.tanh %76 : vector<8x128xf32>
    %78 = arith.mulf %73, %77 : vector<8x128xf32>
    %79 = vector.extract_strided_slice %14 {offsets = [8, 0], sizes = [8, 512], strides = [1, 1]} : vector<64x512xf32> to vector<8x512xf32>
    %80 = arith.truncf %47 : vector<8x128xf32> to vector<8x128xbf16>
    %cst_31 = arith.constant dense<0.000000e+00> : vector<8x512xf32>
    %81 = tpu.matmul %80, %3, %cst_31 {dimension_numbers = #tpu.dot_dimension_numbers<[1], [0], [0], [1], [0, 0, 1, 1], [], []>} : vector<8x128xbf16>, vector<128x512xbf16>, vector<8x512xf32> -> vector<8x512xf32>
    %82 = arith.addf %79, %81 : vector<8x512xf32>
    %83 = vector.extract_strided_slice %82 {offsets = [0, 0], sizes = [8, 128], strides = [1, 1]} : vector<8x512xf32> to vector<8x128xf32>
    %84 = arith.negf %83 : vector<8x128xf32>
    %85 = math.exp %84 : vector<8x128xf32>
    %cst_32 = arith.constant 1.000000e+00 : f32
    %86 = vector.broadcast %cst_32 : f32 to vector<8x128xf32>
    %87 = arith.addf %86, %85 : vector<8x128xf32>
    %88 = arith.divf %86, %87 : vector<8x128xf32>
    %89 = vector.extract_strided_slice %82 {offsets = [0, 128], sizes = [8, 128], strides = [1, 1]} : vector<8x512xf32> to vector<8x128xf32>
    %90 = arith.negf %89 : vector<8x128xf32>
    %91 = math.exp %90 : vector<8x128xf32>
    %cst_33 = arith.constant 1.000000e+00 : f32
    %92 = vector.broadcast %cst_33 : f32 to vector<8x128xf32>
    %93 = arith.addf %92, %91 : vector<8x128xf32>
    %94 = arith.divf %92, %93 : vector<8x128xf32>
    %95 = vector.extract_strided_slice %82 {offsets = [0, 256], sizes = [8, 128], strides = [1, 1]} : vector<8x512xf32> to vector<8x128xf32>
    %96 = math.tanh %95 : vector<8x128xf32>
    %97 = vector.extract_strided_slice %82 {offsets = [0, 384], sizes = [8, 128], strides = [1, 1]} : vector<8x512xf32> to vector<8x128xf32>
    %98 = arith.negf %97 : vector<8x128xf32>
    %99 = math.exp %98 : vector<8x128xf32>
    %cst_34 = arith.constant 1.000000e+00 : f32
    %100 = vector.broadcast %cst_34 : f32 to vector<8x128xf32>
    %101 = arith.addf %100, %99 : vector<8x128xf32>
    %102 = arith.divf %100, %101 : vector<8x128xf32>
    %103 = arith.mulf %94, %45 : vector<8x128xf32>
    %104 = arith.mulf %88, %96 : vector<8x128xf32>
    %105 = arith.addf %103, %104 : vector<8x128xf32>
    %106 = math.tanh %105 : vector<8x128xf32>
    %107 = arith.mulf %102, %106 : vector<8x128xf32>
    %108 = arith.truncf %107 : vector<8x128xf32> to vector<8x128xbf16>
    %cst_35 = arith.constant dense<0.000000e+00> : vector<8x512xf32>
    %109 = tpu.matmul %108, %4, %cst_35 {dimension_numbers = #tpu.dot_dimension_numbers<[1], [0], [0], [1], [0, 0, 1, 1], [], []>} : vector<8x128xbf16>, vector<128x512xbf16>, vector<8x512xf32> -> vector<8x512xf32>
    %110 = arith.truncf %78 : vector<8x128xf32> to vector<8x128xbf16>
    %cst_36 = arith.constant dense<0.000000e+00> : vector<8x512xf32>
    %111 = tpu.matmul %110, %5, %cst_36 {dimension_numbers = #tpu.dot_dimension_numbers<[1], [0], [0], [1], [0, 0, 1, 1], [], []>} : vector<8x128xbf16>, vector<128x512xbf16>, vector<8x512xf32> -> vector<8x512xf32>
    %112 = arith.addf %109, %111 : vector<8x512xf32>
    %113 = arith.addf %112, %8 : vector<8x512xf32>
    %114 = vector.extract_strided_slice %113 {offsets = [0, 0], sizes = [8, 128], strides = [1, 1]} : vector<8x512xf32> to vector<8x128xf32>
    %115 = arith.negf %114 : vector<8x128xf32>
    %116 = math.exp %115 : vector<8x128xf32>
    %cst_37 = arith.constant 1.000000e+00 : f32
    %117 = vector.broadcast %cst_37 : f32 to vector<8x128xf32>
    %118 = arith.addf %117, %116 : vector<8x128xf32>
    %119 = arith.divf %117, %118 : vector<8x128xf32>
    %120 = vector.extract_strided_slice %113 {offsets = [0, 128], sizes = [8, 128], strides = [1, 1]} : vector<8x512xf32> to vector<8x128xf32>
    %121 = arith.negf %120 : vector<8x128xf32>
    %122 = math.exp %121 : vector<8x128xf32>
    %cst_38 = arith.constant 1.000000e+00 : f32
    %123 = vector.broadcast %cst_38 : f32 to vector<8x128xf32>
    %124 = arith.addf %123, %122 : vector<8x128xf32>
    %125 = arith.divf %123, %124 : vector<8x128xf32>
    %126 = vector.extract_strided_slice %113 {offsets = [0, 256], sizes = [8, 128], strides = [1, 1]} : vector<8x512xf32> to vector<8x128xf32>
    %127 = math.tanh %126 : vector<8x128xf32>
    %128 = vector.extract_strided_slice %113 {offsets = [0, 384], sizes = [8, 128], strides = [1, 1]} : vector<8x512xf32> to vector<8x128xf32>
    %129 = arith.negf %128 : vector<8x128xf32>
    %130 = math.exp %129 : vector<8x128xf32>
    %cst_39 = arith.constant 1.000000e+00 : f32
    %131 = vector.broadcast %cst_39 : f32 to vector<8x128xf32>
    %132 = arith.addf %131, %130 : vector<8x128xf32>
    %133 = arith.divf %131, %132 : vector<8x128xf32>
    %134 = arith.mulf %125, %76 : vector<8x128xf32>
    %135 = arith.mulf %119, %127 : vector<8x128xf32>
    %136 = arith.addf %134, %135 : vector<8x128xf32>
    %137 = math.tanh %136 : vector<8x128xf32>
    %138 = arith.mulf %133, %137 : vector<8x128xf32>
    %139 = vector.extract_strided_slice %14 {offsets = [16, 0], sizes = [8, 512], strides = [1, 1]} : vector<64x512xf32> to vector<8x512xf32>
    %140 = arith.truncf %107 : vector<8x128xf32> to vector<8x128xbf16>
    %cst_40 = arith.constant dense<0.000000e+00> : vector<8x512xf32>
    %141 = tpu.matmul %140, %3, %cst_40 {dimension_numbers = #tpu.dot_dimension_numbers<[1], [0], [0], [1], [0, 0, 1, 1], [], []>} : vector<8x128xbf16>, vector<128x512xbf16>, vector<8x512xf32> -> vector<8x512xf32>
    %142 = arith.addf %139, %141 : vector<8x512xf32>
    %143 = vector.extract_strided_slice %142 {offsets = [0, 0], sizes = [8, 128], strides = [1, 1]} : vector<8x512xf32> to vector<8x128xf32>
    %144 = arith.negf %143 : vector<8x128xf32>
    %145 = math.exp %144 : vector<8x128xf32>
    %cst_41 = arith.constant 1.000000e+00 : f32
    %146 = vector.broadcast %cst_41 : f32 to vector<8x128xf32>
    %147 = arith.addf %146, %145 : vector<8x128xf32>
    %148 = arith.divf %146, %147 : vector<8x128xf32>
    %149 = vector.extract_strided_slice %142 {offsets = [0, 128], sizes = [8, 128], strides = [1, 1]} : vector<8x512xf32> to vector<8x128xf32>
    %150 = arith.negf %149 : vector<8x128xf32>
    %151 = math.exp %150 : vector<8x128xf32>
    %cst_42 = arith.constant 1.000000e+00 : f32
    %152 = vector.broadcast %cst_42 : f32 to vector<8x128xf32>
    %153 = arith.addf %152, %151 : vector<8x128xf32>
    %154 = arith.divf %152, %153 : vector<8x128xf32>
    %155 = vector.extract_strided_slice %142 {offsets = [0, 256], sizes = [8, 128], strides = [1, 1]} : vector<8x512xf32> to vector<8x128xf32>
    %156 = math.tanh %155 : vector<8x128xf32>
    %157 = vector.extract_strided_slice %142 {offsets = [0, 384], sizes = [8, 128], strides = [1, 1]} : vector<8x512xf32> to vector<8x128xf32>
    %158 = arith.negf %157 : vector<8x128xf32>
    %159 = math.exp %158 : vector<8x128xf32>
    %cst_43 = arith.constant 1.000000e+00 : f32
    %160 = vector.broadcast %cst_43 : f32 to vector<8x128xf32>
    %161 = arith.addf %160, %159 : vector<8x128xf32>
    %162 = arith.divf %160, %161 : vector<8x128xf32>
    %163 = arith.mulf %154, %105 : vector<8x128xf32>
    %164 = arith.mulf %148, %156 : vector<8x128xf32>
    %165 = arith.addf %163, %164 : vector<8x128xf32>
    %166 = math.tanh %165 : vector<8x128xf32>
    %167 = arith.mulf %162, %166 : vector<8x128xf32>
    %168 = arith.truncf %167 : vector<8x128xf32> to vector<8x128xbf16>
    %cst_44 = arith.constant dense<0.000000e+00> : vector<8x512xf32>
    %169 = tpu.matmul %168, %4, %cst_44 {dimension_numbers = #tpu.dot_dimension_numbers<[1], [0], [0], [1], [0, 0, 1, 1], [], []>} : vector<8x128xbf16>, vector<128x512xbf16>, vector<8x512xf32> -> vector<8x512xf32>
    %170 = arith.truncf %138 : vector<8x128xf32> to vector<8x128xbf16>
    %cst_45 = arith.constant dense<0.000000e+00> : vector<8x512xf32>
    %171 = tpu.matmul %170, %5, %cst_45 {dimension_numbers = #tpu.dot_dimension_numbers<[1], [0], [0], [1], [0, 0, 1, 1], [], []>} : vector<8x128xbf16>, vector<128x512xbf16>, vector<8x512xf32> -> vector<8x512xf32>
    %172 = arith.addf %169, %171 : vector<8x512xf32>
    %173 = arith.addf %172, %8 : vector<8x512xf32>
    %174 = vector.extract_strided_slice %173 {offsets = [0, 0], sizes = [8, 128], strides = [1, 1]} : vector<8x512xf32> to vector<8x128xf32>
    %175 = arith.negf %174 : vector<8x128xf32>
    %176 = math.exp %175 : vector<8x128xf32>
    %cst_46 = arith.constant 1.000000e+00 : f32
    %177 = vector.broadcast %cst_46 : f32 to vector<8x128xf32>
    %178 = arith.addf %177, %176 : vector<8x128xf32>
    %179 = arith.divf %177, %178 : vector<8x128xf32>
    %180 = vector.extract_strided_slice %173 {offsets = [0, 128], sizes = [8, 128], strides = [1, 1]} : vector<8x512xf32> to vector<8x128xf32>
    %181 = arith.negf %180 : vector<8x128xf32>
    %182 = math.exp %181 : vector<8x128xf32>
    %cst_47 = arith.constant 1.000000e+00 : f32
    %183 = vector.broadcast %cst_47 : f32 to vector<8x128xf32>
    %184 = arith.addf %183, %182 : vector<8x128xf32>
    %185 = arith.divf %183, %184 : vector<8x128xf32>
    %186 = vector.extract_strided_slice %173 {offsets = [0, 256], sizes = [8, 128], strides = [1, 1]} : vector<8x512xf32> to vector<8x128xf32>
    %187 = math.tanh %186 : vector<8x128xf32>
    %188 = vector.extract_strided_slice %173 {offsets = [0, 384], sizes = [8, 128], strides = [1, 1]} : vector<8x512xf32> to vector<8x128xf32>
    %189 = arith.negf %188 : vector<8x128xf32>
    %190 = math.exp %189 : vector<8x128xf32>
    %cst_48 = arith.constant 1.000000e+00 : f32
    %191 = vector.broadcast %cst_48 : f32 to vector<8x128xf32>
    %192 = arith.addf %191, %190 : vector<8x128xf32>
    %193 = arith.divf %191, %192 : vector<8x128xf32>
    %194 = arith.mulf %185, %136 : vector<8x128xf32>
    %195 = arith.mulf %179, %187 : vector<8x128xf32>
    %196 = arith.addf %194, %195 : vector<8x128xf32>
    %197 = math.tanh %196 : vector<8x128xf32>
    %198 = arith.mulf %193, %197 : vector<8x128xf32>
    %199 = vector.extract_strided_slice %14 {offsets = [24, 0], sizes = [8, 512], strides = [1, 1]} : vector<64x512xf32> to vector<8x512xf32>
    %200 = arith.truncf %167 : vector<8x128xf32> to vector<8x128xbf16>
    %cst_49 = arith.constant dense<0.000000e+00> : vector<8x512xf32>
    %201 = tpu.matmul %200, %3, %cst_49 {dimension_numbers = #tpu.dot_dimension_numbers<[1], [0], [0], [1], [0, 0, 1, 1], [], []>} : vector<8x128xbf16>, vector<128x512xbf16>, vector<8x512xf32> -> vector<8x512xf32>
    %202 = arith.addf %199, %201 : vector<8x512xf32>
    %203 = vector.extract_strided_slice %202 {offsets = [0, 0], sizes = [8, 128], strides = [1, 1]} : vector<8x512xf32> to vector<8x128xf32>
    %204 = arith.negf %203 : vector<8x128xf32>
    %205 = math.exp %204 : vector<8x128xf32>
    %cst_50 = arith.constant 1.000000e+00 : f32
    %206 = vector.broadcast %cst_50 : f32 to vector<8x128xf32>
    %207 = arith.addf %206, %205 : vector<8x128xf32>
    %208 = arith.divf %206, %207 : vector<8x128xf32>
    %209 = vector.extract_strided_slice %202 {offsets = [0, 128], sizes = [8, 128], strides = [1, 1]} : vector<8x512xf32> to vector<8x128xf32>
    %210 = arith.negf %209 : vector<8x128xf32>
    %211 = math.exp %210 : vector<8x128xf32>
    %cst_51 = arith.constant 1.000000e+00 : f32
    %212 = vector.broadcast %cst_51 : f32 to vector<8x128xf32>
    %213 = arith.addf %212, %211 : vector<8x128xf32>
    %214 = arith.divf %212, %213 : vector<8x128xf32>
    %215 = vector.extract_strided_slice %202 {offsets = [0, 256], sizes = [8, 128], strides = [1, 1]} : vector<8x512xf32> to vector<8x128xf32>
    %216 = math.tanh %215 : vector<8x128xf32>
    %217 = vector.extract_strided_slice %202 {offsets = [0, 384], sizes = [8, 128], strides = [1, 1]} : vector<8x512xf32> to vector<8x128xf32>
    %218 = arith.negf %217 : vector<8x128xf32>
    %219 = math.exp %218 : vector<8x128xf32>
    %cst_52 = arith.constant 1.000000e+00 : f32
    %220 = vector.broadcast %cst_52 : f32 to vector<8x128xf32>
    %221 = arith.addf %220, %219 : vector<8x128xf32>
    %222 = arith.divf %220, %221 : vector<8x128xf32>
    %223 = arith.mulf %214, %165 : vector<8x128xf32>
    %224 = arith.mulf %208, %216 : vector<8x128xf32>
    %225 = arith.addf %223, %224 : vector<8x128xf32>
    %226 = math.tanh %225 : vector<8x128xf32>
    %227 = arith.mulf %222, %226 : vector<8x128xf32>
    %228 = arith.truncf %227 : vector<8x128xf32> to vector<8x128xbf16>
    %cst_53 = arith.constant dense<0.000000e+00> : vector<8x512xf32>
    %229 = tpu.matmul %228, %4, %cst_53 {dimension_numbers = #tpu.dot_dimension_numbers<[1], [0], [0], [1], [0, 0, 1, 1], [], []>} : vector<8x128xbf16>, vector<128x512xbf16>, vector<8x512xf32> -> vector<8x512xf32>
    %230 = arith.truncf %198 : vector<8x128xf32> to vector<8x128xbf16>
    %cst_54 = arith.constant dense<0.000000e+00> : vector<8x512xf32>
    %231 = tpu.matmul %230, %5, %cst_54 {dimension_numbers = #tpu.dot_dimension_numbers<[1], [0], [0], [1], [0, 0, 1, 1], [], []>} : vector<8x128xbf16>, vector<128x512xbf16>, vector<8x512xf32> -> vector<8x512xf32>
    %232 = arith.addf %229, %231 : vector<8x512xf32>
    %233 = arith.addf %232, %8 : vector<8x512xf32>
    %234 = vector.extract_strided_slice %233 {offsets = [0, 0], sizes = [8, 128], strides = [1, 1]} : vector<8x512xf32> to vector<8x128xf32>
    %235 = arith.negf %234 : vector<8x128xf32>
    %236 = math.exp %235 : vector<8x128xf32>
    %cst_55 = arith.constant 1.000000e+00 : f32
    %237 = vector.broadcast %cst_55 : f32 to vector<8x128xf32>
    %238 = arith.addf %237, %236 : vector<8x128xf32>
    %239 = arith.divf %237, %238 : vector<8x128xf32>
    %240 = vector.extract_strided_slice %233 {offsets = [0, 128], sizes = [8, 128], strides = [1, 1]} : vector<8x512xf32> to vector<8x128xf32>
    %241 = arith.negf %240 : vector<8x128xf32>
    %242 = math.exp %241 : vector<8x128xf32>
    %cst_56 = arith.constant 1.000000e+00 : f32
    %243 = vector.broadcast %cst_56 : f32 to vector<8x128xf32>
    %244 = arith.addf %243, %242 : vector<8x128xf32>
    %245 = arith.divf %243, %244 : vector<8x128xf32>
    %246 = vector.extract_strided_slice %233 {offsets = [0, 256], sizes = [8, 128], strides = [1, 1]} : vector<8x512xf32> to vector<8x128xf32>
    %247 = math.tanh %246 : vector<8x128xf32>
    %248 = vector.extract_strided_slice %233 {offsets = [0, 384], sizes = [8, 128], strides = [1, 1]} : vector<8x512xf32> to vector<8x128xf32>
    %249 = arith.negf %248 : vector<8x128xf32>
    %250 = math.exp %249 : vector<8x128xf32>
    %cst_57 = arith.constant 1.000000e+00 : f32
    %251 = vector.broadcast %cst_57 : f32 to vector<8x128xf32>
    %252 = arith.addf %251, %250 : vector<8x128xf32>
    %253 = arith.divf %251, %252 : vector<8x128xf32>
    %254 = arith.mulf %245, %196 : vector<8x128xf32>
    %255 = arith.mulf %239, %247 : vector<8x128xf32>
    %256 = arith.addf %254, %255 : vector<8x128xf32>
    %257 = math.tanh %256 : vector<8x128xf32>
    %258 = arith.mulf %253, %257 : vector<8x128xf32>
    %259 = vector.extract_strided_slice %14 {offsets = [32, 0], sizes = [8, 512], strides = [1, 1]} : vector<64x512xf32> to vector<8x512xf32>
    %260 = arith.truncf %227 : vector<8x128xf32> to vector<8x128xbf16>
    %cst_58 = arith.constant dense<0.000000e+00> : vector<8x512xf32>
    %261 = tpu.matmul %260, %3, %cst_58 {dimension_numbers = #tpu.dot_dimension_numbers<[1], [0], [0], [1], [0, 0, 1, 1], [], []>} : vector<8x128xbf16>, vector<128x512xbf16>, vector<8x512xf32> -> vector<8x512xf32>
    %262 = arith.addf %259, %261 : vector<8x512xf32>
    %263 = vector.extract_strided_slice %262 {offsets = [0, 0], sizes = [8, 128], strides = [1, 1]} : vector<8x512xf32> to vector<8x128xf32>
    %264 = arith.negf %263 : vector<8x128xf32>
    %265 = math.exp %264 : vector<8x128xf32>
    %cst_59 = arith.constant 1.000000e+00 : f32
    %266 = vector.broadcast %cst_59 : f32 to vector<8x128xf32>
    %267 = arith.addf %266, %265 : vector<8x128xf32>
    %268 = arith.divf %266, %267 : vector<8x128xf32>
    %269 = vector.extract_strided_slice %262 {offsets = [0, 128], sizes = [8, 128], strides = [1, 1]} : vector<8x512xf32> to vector<8x128xf32>
    %270 = arith.negf %269 : vector<8x128xf32>
    %271 = math.exp %270 : vector<8x128xf32>
    %cst_60 = arith.constant 1.000000e+00 : f32
    %272 = vector.broadcast %cst_60 : f32 to vector<8x128xf32>
    %273 = arith.addf %272, %271 : vector<8x128xf32>
    %274 = arith.divf %272, %273 : vector<8x128xf32>
    %275 = vector.extract_strided_slice %262 {offsets = [0, 256], sizes = [8, 128], strides = [1, 1]} : vector<8x512xf32> to vector<8x128xf32>
    %276 = math.tanh %275 : vector<8x128xf32>
    %277 = vector.extract_strided_slice %262 {offsets = [0, 384], sizes = [8, 128], strides = [1, 1]} : vector<8x512xf32> to vector<8x128xf32>
    %278 = arith.negf %277 : vector<8x128xf32>
    %279 = math.exp %278 : vector<8x128xf32>
    %cst_61 = arith.constant 1.000000e+00 : f32
    %280 = vector.broadcast %cst_61 : f32 to vector<8x128xf32>
    %281 = arith.addf %280, %279 : vector<8x128xf32>
    %282 = arith.divf %280, %281 : vector<8x128xf32>
    %283 = arith.mulf %274, %225 : vector<8x128xf32>
    %284 = arith.mulf %268, %276 : vector<8x128xf32>
    %285 = arith.addf %283, %284 : vector<8x128xf32>
    %286 = math.tanh %285 : vector<8x128xf32>
    %287 = arith.mulf %282, %286 : vector<8x128xf32>
    %288 = arith.truncf %287 : vector<8x128xf32> to vector<8x128xbf16>
    %cst_62 = arith.constant dense<0.000000e+00> : vector<8x512xf32>
    %289 = tpu.matmul %288, %4, %cst_62 {dimension_numbers = #tpu.dot_dimension_numbers<[1], [0], [0], [1], [0, 0, 1, 1], [], []>} : vector<8x128xbf16>, vector<128x512xbf16>, vector<8x512xf32> -> vector<8x512xf32>
    %290 = arith.truncf %258 : vector<8x128xf32> to vector<8x128xbf16>
    %cst_63 = arith.constant dense<0.000000e+00> : vector<8x512xf32>
    %291 = tpu.matmul %290, %5, %cst_63 {dimension_numbers = #tpu.dot_dimension_numbers<[1], [0], [0], [1], [0, 0, 1, 1], [], []>} : vector<8x128xbf16>, vector<128x512xbf16>, vector<8x512xf32> -> vector<8x512xf32>
    %292 = arith.addf %289, %291 : vector<8x512xf32>
    %293 = arith.addf %292, %8 : vector<8x512xf32>
    %294 = vector.extract_strided_slice %293 {offsets = [0, 0], sizes = [8, 128], strides = [1, 1]} : vector<8x512xf32> to vector<8x128xf32>
    %295 = arith.negf %294 : vector<8x128xf32>
    %296 = math.exp %295 : vector<8x128xf32>
    %cst_64 = arith.constant 1.000000e+00 : f32
    %297 = vector.broadcast %cst_64 : f32 to vector<8x128xf32>
    %298 = arith.addf %297, %296 : vector<8x128xf32>
    %299 = arith.divf %297, %298 : vector<8x128xf32>
    %300 = vector.extract_strided_slice %293 {offsets = [0, 128], sizes = [8, 128], strides = [1, 1]} : vector<8x512xf32> to vector<8x128xf32>
    %301 = arith.negf %300 : vector<8x128xf32>
    %302 = math.exp %301 : vector<8x128xf32>
    %cst_65 = arith.constant 1.000000e+00 : f32
    %303 = vector.broadcast %cst_65 : f32 to vector<8x128xf32>
    %304 = arith.addf %303, %302 : vector<8x128xf32>
    %305 = arith.divf %303, %304 : vector<8x128xf32>
    %306 = vector.extract_strided_slice %293 {offsets = [0, 256], sizes = [8, 128], strides = [1, 1]} : vector<8x512xf32> to vector<8x128xf32>
    %307 = math.tanh %306 : vector<8x128xf32>
    %308 = vector.extract_strided_slice %293 {offsets = [0, 384], sizes = [8, 128], strides = [1, 1]} : vector<8x512xf32> to vector<8x128xf32>
    %309 = arith.negf %308 : vector<8x128xf32>
    %310 = math.exp %309 : vector<8x128xf32>
    %cst_66 = arith.constant 1.000000e+00 : f32
    %311 = vector.broadcast %cst_66 : f32 to vector<8x128xf32>
    %312 = arith.addf %311, %310 : vector<8x128xf32>
    %313 = arith.divf %311, %312 : vector<8x128xf32>
    %314 = arith.mulf %305, %256 : vector<8x128xf32>
    %315 = arith.mulf %299, %307 : vector<8x128xf32>
    %316 = arith.addf %314, %315 : vector<8x128xf32>
    %317 = math.tanh %316 : vector<8x128xf32>
    %318 = arith.mulf %313, %317 : vector<8x128xf32>
    %319 = vector.extract_strided_slice %14 {offsets = [40, 0], sizes = [8, 512], strides = [1, 1]} : vector<64x512xf32> to vector<8x512xf32>
    %320 = arith.truncf %287 : vector<8x128xf32> to vector<8x128xbf16>
    %cst_67 = arith.constant dense<0.000000e+00> : vector<8x512xf32>
    %321 = tpu.matmul %320, %3, %cst_67 {dimension_numbers = #tpu.dot_dimension_numbers<[1], [0], [0], [1], [0, 0, 1, 1], [], []>} : vector<8x128xbf16>, vector<128x512xbf16>, vector<8x512xf32> -> vector<8x512xf32>
    %322 = arith.addf %319, %321 : vector<8x512xf32>
    %323 = vector.extract_strided_slice %322 {offsets = [0, 0], sizes = [8, 128], strides = [1, 1]} : vector<8x512xf32> to vector<8x128xf32>
    %324 = arith.negf %323 : vector<8x128xf32>
    %325 = math.exp %324 : vector<8x128xf32>
    %cst_68 = arith.constant 1.000000e+00 : f32
    %326 = vector.broadcast %cst_68 : f32 to vector<8x128xf32>
    %327 = arith.addf %326, %325 : vector<8x128xf32>
    %328 = arith.divf %326, %327 : vector<8x128xf32>
    %329 = vector.extract_strided_slice %322 {offsets = [0, 128], sizes = [8, 128], strides = [1, 1]} : vector<8x512xf32> to vector<8x128xf32>
    %330 = arith.negf %329 : vector<8x128xf32>
    %331 = math.exp %330 : vector<8x128xf32>
    %cst_69 = arith.constant 1.000000e+00 : f32
    %332 = vector.broadcast %cst_69 : f32 to vector<8x128xf32>
    %333 = arith.addf %332, %331 : vector<8x128xf32>
    %334 = arith.divf %332, %333 : vector<8x128xf32>
    %335 = vector.extract_strided_slice %322 {offsets = [0, 256], sizes = [8, 128], strides = [1, 1]} : vector<8x512xf32> to vector<8x128xf32>
    %336 = math.tanh %335 : vector<8x128xf32>
    %337 = vector.extract_strided_slice %322 {offsets = [0, 384], sizes = [8, 128], strides = [1, 1]} : vector<8x512xf32> to vector<8x128xf32>
    %338 = arith.negf %337 : vector<8x128xf32>
    %339 = math.exp %338 : vector<8x128xf32>
    %cst_70 = arith.constant 1.000000e+00 : f32
    %340 = vector.broadcast %cst_70 : f32 to vector<8x128xf32>
    %341 = arith.addf %340, %339 : vector<8x128xf32>
    %342 = arith.divf %340, %341 : vector<8x128xf32>
    %343 = arith.mulf %334, %285 : vector<8x128xf32>
    %344 = arith.mulf %328, %336 : vector<8x128xf32>
    %345 = arith.addf %343, %344 : vector<8x128xf32>
    %346 = math.tanh %345 : vector<8x128xf32>
    %347 = arith.mulf %342, %346 : vector<8x128xf32>
    %348 = arith.truncf %347 : vector<8x128xf32> to vector<8x128xbf16>
    %cst_71 = arith.constant dense<0.000000e+00> : vector<8x512xf32>
    %349 = tpu.matmul %348, %4, %cst_71 {dimension_numbers = #tpu.dot_dimension_numbers<[1], [0], [0], [1], [0, 0, 1, 1], [], []>} : vector<8x128xbf16>, vector<128x512xbf16>, vector<8x512xf32> -> vector<8x512xf32>
    %350 = arith.truncf %318 : vector<8x128xf32> to vector<8x128xbf16>
    %cst_72 = arith.constant dense<0.000000e+00> : vector<8x512xf32>
    %351 = tpu.matmul %350, %5, %cst_72 {dimension_numbers = #tpu.dot_dimension_numbers<[1], [0], [0], [1], [0, 0, 1, 1], [], []>} : vector<8x128xbf16>, vector<128x512xbf16>, vector<8x512xf32> -> vector<8x512xf32>
    %352 = arith.addf %349, %351 : vector<8x512xf32>
    %353 = arith.addf %352, %8 : vector<8x512xf32>
    %354 = vector.extract_strided_slice %353 {offsets = [0, 0], sizes = [8, 128], strides = [1, 1]} : vector<8x512xf32> to vector<8x128xf32>
    %355 = arith.negf %354 : vector<8x128xf32>
    %356 = math.exp %355 : vector<8x128xf32>
    %cst_73 = arith.constant 1.000000e+00 : f32
    %357 = vector.broadcast %cst_73 : f32 to vector<8x128xf32>
    %358 = arith.addf %357, %356 : vector<8x128xf32>
    %359 = arith.divf %357, %358 : vector<8x128xf32>
    %360 = vector.extract_strided_slice %353 {offsets = [0, 128], sizes = [8, 128], strides = [1, 1]} : vector<8x512xf32> to vector<8x128xf32>
    %361 = arith.negf %360 : vector<8x128xf32>
    %362 = math.exp %361 : vector<8x128xf32>
    %cst_74 = arith.constant 1.000000e+00 : f32
    %363 = vector.broadcast %cst_74 : f32 to vector<8x128xf32>
    %364 = arith.addf %363, %362 : vector<8x128xf32>
    %365 = arith.divf %363, %364 : vector<8x128xf32>
    %366 = vector.extract_strided_slice %353 {offsets = [0, 256], sizes = [8, 128], strides = [1, 1]} : vector<8x512xf32> to vector<8x128xf32>
    %367 = math.tanh %366 : vector<8x128xf32>
    %368 = vector.extract_strided_slice %353 {offsets = [0, 384], sizes = [8, 128], strides = [1, 1]} : vector<8x512xf32> to vector<8x128xf32>
    %369 = arith.negf %368 : vector<8x128xf32>
    %370 = math.exp %369 : vector<8x128xf32>
    %cst_75 = arith.constant 1.000000e+00 : f32
    %371 = vector.broadcast %cst_75 : f32 to vector<8x128xf32>
    %372 = arith.addf %371, %370 : vector<8x128xf32>
    %373 = arith.divf %371, %372 : vector<8x128xf32>
    %374 = arith.mulf %365, %316 : vector<8x128xf32>
    %375 = arith.mulf %359, %367 : vector<8x128xf32>
    %376 = arith.addf %374, %375 : vector<8x128xf32>
    %377 = math.tanh %376 : vector<8x128xf32>
    %378 = arith.mulf %373, %377 : vector<8x128xf32>
    %379 = vector.extract_strided_slice %14 {offsets = [48, 0], sizes = [8, 512], strides = [1, 1]} : vector<64x512xf32> to vector<8x512xf32>
    %380 = arith.truncf %347 : vector<8x128xf32> to vector<8x128xbf16>
    %cst_76 = arith.constant dense<0.000000e+00> : vector<8x512xf32>
    %381 = tpu.matmul %380, %3, %cst_76 {dimension_numbers = #tpu.dot_dimension_numbers<[1], [0], [0], [1], [0, 0, 1, 1], [], []>} : vector<8x128xbf16>, vector<128x512xbf16>, vector<8x512xf32> -> vector<8x512xf32>
    %382 = arith.addf %379, %381 : vector<8x512xf32>
    %383 = vector.extract_strided_slice %382 {offsets = [0, 0], sizes = [8, 128], strides = [1, 1]} : vector<8x512xf32> to vector<8x128xf32>
    %384 = arith.negf %383 : vector<8x128xf32>
    %385 = math.exp %384 : vector<8x128xf32>
    %cst_77 = arith.constant 1.000000e+00 : f32
    %386 = vector.broadcast %cst_77 : f32 to vector<8x128xf32>
    %387 = arith.addf %386, %385 : vector<8x128xf32>
    %388 = arith.divf %386, %387 : vector<8x128xf32>
    %389 = vector.extract_strided_slice %382 {offsets = [0, 128], sizes = [8, 128], strides = [1, 1]} : vector<8x512xf32> to vector<8x128xf32>
    %390 = arith.negf %389 : vector<8x128xf32>
    %391 = math.exp %390 : vector<8x128xf32>
    %cst_78 = arith.constant 1.000000e+00 : f32
    %392 = vector.broadcast %cst_78 : f32 to vector<8x128xf32>
    %393 = arith.addf %392, %391 : vector<8x128xf32>
    %394 = arith.divf %392, %393 : vector<8x128xf32>
    %395 = vector.extract_strided_slice %382 {offsets = [0, 256], sizes = [8, 128], strides = [1, 1]} : vector<8x512xf32> to vector<8x128xf32>
    %396 = math.tanh %395 : vector<8x128xf32>
    %397 = vector.extract_strided_slice %382 {offsets = [0, 384], sizes = [8, 128], strides = [1, 1]} : vector<8x512xf32> to vector<8x128xf32>
    %398 = arith.negf %397 : vector<8x128xf32>
    %399 = math.exp %398 : vector<8x128xf32>
    %cst_79 = arith.constant 1.000000e+00 : f32
    %400 = vector.broadcast %cst_79 : f32 to vector<8x128xf32>
    %401 = arith.addf %400, %399 : vector<8x128xf32>
    %402 = arith.divf %400, %401 : vector<8x128xf32>
    %403 = arith.mulf %394, %345 : vector<8x128xf32>
    %404 = arith.mulf %388, %396 : vector<8x128xf32>
    %405 = arith.addf %403, %404 : vector<8x128xf32>
    %406 = math.tanh %405 : vector<8x128xf32>
    %407 = arith.mulf %402, %406 : vector<8x128xf32>
    %408 = arith.truncf %407 : vector<8x128xf32> to vector<8x128xbf16>
    %cst_80 = arith.constant dense<0.000000e+00> : vector<8x512xf32>
    %409 = tpu.matmul %408, %4, %cst_80 {dimension_numbers = #tpu.dot_dimension_numbers<[1], [0], [0], [1], [0, 0, 1, 1], [], []>} : vector<8x128xbf16>, vector<128x512xbf16>, vector<8x512xf32> -> vector<8x512xf32>
    %410 = arith.truncf %378 : vector<8x128xf32> to vector<8x128xbf16>
    %cst_81 = arith.constant dense<0.000000e+00> : vector<8x512xf32>
    %411 = tpu.matmul %410, %5, %cst_81 {dimension_numbers = #tpu.dot_dimension_numbers<[1], [0], [0], [1], [0, 0, 1, 1], [], []>} : vector<8x128xbf16>, vector<128x512xbf16>, vector<8x512xf32> -> vector<8x512xf32>
    %412 = arith.addf %409, %411 : vector<8x512xf32>
    %413 = arith.addf %412, %8 : vector<8x512xf32>
    %414 = vector.extract_strided_slice %413 {offsets = [0, 0], sizes = [8, 128], strides = [1, 1]} : vector<8x512xf32> to vector<8x128xf32>
    %415 = arith.negf %414 : vector<8x128xf32>
    %416 = math.exp %415 : vector<8x128xf32>
    %cst_82 = arith.constant 1.000000e+00 : f32
    %417 = vector.broadcast %cst_82 : f32 to vector<8x128xf32>
    %418 = arith.addf %417, %416 : vector<8x128xf32>
    %419 = arith.divf %417, %418 : vector<8x128xf32>
    %420 = vector.extract_strided_slice %413 {offsets = [0, 128], sizes = [8, 128], strides = [1, 1]} : vector<8x512xf32> to vector<8x128xf32>
    %421 = arith.negf %420 : vector<8x128xf32>
    %422 = math.exp %421 : vector<8x128xf32>
    %cst_83 = arith.constant 1.000000e+00 : f32
    %423 = vector.broadcast %cst_83 : f32 to vector<8x128xf32>
    %424 = arith.addf %423, %422 : vector<8x128xf32>
    %425 = arith.divf %423, %424 : vector<8x128xf32>
    %426 = vector.extract_strided_slice %413 {offsets = [0, 256], sizes = [8, 128], strides = [1, 1]} : vector<8x512xf32> to vector<8x128xf32>
    %427 = math.tanh %426 : vector<8x128xf32>
    %428 = vector.extract_strided_slice %413 {offsets = [0, 384], sizes = [8, 128], strides = [1, 1]} : vector<8x512xf32> to vector<8x128xf32>
    %429 = arith.negf %428 : vector<8x128xf32>
    %430 = math.exp %429 : vector<8x128xf32>
    %cst_84 = arith.constant 1.000000e+00 : f32
    %431 = vector.broadcast %cst_84 : f32 to vector<8x128xf32>
    %432 = arith.addf %431, %430 : vector<8x128xf32>
    %433 = arith.divf %431, %432 : vector<8x128xf32>
    %434 = arith.mulf %425, %376 : vector<8x128xf32>
    %435 = arith.mulf %419, %427 : vector<8x128xf32>
    %436 = arith.addf %434, %435 : vector<8x128xf32>
    %437 = math.tanh %436 : vector<8x128xf32>
    %438 = arith.mulf %433, %437 : vector<8x128xf32>
    %439 = vector.extract_strided_slice %14 {offsets = [56, 0], sizes = [8, 512], strides = [1, 1]} : vector<64x512xf32> to vector<8x512xf32>
    %440 = arith.truncf %407 : vector<8x128xf32> to vector<8x128xbf16>
    %cst_85 = arith.constant dense<0.000000e+00> : vector<8x512xf32>
    %441 = tpu.matmul %440, %3, %cst_85 {dimension_numbers = #tpu.dot_dimension_numbers<[1], [0], [0], [1], [0, 0, 1, 1], [], []>} : vector<8x128xbf16>, vector<128x512xbf16>, vector<8x512xf32> -> vector<8x512xf32>
    %442 = arith.addf %439, %441 : vector<8x512xf32>
    %443 = vector.extract_strided_slice %442 {offsets = [0, 0], sizes = [8, 128], strides = [1, 1]} : vector<8x512xf32> to vector<8x128xf32>
    %444 = arith.negf %443 : vector<8x128xf32>
    %445 = math.exp %444 : vector<8x128xf32>
    %cst_86 = arith.constant 1.000000e+00 : f32
    %446 = vector.broadcast %cst_86 : f32 to vector<8x128xf32>
    %447 = arith.addf %446, %445 : vector<8x128xf32>
    %448 = arith.divf %446, %447 : vector<8x128xf32>
    %449 = vector.extract_strided_slice %442 {offsets = [0, 128], sizes = [8, 128], strides = [1, 1]} : vector<8x512xf32> to vector<8x128xf32>
    %450 = arith.negf %449 : vector<8x128xf32>
    %451 = math.exp %450 : vector<8x128xf32>
    %cst_87 = arith.constant 1.000000e+00 : f32
    %452 = vector.broadcast %cst_87 : f32 to vector<8x128xf32>
    %453 = arith.addf %452, %451 : vector<8x128xf32>
    %454 = arith.divf %452, %453 : vector<8x128xf32>
    %455 = vector.extract_strided_slice %442 {offsets = [0, 256], sizes = [8, 128], strides = [1, 1]} : vector<8x512xf32> to vector<8x128xf32>
    %456 = math.tanh %455 : vector<8x128xf32>
    %457 = vector.extract_strided_slice %442 {offsets = [0, 384], sizes = [8, 128], strides = [1, 1]} : vector<8x512xf32> to vector<8x128xf32>
    %458 = arith.negf %457 : vector<8x128xf32>
    %459 = math.exp %458 : vector<8x128xf32>
    %cst_88 = arith.constant 1.000000e+00 : f32
    %460 = vector.broadcast %cst_88 : f32 to vector<8x128xf32>
    %461 = arith.addf %460, %459 : vector<8x128xf32>
    %462 = arith.divf %460, %461 : vector<8x128xf32>
    %463 = arith.mulf %454, %405 : vector<8x128xf32>
    %464 = arith.mulf %448, %456 : vector<8x128xf32>
    %465 = arith.addf %463, %464 : vector<8x128xf32>
    %466 = math.tanh %465 : vector<8x128xf32>
    %467 = arith.mulf %462, %466 : vector<8x128xf32>
    %468 = arith.truncf %467 : vector<8x128xf32> to vector<8x128xbf16>
    %cst_89 = arith.constant dense<0.000000e+00> : vector<8x512xf32>
    %469 = tpu.matmul %468, %4, %cst_89 {dimension_numbers = #tpu.dot_dimension_numbers<[1], [0], [0], [1], [0, 0, 1, 1], [], []>} : vector<8x128xbf16>, vector<128x512xbf16>, vector<8x512xf32> -> vector<8x512xf32>
    %470 = arith.truncf %438 : vector<8x128xf32> to vector<8x128xbf16>
    %cst_90 = arith.constant dense<0.000000e+00> : vector<8x512xf32>
    %471 = tpu.matmul %470, %5, %cst_90 {dimension_numbers = #tpu.dot_dimension_numbers<[1], [0], [0], [1], [0, 0, 1, 1], [], []>} : vector<8x128xbf16>, vector<128x512xbf16>, vector<8x512xf32> -> vector<8x512xf32>
    %472 = arith.addf %469, %471 : vector<8x512xf32>
    %473 = arith.addf %472, %8 : vector<8x512xf32>
    %474 = vector.extract_strided_slice %473 {offsets = [0, 0], sizes = [8, 128], strides = [1, 1]} : vector<8x512xf32> to vector<8x128xf32>
    %475 = arith.negf %474 : vector<8x128xf32>
    %476 = math.exp %475 : vector<8x128xf32>
    %cst_91 = arith.constant 1.000000e+00 : f32
    %477 = vector.broadcast %cst_91 : f32 to vector<8x128xf32>
    %478 = arith.addf %477, %476 : vector<8x128xf32>
    %479 = arith.divf %477, %478 : vector<8x128xf32>
    %480 = vector.extract_strided_slice %473 {offsets = [0, 128], sizes = [8, 128], strides = [1, 1]} : vector<8x512xf32> to vector<8x128xf32>
    %481 = arith.negf %480 : vector<8x128xf32>
    %482 = math.exp %481 : vector<8x128xf32>
    %cst_92 = arith.constant 1.000000e+00 : f32
    %483 = vector.broadcast %cst_92 : f32 to vector<8x128xf32>
    %484 = arith.addf %483, %482 : vector<8x128xf32>
    %485 = arith.divf %483, %484 : vector<8x128xf32>
    %486 = vector.extract_strided_slice %473 {offsets = [0, 256], sizes = [8, 128], strides = [1, 1]} : vector<8x512xf32> to vector<8x128xf32>
    %487 = math.tanh %486 : vector<8x128xf32>
    %488 = vector.extract_strided_slice %473 {offsets = [0, 384], sizes = [8, 128], strides = [1, 1]} : vector<8x512xf32> to vector<8x128xf32>
    %489 = arith.negf %488 : vector<8x128xf32>
    %490 = math.exp %489 : vector<8x128xf32>
    %cst_93 = arith.constant 1.000000e+00 : f32
    %491 = vector.broadcast %cst_93 : f32 to vector<8x128xf32>
    %492 = arith.addf %491, %490 : vector<8x128xf32>
    %493 = arith.divf %491, %492 : vector<8x128xf32>
    %494 = arith.mulf %485, %436 : vector<8x128xf32>
    %495 = arith.mulf %479, %487 : vector<8x128xf32>
    %496 = arith.addf %494, %495 : vector<8x128xf32>
    %497 = math.tanh %496 : vector<8x128xf32>
    %498 = arith.mulf %493, %497 : vector<8x128xf32>
    %c0_94 = arith.constant 0 : index
    %c0_95 = arith.constant 0 : index
    %499 = vector.load %arg11[%c0_94, %c0_95] : memref<8x128xf32, #tpu.memory_space<vmem>>, vector<8x128xf32>
    tpu.vector_store %arg11[%c0_94, %c0_95], %467 {strides = array<i32>} : memref<8x128xf32, #tpu.memory_space<vmem>>, vector<8x128xf32>,
    %c0_96 = arith.constant 0 : index
    %c0_97 = arith.constant 0 : index
    %500 = vector.load %arg13[%c0_96, %c0_97] : memref<8x128xf32, #tpu.memory_space<vmem>>, vector<8x128xf32>
    tpu.vector_store %arg13[%c0_96, %c0_97], %465 {strides = array<i32>} : memref<8x128xf32, #tpu.memory_space<vmem>>, vector<8x128xf32>,
    %c0_98 = arith.constant 0 : index
    %c0_99 = arith.constant 0 : index
    %501 = vector.load %arg12[%c0_98, %c0_99] : memref<8x128xf32, #tpu.memory_space<vmem>>, vector<8x128xf32>
    tpu.vector_store %arg12[%c0_98, %c0_99], %498 {strides = array<i32>} : memref<8x128xf32, #tpu.memory_space<vmem>>, vector<8x128xf32>,
    %c0_100 = arith.constant 0 : index
    %c0_101 = arith.constant 0 : index
    %502 = vector.load %arg14[%c0_100, %c0_101] : memref<8x128xf32, #tpu.memory_space<vmem>>, vector<8x128xf32>
    tpu.vector_store %arg14[%c0_100, %c0_101], %496 {strides = array<i32>} : memref<8x128xf32, #tpu.memory_space<vmem>>, vector<8x128xf32>,
    %c0_i32_102 = arith.constant 0 : i32
    %503 = arith.cmpi eq, %arg0, %c0_i32_102 : i32
    %504 = arith.extui %503 : i1 to i32
    %c0_i32_103 = arith.constant 0 : i32
    %505 = arith.cmpi ne, %504, %c0_i32_103 : i32
    scf.if %505 {
      %506 = arith.truncf %498 : vector<8x128xf32> to vector<8x128xbf16>
      %c0_104 = arith.constant 0 : index
      %c0_105 = arith.constant 0 : index
      %507 = vector.load %arg8[%c0_104, %c0_105] : memref<128x128xbf16, #tpu.memory_space<vmem>>, vector<128x128xbf16>
      %cst_106 = arith.constant dense<0.000000e+00> : vector<8x128xf32>
      %508 = tpu.matmul %506, %507, %cst_106 {dimension_numbers = #tpu.dot_dimension_numbers<[1], [0], [0], [1], [0, 0, 1, 1], [], []>} : vector<8x128xbf16>, vector<128x128xbf16>, vector<8x128xf32> -> vector<8x128xf32>
      %c0_107 = arith.constant 0 : index
      %c0_108 = arith.constant 0 : index
      %509 = vector.load %arg9[%c0_107, %c0_108] : memref<1x128xf32, #tpu.memory_space<vmem>>, vector<1x128xf32>
      %510 = vector.broadcast %509 : vector<1x128xf32> to vector<8x128xf32>
      %511 = arith.addf %508, %510 : vector<8x128xf32>
      %c0_109 = arith.constant 0 : index
      %c0_110 = arith.constant 0 : index
      %512 = vector.load %arg10[%c0_109, %c0_110] : memref<8x128xf32, #tpu.memory_space<vmem>>, vector<8x128xf32>
      tpu.vector_store %arg10[%c0_109, %c0_110], %511 {strides = array<i32>} : memref<8x128xf32, #tpu.memory_space<vmem>>, vector<8x128xf32>,
    } else {
    }
    return
  }
  func.func @transform_0(%arg0: i32) -> (i32, i32) {
    %c0_i32 = arith.constant 0 : i32
    %c0_i32_0 = arith.constant 0 : i32
    return %arg0, %c0_i32 : i32, i32
  }
  func.func @transform_1(%arg0: i32) -> (i32, i32) {
    %c0_i32 = arith.constant 0 : i32
    %c0_i32_0 = arith.constant 0 : i32
    %c0_i32_1 = arith.constant 0 : i32
    return %c0_i32, %c0_i32_0 : i32, i32
  }
  func.func @transform_2(%arg0: i32) -> (i32, i32) {
    %c0_i32 = arith.constant 0 : i32
    %c0_i32_0 = arith.constant 0 : i32
    %c0_i32_1 = arith.constant 0 : i32
    return %c0_i32, %c0_i32_0 : i32, i32
  }
  func.func @transform_3(%arg0: i32) -> (i32, i32) {
    %c0_i32 = arith.constant 0 : i32
    %c0_i32_0 = arith.constant 0 : i32
    %c0_i32_1 = arith.constant 0 : i32
    return %c0_i32, %c0_i32_0 : i32, i32
  }
  func.func @transform_4(%arg0: i32) -> (i32, i32) {
    %c0_i32 = arith.constant 0 : i32
    %c0_i32_0 = arith.constant 0 : i32
    %c0_i32_1 = arith.constant 0 : i32
    return %c0_i32, %c0_i32_0 : i32, i32
  }
  func.func @transform_5(%arg0: i32) -> (i32, i32) {
    %c0_i32 = arith.constant 0 : i32
    %c0_i32_0 = arith.constant 0 : i32
    %c0_i32_1 = arith.constant 0 : i32
    return %c0_i32, %c0_i32_0 : i32, i32
  }
  func.func @transform_6(%arg0: i32) -> (i32, i32) {
    %c0_i32 = arith.constant 0 : i32
    %c0_i32_0 = arith.constant 0 : i32
    %c0_i32_1 = arith.constant 0 : i32
    return %c0_i32, %c0_i32_0 : i32, i32
  }
  func.func @transform_7(%arg0: i32) -> (i32, i32) {
    %c0_i32 = arith.constant 0 : i32
    %c0_i32_0 = arith.constant 0 : i32
    %c0_i32_1 = arith.constant 0 : i32
    return %c0_i32, %c0_i32_0 : i32, i32
  }
  func.func @transform_8(%arg0: i32) -> (i32, i32) {
    %c0_i32 = arith.constant 0 : i32
    %c0_i32_0 = arith.constant 0 : i32
    %c0_i32_1 = arith.constant 0 : i32
    return %c0_i32, %c0_i32_0 : i32, i32
  }
  func.func @transform_9(%arg0: i32) -> (i32, i32) {
    %c0_i32 = arith.constant 0 : i32
    %c0_i32_0 = arith.constant 0 : i32
    %c0_i32_1 = arith.constant 0 : i32
    return %c0_i32, %c0_i32_0 : i32, i32
  }
}

</mosaic_0001>

<bundles_post_ra>
// kernel: rnn_model_forward.1
= control target key start
LH: loop header
LB: loop body
LE: loop exit
PB: predicated region body
PF: predicated region fallthrough
CT: control target
= control target key end

     0   :  { %14 = vsyncpa [#allocation7], 0  ;;  %s5970_s0 = inlined_call_operand.vmem [shape: bf16[64,16], index: 0, kind: input, shape index: {}]   ;;  %s5971_s1 = inlined_call_operand.vmem [shape: bf16[16,512], index: 1, kind: input, shape index: {}]   ;;  %s5972_s2 = inlined_call_operand.vmem [shape: f32[1,512], index: 2, kind: input, shape index: {}]   ;;  %s5973_s3 = inlined_call_operand.hbm [shape: bf16[128,512], index: 3, kind: input, shape index: {}]   ;;  %s5974_s4 = inlined_call_operand.hbm [shape: bf16[128,512], index: 4, kind: input, shape index: {}]   ;;  %s5975_s5 = inlined_call_operand.hbm [shape: bf16[128,512], index: 5, kind: input, shape index: {}]   ;;  %s5976_s6 = inlined_call_operand.vmem [shape: f32[1,512], index: 6, kind: input, shape index: {}]   ;;  %s5977_s7 = inlined_call_operand.vmem [shape: bf16[128,128], index: 7, kind: input, shape index: {}]   ;;  %s5978_s8 = inlined_call_operand.vmem [shape: f32[1,128], index: 8, kind: input, shape index: {}]   ;;  %s5979_s9 = inlined_call_operand.vmem [shape: f32[8,128], index: 9, kind: output, shape index: {}]  }
   0x1   :  { %15 = vsyncpa [#allocation9], 0  ;;  %s39_s11 = sshll.u32 %s5974_s4, 4  ;;  %s4266_s12 = smov [#allocation8]   ;;  %s40_s11 = int_to_ptr.hbm [resolvable:$true] %s39_s11 }
   0x2   :  { %s41_s13 = sshll.u32 %s4266_s12, 4  ;;  %s26_s16 = sshll.u32 %s5973_s3, 4  ;;  %s42_s13 = int_to_ptr.vmem [resolvable:$true] %s41_s13  ;;  %s27_s16 = int_to_ptr.hbm [resolvable:$true] %s26_s16 }
   0x3   :  { %s4267_s17 = smov 256   ;;  %s4268_s18 = smov 16  }
   0x4   :  { %47 = dma.hbm_to_vmem [thread:$0]  %s40_s11, 4096, %s42_s13, [#allocation9], %s4267_s17, %s4267_s17, %s4268_s18  }
   0x5   :  { %s4269_s19 = smov [#allocation6]   ;;  %s52_s23 = sshll.u32 %s5975_s5, 4  ;;  %s53_s23 = int_to_ptr.hbm [resolvable:$true] %s52_s23 }
   0x6   :  { %s28_s20 = sshll.u32 %s4269_s19, 4  ;;  %s4270_s4 = smov [#allocation10]   ;;  %s29_s20 = int_to_ptr.vmem [resolvable:$true] %s28_s20 }
   0x7   :  { %34 = dma.hbm_to_vmem [thread:$0]  %s27_s16, 4096, %s29_s20, [#allocation7], %s4267_s17, %s4267_s17, %s4268_s18  }
   0x8   :  { %s54_s24 = sshll.u32 %s4270_s4, 4  ;;  %s55_s24 = int_to_ptr.vmem [resolvable:$true] %s54_s24 }
   0x9   :  { %60 = dma.hbm_to_vmem [thread:$0]  %s53_s23, 4096, %s55_s24, [#allocation9], %s4267_s17, %s4267_s17, %s4268_s18  }
   0xa   :  { %4262 = dma.done.wait [#allocation7], 4096  }
   0xb   :  { %4263 = vsyncadd [#allocation7], 4294963200 }
   0xc   :  { %4264 = dma.done.wait [#allocation9], 8192  }
   0xd   :  { %4265 = vsyncadd [#allocation9], 4294959104  ;;  %v3320_v0 = vld [vmem:[%s5971_s1] sm:$0xf]  ;;  %v3916_v1 = vld [vmem:[%s5971_s1 + $0xc] sm:$0xf0] }
   0xe   :  { %v3328_v2 = vld [vmem:[%s5971_s1 + $0x8] sm:$0xf]  ;;  %v3321_v3 = vor.u32 %v3916_v1, %v3320_v0  ;;  %v3917_v4 = vld [vmem:[%s5971_s1 + $0x14] sm:$0xf0]  ;;  %v3915_v5 = vld [vmem:[%s5971_s1 + $0xc] sm:$0xf] }
   0xf   :  { %v3330_v6 = vld [vmem:[%s5971_s1 + $0x18] sm:$0xf0]  ;;  %v3329_v7 = vor.u32 %v3917_v4, %v3328_v2  ;;  %v4352_v9 = vld [vmem:[%s5970_s0] sm:$0xff]  ;;  %vm256_vm0 = vcmask 130048   ;;  %v3322_v12 = vld [vmem:[%s5971_s1 + $0x10] sm:$0xf0] }
  0x10   :  { %v3333_v8 = vor.u32 %v3915_v5, %v3330_v6  ;;  %v4357_v10 = vld [vmem:[%s5970_s0 + $0x18] sm:$0xff]  ;;  %v3914_v11 = vld [vmem:[%s5971_s1 + $0x4] sm:$0xf]  ;;  %276 = vmatpush.bf16.msra.mxu0 %v3321_v3  ;;  %3926 = vmatpush.bf16.msra.mxu1 %v3321_v3  ;;  %v3466_v15 = vld [vmem:[#allocation6 + $0xf0] sm:$0xf0] }
  0x11   :  { %v3842_v13 = vld [vmem:[#allocation6 + $0xe4] sm:$0xf]  ;;  %334 = vmatpush.bf16.msra.mxu2 %v3329_v7  ;;  %v3325_v14 = vor.u32 %v3914_v11, %v3322_v12  ;;  %v3464_v16 = vld [vmem:[#allocation6 + $0xe0] sm:$0xf]  ;;  %v3844_v17 = vld [vmem:[#allocation6 + $0xec] sm:$0xf0] }
  0x12   :  { %363 = vmatpush.bf16.msra.mxu3 %v3333_v8  ;;  %v4365_v18 = vor.u32 %v3842_v13, %v3466_v15  ;;  %v4367_v19 = vor.u32 %v3844_v17, %v3464_v16  ;;  %v3448_v20 = vld [vmem:[#allocation6 + $0xc0] sm:$0xf]  ;;  %v3840_v21 = vld [vmem:[#allocation6 + $0xcc] sm:$0xf0]  ;;  %v3843_v22 = vld [vmem:[#allocation6 + $0xec] sm:$0xf] }
  0x13   :  { %3334 = vmatmul.msk.bf16.vlgmr.msra.gmra.mxu0 %vm256_vm0, %v4352_v9  ;;  %3337 = vmatmul.msk.bf16.vlgmr.msra.gmra.mxu1 %vm256_vm0, %v4357_v10  ;;  %v3474_v23 = vld [vmem:[#allocation6 + $0xf8] sm:$0xf0]  ;;  %v3838_v24 = vld [vmem:[#allocation6 + $0xc4] sm:$0xf]  ;;  %v3450_v25 = vld [vmem:[#allocation6 + $0xd0] sm:$0xf0]  ;;  %v4383_v30 = vor.u32 %v3840_v21, %v3448_v20 }
  0x14   :  { %305 = vmatpush.bf16.msrb.mxu1 %v3325_v14  ;;  %3342 = vmatmul.msk.bf16.vlgmr.msra.gmra.mxu2 %vm256_vm0, %v4352_v9  ;;  %v4375_v26 = vor.u32 %v3843_v22, %v3474_v23  ;;  %v4380_v27 = vor.u32 %v3838_v24, %v3450_v25  ;;  %v3839_v28 = vld [vmem:[#allocation6 + $0xcc] sm:$0xf]  ;;  %v3458_v29 = vld [vmem:[#allocation6 + $0xd8] sm:$0xf0]  ;;  %v3432_v31 = vld [vmem:[#allocation6 + $0xa0] sm:$0xf] }
  0x15   :  { %3346 = vmatmul.msk.bf16.vlgmr.msra.gmra.mxu3 %vm256_vm0, %v4352_v9  ;;  %550 = vmatpush.bf16.msrb.mxu0 %v4367_v19  ;;  %v4386_v32 = vor.u32 %v3839_v28, %v3458_v29  ;;  %v3472_v33 = vld [vmem:[#allocation6 + $0xe8] sm:$0xf]  ;;  %v3845_v34 = vld [vmem:[#allocation6 + $0xf4] sm:$0xf0]  ;;  %v3836_v35 = vld [vmem:[#allocation6 + $0xac] sm:$0xf0] }
  0x16   :  { %589 = vmatpush.bf16.msrb.mxu3 %v4375_v26  ;;  %v4388_v36 = vor.u32 %v3845_v34, %v3472_v33  ;;  %v3834_v37 = vld [vmem:[#allocation6 + $0xa4] sm:$0xf]  ;;  %v3434_v38 = vld [vmem:[#allocation6 + $0xb0] sm:$0xf0]  ;;  %v3456_v40 = vld [vmem:[#allocation6 + $0xc8] sm:$0xf]  ;;  %v4395_v43 = vor.u32 %v3836_v35, %v3432_v31 }
  0x17   :  { %v4392_v39 = vor.u32 %v3834_v37, %v3434_v38  ;;  %v3841_v41 = vld [vmem:[#allocation6 + $0xd4] sm:$0xf0]  ;;  %v3835_v42 = vld [vmem:[#allocation6 + $0xac] sm:$0xf]  ;;  %v3442_v45 = vld [vmem:[#allocation6 + $0xb8] sm:$0xf0] }
  0x18   :  { %563 = vmatpush.bf16.msra.mxu1 %v4365_v18  ;;  %576 = vmatpush.bf16.msrb.mxu2 %v4388_v36  ;;  %v4398_v44 = vor.u32 %v3841_v41, %v3456_v40  ;;  %v3830_v46 = vld [vmem:[#allocation6 + $0x84] sm:$0xf]  ;;  %v3418_v47 = vld [vmem:[#allocation6 + $0x90] sm:$0xf0]  ;;  %v3416_v48 = vld [vmem:[#allocation6 + $0x80] sm:$0xf]  ;;  %v4400_v50 = vor.u32 %v3835_v42, %v3442_v45 }
  0x19   :  { %551 = vmatpush.bf16.msrb.mxu0 %v4383_v30  ;;  %v3832_v49 = vld [vmem:[#allocation6 + $0x8c] sm:$0xf0]  ;;  %v3440_v51 = vld [vmem:[#allocation6 + $0xa8] sm:$0xf]  ;;  %v3837_v52 = vld [vmem:[#allocation6 + $0xb4] sm:$0xf0]  ;;  %v4404_v53 = vor.u32 %v3830_v46, %v3418_v47 }
  0x1a   :  { %590 = vmatpush.bf16.msrb.mxu3 %v4386_v32  ;;  %v4406_v54 = vor.u32 %v3837_v52, %v3440_v51  ;;  %v3424_v55 = vld [vmem:[#allocation6 + $0x88] sm:$0xf]  ;;  %v3831_v56 = vld [vmem:[#allocation6 + $0x8c] sm:$0xf]  ;;  %v4409_v57 = vor.u32 %v3832_v49, %v3416_v48  ;;  %v3833_v58 = vld [vmem:[#allocation6 + $0x94] sm:$0xf0] }
  0x1b   :  { %v3426_v59 = vld [vmem:[#allocation6 + $0x98] sm:$0xf0]  ;;  %v4415_v60 = vld [vmem:[%s5970_s0 + $0x8] sm:$0xff]  ;;  %v3400_v61 = vld [vmem:[#allocation6 + $0x60] sm:$0xf]  ;;  %v4421_v0 = vor.u32 %v3833_v58, %v3424_v55 }
  0x1c   :  { %564 = vmatpush.bf16.msra.mxu1 %v4380_v27  ;;  %577 = vmatpush.bf16.msrb.mxu2 %v4398_v44  ;;  %v3828_v62 = vld [vmem:[#allocation6 + $0x6c] sm:$0xf0]  ;;  %v4417_v63 = vor.u32 %v3831_v56, %v3426_v59  ;;  %v3384_v2 = vld [vmem:[#allocation6 + $0x40] sm:$0xf]  ;;  %v3408_v4 = vld [vmem:[#allocation6 + $0x68] sm:$0xf] }
  0x1d   :  { %552 = vmatpush.bf16.msrb.mxu0 %v4395_v43  ;;  %v4424_v1 = vor.u32 %v3828_v62, %v3400_v61  ;;  %v3824_v3 = vld [vmem:[#allocation6 + $0x4c] sm:$0xf0]  ;;  %v3829_v5 = vld [vmem:[#allocation6 + $0x74] sm:$0xf0]  ;;  %v3827_v6 = vld [vmem:[#allocation6 + $0x6c] sm:$0xf] }
  0x1e   :  { %591 = vmatpush.bf16.msrb.mxu3 %v4400_v50  ;;  %v3410_v7 = vld [vmem:[#allocation6 + $0x78] sm:$0xf0]  ;;  %v3368_v8 = vld [vmem:[#allocation6 + $0x20] sm:$0xf]  ;;  %v3826_v11 = vld [vmem:[#allocation6 + $0x64] sm:$0xf]  ;;  %v4436_v13 = vor.u32 %v3829_v5, %v3408_v4  ;;  %v4441_v15 = vor.u32 %v3824_v3, %v3384_v2 }
  0x1f   :  { %v3402_v12 = vld [vmem:[#allocation6 + $0x70] sm:$0xf0]  ;;  %v4438_v14 = vor.u32 %v3827_v6, %v3410_v7  ;;  %v3825_v17 = vld [vmem:[#allocation6 + $0x54] sm:$0xf0]  ;;  %v3823_v20 = vld [vmem:[#allocation6 + $0x4c] sm:$0xf] }
  0x20   :  { %565 = vmatpush.bf16.msra.mxu1 %v4392_v39  ;;  %578 = vmatpush.bf16.msrb.mxu2 %v4406_v54  ;;  %v4443_v16 = vor.u32 %v3826_v11, %v3402_v12  ;;  %v3394_v21 = vld [vmem:[#allocation6 + $0x58] sm:$0xf0]  ;;  %v3820_v22 = vld [vmem:[#allocation6 + $0x2c] sm:$0xf0]  ;;  %v3822_v24 = vld [vmem:[#allocation6 + $0x44] sm:$0xf] }
  0x21   :  { %553 = vmatpush.bf16.msrb.mxu0 %v4409_v57  ;;  %v4446_v23 = vor.u32 %v3823_v20, %v3394_v21  ;;  %v3386_v25 = vld [vmem:[#allocation6 + $0x50] sm:$0xf0]  ;;  %v3819_v29 = vld [vmem:[#allocation6 + $0x2c] sm:$0xf]  ;;  %v3378_v31 = vld [vmem:[#allocation6 + $0x38] sm:$0xf0]  ;;  %v4455_v34 = vor.u32 %v3820_v22, %v3368_v8 }
  0x22   :  { %592 = vmatpush.bf16.msrb.mxu3 %v4417_v63  ;;  %v4449_v28 = vor.u32 %v3822_v24, %v3386_v25  ;;  %v3376_v35 = vld [vmem:[#allocation6 + $0x28] sm:$0xf]  ;;  %v3821_v37 = vld [vmem:[#allocation6 + $0x34] sm:$0xf0]  ;;  %v3352_v38 = vld [vmem:[#allocation6] sm:$0xf]  ;;  %v4458_v41 = vor.u32 %v3819_v29, %v3378_v31 }
  0x23   :  { %3335 = vmatmul.msk.bf16.gmra.mxu0 %vm256_vm0, %v4415_v60  ;;  %3338 = vmatmul.msk.bf16.vlgmr.msrb.gmra.mxu1 %vm256_vm0, %v4352_v9  ;;  %v3392_v9 = vld [vmem:[#allocation6 + $0x48] sm:$0xf]  ;;  %v3816_v40 = vld [vmem:[#allocation6 + $0xc] sm:$0xf0]  ;;  %v4462_v42 = vor.u32 %v3821_v37, %v3376_v35  ;;  %v3815_v45 = vld [vmem:[#allocation6 + $0xc] sm:$0xf] }
  0x24   :  { %566 = vmatpush.bf16.msra.mxu1 %v4404_v53  ;;  %3343 = vmatmul.msk.bf16.gmra.mxu2 %vm256_vm0, %v4415_v60  ;;  %v4452_v33 = vor.u32 %v3825_v17, %v3392_v9  ;;  %v3362_v46 = vld [vmem:[#allocation6 + $0x18] sm:$0xf0]  ;;  %v4465_v47 = vor.u32 %v3816_v40, %v3352_v38  ;;  %v3360_v48 = vld [vmem:[#allocation6 + $0x8] sm:$0xf]  ;;  %v3817_v49 = vld [vmem:[#allocation6 + $0x14] sm:$0xf0] }
  0x25   :  { %3347 = vmatmul.msk.bf16.gmra.mxu3 %vm256_vm0, %v4415_v60  ;;  %579 = vmatpush.bf16.msrb.mxu2 %v4421_v0  ;;  %v3912_v51 = vld [vmem:[%s5970_s0 + $0x10] sm:$0xff]  ;;  %v4471_v52 = vor.u32 %v3815_v45, %v3362_v46  ;;  %v4474_v55 = vor.u32 %v3817_v49, %v3360_v48  ;;  %v3818_v56 = vld [vmem:[#allocation6 + $0x24] sm:$0xf]  ;;  %v4504_v3 = vld [vmem:[%s5972_s2] sm:$0xf] }
  0x26   :  { %554 = vmatpush.bf16.msrb.mxu0 %v4424_v1  ;;  %593 = vmatpush.bf16.msrb.mxu3 %v4438_v14  ;;  %v3370_v58 = vld [vmem:[#allocation6 + $0x30] sm:$0xf0]  ;;  %v3814_v61 = vld [vmem:[#allocation6 + $0x4] sm:$0xf]  ;;  %v4507_v4 = vperm.slane %v4504_v3, 0  ;;  %v4534_v40 = vperm.slane %v4504_v3, 2 }
  0x27   :  { %v4482_v59 = vor.u32 %v3818_v56, %v3370_v58  ;;  %v3354_v62 = vld [vmem:[#allocation6 + $0x10] sm:$0xf0]  ;;  %v3595_v24 = vld [vmem:[#allocation10 + $0xe0] sm:$0xf]  ;;  %v3908_v25 = vld [vmem:[#allocation10 + $0xec] sm:$0xf0] }
  0x28   :  { %567 = vmatpush.bf16.msra.mxu1 %v4443_v16  ;;  %v4487_v2 = vor.u32 %v3814_v61, %v3354_v62  ;;  %6121 = vst [vmem:[#allocation13_spill] sm:$0xff] %v4507_v4  ;;  %v3906_v29 = vld [vmem:[#allocation10 + $0xe4] sm:$0xf]  ;;  %v4531_v31 = vor.u32 %v3908_v25, %v3595_v24  ;;  %v3597_v35 = vld [vmem:[#allocation10 + $0xf0] sm:$0xf0] }
  0x29   :  { %580 = vmatpush.bf16.msrb.mxu2 %v4436_v13  ;;  %v3603_v37 = vld [vmem:[#allocation10 + $0xe8] sm:$0xf]  ;;  %v3909_v38 = vld [vmem:[#allocation10 + $0xf4] sm:$0xf0]  ;;  %6128 = vst [vmem:[#allocation20_spill] sm:$0xff] %v4534_v40  ;;  %v4536_v45 = vor.u32 %v3906_v29, %v3597_v35 }
  0x2a   :  { %555 = vmatpush.bf16.msrb.mxu0 %v4441_v15  ;;  %594 = vmatpush.bf16.msrb.mxu3 %v4446_v23  ;;  %v4538_v46 = vor.u32 %v3909_v38, %v3603_v37  ;;  %v3907_v48 = vld [vmem:[#allocation10 + $0xec] sm:$0xf]  ;;  %v3605_v49 = vld [vmem:[#allocation10 + $0xf8] sm:$0xf0]  ;;  %v3904_v24 = vld [vmem:[#allocation10 + $0xcc] sm:$0xf0] }
  0x2b   :  { %v4544_v58 = vor.u32 %v3907_v48, %v3605_v49  ;;  %v3902_v25 = vld [vmem:[#allocation10 + $0xc4] sm:$0xf]  ;;  %v3581_v38 = vld [vmem:[#allocation10 + $0xd0] sm:$0xf0]  ;;  %v3587_v48 = vld [vmem:[#allocation10 + $0xc8] sm:$0xf] }
  0x2c   :  { %568 = vmatpush.bf16.msra.mxu1 %v4449_v28  ;;  %v3905_v49 = vld [vmem:[#allocation10 + $0xd4] sm:$0xf0] }
  0x2d   :  { %581 = vmatpush.bf16.msrb.mxu2 %v4452_v33  ;;  %6130 = vst [vmem:[#allocation22_spill] sm:$0xff] %v4544_v58 }
  0x2e   :  { %556 = vmatpush.bf16.msrb.mxu0 %v4455_v34  ;;  %595 = vmatpush.bf16.msrb.mxu3 %v4458_v41 }
  0x30   :  { %569 = vmatpush.bf16.msra.mxu1 %v4482_v59 }
  0x31   :  { %582 = vmatpush.bf16.msrb.mxu2 %v4462_v42 }
  0x32   :  { %557 = vmatpush.bf16.msrb.mxu0 %v4465_v47  ;;  %596 = vmatpush.bf16.msrb.mxu3 %v4471_v52 }
  0x33   :  { %3336 = vmatmul.msk.bf16.gmra.mxu0 %vm256_vm0, %v3912_v51  ;;  %3339 = vmatmul.msk.bf16.gmra.mxu1 %vm256_vm0, %v4415_v60  ;;  %v5980_v60 = vmov 0.0|0.0  }
  0x34   :  { %3344 = vmatmul.msk.bf16.gmra.mxu2 %vm256_vm0, %v3912_v51  ;;  %570 = vmatpush.bf16.msra.mxu1 %v4487_v2 }
  0x35   :  { %3348 = vmatmul.msk.bf16.gmra.mxu3 %vm256_vm0, %v3912_v51  ;;  %583 = vmatpush.bf16.msrb.mxu2 %v4474_v55 }
  0x36   :  { %831 = vmatpush.bf16.msra.mxu0 %v4531_v31  ;;  %870 = vmatpush.bf16.msra.mxu3 %v4544_v58 }
  0x38   :  { %844 = vmatpush.bf16.msrb.mxu1 %v4536_v45 }
  0x39   :  { %857 = vmatpush.bf16.msra.mxu2 %v4538_v46 }
  0x43   :  { %3340 = vmatmul.msk.bf16.gmra.mxu1 %vm256_vm0, %v3912_v51  ;;  %558 = vmatmul.bf16.vlgmr.msrb.gmra.mxu0 %v5980_v60  ;;  %v4541_v51 = vperm.slane %v4504_v3, 3 }
  0x44   :  { %3345 = vmatmul.msk.bf16.gmra.mxu2 %vm256_vm0, %v4357_v10 }
  0x45   :  { %3349 = vmatmul.msk.bf16.gmra.mxu3 %vm256_vm0, %v4357_v10  ;;  %6129 = vst [vmem:[#allocation21_spill] sm:$0xff] %v4541_v51 }
  0x53   :  { %3341 = vmatmul.msk.bf16.gmra.mxu1 %vm256_vm0, %v4357_v10 }
  0x54   :  { %584 = vmatmul.bf16.vlgmr.msrb.gmra.mxu2 %v5980_v60 }
  0x55   :  { %597 = vmatmul.bf16.vlgmr.msrb.gmra.mxu3 %v5980_v60 }
  0x63   :  { %571 = vmatmul.bf16.vlgmr.msra.gmra.mxu1 %v5980_v60  ;;  %v4563_v60 = vor.u32 %v3905_v49, %v3587_v48  ;;  %v3901_v48 = vld [vmem:[#allocation10 + $0xb4] sm:$0xf0] }
  0x65   :  { %6137 = vst [vmem:[#allocation29_spill] sm:$0xff] %v4563_v60  ;;  %858 = vmatpush.bf16.msra.mxu2 %v4563_v60  ;;  %v3855_v60 = vld [vmem:[#allocation8 + $0x4c] sm:$0xf] }
  0x90   :  { %v4509_v5 = vpop.f32.mrf.mxu0  ;;  %v293_v6 = vpop.f32.mrf.mxu1 }
  0x91   :  { %v4512_v7 = vadd.f32 %v293_v6, %v4507_v4 }
  0x93   :  { %6122 = vst [vmem:[#allocation14_spill] sm:$0xff] %v4512_v7  ;;  %v3589_v7 = vld [vmem:[#allocation10 + $0xd8] sm:$0xf0] }
  0x97   :  { %v4514_v10 = vpop.f32.mrf.mxu2 }
  0x98   :  { %v4516_v8 = vpop.f32.mrf.mxu3  ;;  %v4518_v11 = vpop.f32.mrf.mxu0 }
  0x99   :  { %6123 = vst [vmem:[#allocation15_spill] sm:$0xff] %v4518_v11  ;;  %v4520_v12 = vpop.f32.mrf.mxu1 }
  0x9a   :  { %6124 = vst [vmem:[#allocation16_spill] sm:$0xff] %v4520_v12  ;;  %v3903_v12 = vld [vmem:[#allocation10 + $0xcc] sm:$0xf] }
  0x9f   :  { %v4522_v9 = vpop.f32.mrf.mxu2 }
  0xa0   :  { %6125 = vst [vmem:[#allocation17_spill] sm:$0xff] %v4522_v9  ;;  %v4524_v17 = vpop.f32.mrf.mxu3  ;;  %v283_v20 = vpop.f32.mrf.mxu0 }
  0xa1   :  { %6126 = vst [vmem:[#allocation18_spill] sm:$0xff] %v4524_v17  ;;  %v4527_v21 = vadd.f32 %v283_v20, %v4507_v4  ;;  %v4529_v22 = vpop.f32.mrf.mxu1  ;;  %v3579_v20 = vld [vmem:[#allocation10 + $0xc0] sm:$0xf] }
  0xa2   :  { %v4559_v37 = vor.u32 %v3904_v24, %v3579_v20  ;;  %v3900_v20 = vld [vmem:[#allocation10 + $0xac] sm:$0xf0]  ;;  %v3898_v24 = vld [vmem:[#allocation10 + $0xa4] sm:$0xf] }
  0xa3   :  { %6127 = vst [vmem:[#allocation19_spill] sm:$0xff] %v4527_v21  ;;  %v4578_v21 = vperm.slane %v4504_v3, 1 }
  0xa4   :  { %6135 = vst [vmem:[#allocation27_spill] sm:$0xff] %v4559_v37  ;;  %832 = vmatpush.bf16.msra.mxu0 %v4559_v37 }
  0xa5   :  { %6142 = vst [vmem:[#allocation34_spill] sm:$0xff] %v4578_v21 }
  0xa7   :  { %v341_v56 = vpop.f32.mrf.mxu2 }
  0xa8   :  { %v4547_v61 = vadd.f32 %v341_v56, %v4534_v40  ;;  %v370_v62 = vpop.f32.mrf.mxu3  ;;  %v4549_v6 = vpop.f32.mrf.mxu0  ;;  %v4561_v56 = vor.u32 %v3902_v25, %v3581_v38  ;;  %v3565_v25 = vld [vmem:[#allocation10 + $0xb0] sm:$0xf0]  ;;  %v3571_v38 = vld [vmem:[#allocation10 + $0xa8] sm:$0xf] }
  0xa9   :  { %6132 = vst [vmem:[#allocation24_spill] sm:$0xff] %v4549_v6  ;;  %v4554_v29 = vadd.f32 %v370_v62, %v4541_v51  ;;  %v4556_v35 = vpop.f32.mrf.mxu1  ;;  %v4566_v6 = vor.u32 %v3903_v12, %v3589_v7  ;;  %v3563_v62 = vld [vmem:[#allocation10 + $0xa0] sm:$0xf]  ;;  %v4573_v49 = vor.u32 %v3898_v24, %v3565_v25  ;;  %v3899_v7 = vld [vmem:[#allocation10 + $0xac] sm:$0xf] }
  0xaa   :  { %6131 = vst [vmem:[#allocation23_spill] sm:$0xff] %v4547_v61  ;;  %845 = vmatpush.bf16.msrb.mxu1 %v4561_v56  ;;  %v4571_v61 = vor.u32 %v3900_v20, %v3563_v62  ;;  %v3573_v12 = vld [vmem:[#allocation10 + $0xb8] sm:$0xf0]  ;;  %v3547_v24 = vld [vmem:[#allocation10 + $0x80] sm:$0xf] }
  0xab   :  { %6133 = vst [vmem:[#allocation25_spill] sm:$0xff] %v4554_v29  ;;  %871 = vmatpush.bf16.msra.mxu3 %v4566_v6  ;;  %v4575_v29 = vor.u32 %v3901_v48, %v3571_v38  ;;  %v4583_v17 = vor.u32 %v3899_v7, %v3573_v12  ;;  %v3896_v25 = vld [vmem:[#allocation10 + $0x8c] sm:$0xf0]  ;;  %v3894_v38 = vld [vmem:[#allocation10 + $0x84] sm:$0xf] }
  0xac   :  { %6134 = vst [vmem:[#allocation26_spill] sm:$0xff] %v4556_v35  ;;  %833 = vmatpush.bf16.msra.mxu0 %v4571_v61  ;;  %v3549_v7 = vld [vmem:[#allocation10 + $0x90] sm:$0xf0]  ;;  %v3555_v12 = vld [vmem:[#allocation10 + $0x88] sm:$0xf] }
  0xad   :  { %6136 = vst [vmem:[#allocation28_spill] sm:$0xff] %v4561_v56  ;;  %859 = vmatpush.bf16.msra.mxu2 %v4575_v29  ;;  %v3897_v35 = vld [vmem:[#allocation10 + $0x94] sm:$0xf0]  ;;  %v4598_v11 = vor.u32 %v3894_v38, %v3549_v7  ;;  %v3533_v38 = vld [vmem:[#allocation10 + $0x70] sm:$0xf0] }
  0xae   :  { %6138 = vst [vmem:[#allocation30_spill] sm:$0xff] %v4566_v6  ;;  %846 = vmatpush.bf16.msrb.mxu1 %v4573_v49  ;;  %v3893_v7 = vld [vmem:[#allocation10 + $0x74] sm:$0xf0]  ;;  %v3629_v56 = vld [vmem:[#allocation8 + $0x30] sm:$0xf0] }
  0xaf   :  { %6139 = vst [vmem:[#allocation31_spill] sm:$0xff] %v4571_v61  ;;  %v4580_v9 = vpop.f32.mrf.mxu2  ;;  %872 = vmatpush.bf16.msra.mxu3 %v4583_v17  ;;  %v3557_v61 = vld [vmem:[#allocation10 + $0x98] sm:$0xf0] }
  0xb0   :  { %6140 = vst [vmem:[#allocation32_spill] sm:$0xff] %v4573_v49  ;;  %v4585_v62 = vpop.f32.mrf.mxu3  ;;  %v288_v20 = vpop.f32.mrf.mxu0  ;;  %v3895_v49 = vld [vmem:[#allocation10 + $0x8c] sm:$0xf] }
  0xb1   :  { %6141 = vst [vmem:[#allocation33_spill] sm:$0xff] %v4575_v29  ;;  %v4590_v48 = vadd.f32 %v288_v20, %v4507_v4  ;;  %v312_v3 = vpop.f32.mrf.mxu1  ;;  %v4600_v29 = vor.u32 %v3897_v35, %v3555_v12  ;;  %v4603_v20 = vor.u32 %v3895_v49, %v3557_v61  ;;  %v3539_v35 = vld [vmem:[#allocation10 + $0x68] sm:$0xf]  ;;  %v3891_v61 = vld [vmem:[#allocation10 + $0x6c] sm:$0xf] }
  0xb2   :  { %6143 = vst [vmem:[#allocation35_spill] sm:$0xff] %v4580_v9  ;;  %v4593_v9 = vor.u32 %v3896_v25, %v3547_v24  ;;  %847 = vmatpush.bf16.msrb.mxu1 %v4598_v11  ;;  %v3531_v24 = vld [vmem:[#allocation10 + $0x60] sm:$0xf]  ;;  %v3892_v25 = vld [vmem:[#allocation10 + $0x6c] sm:$0xf0] }
  0xb3   :  { %6144 = vst [vmem:[#allocation36_spill] sm:$0xff] %v4583_v17  ;;  %860 = vmatpush.bf16.msra.mxu2 %v4600_v29  ;;  %873 = vmatpush.bf16.msra.mxu3 %v4603_v20  ;;  %v3541_v49 = vld [vmem:[#allocation10 + $0x78] sm:$0xf0] }
  0xb4   :  { %6145 = vst [vmem:[#allocation37_spill] sm:$0xff] %v4585_v62  ;;  %v4596_v62 = vadd.f32 %v312_v3, %v4578_v21  ;;  %834 = vmatpush.bf16.msra.mxu0 %v4593_v9  ;;  %v4608_v3 = vor.u32 %v3892_v25, %v3531_v24  ;;  %v3888_v25 = vld [vmem:[#allocation10 + $0x4c] sm:$0xf0] }
  0xb5   :  { %6146 = vst [vmem:[#allocation38_spill] sm:$0xff] %v4590_v48  ;;  %v3890_v48 = vld [vmem:[#allocation10 + $0x64] sm:$0xf] }
  0xb6   :  { %6147 = vst [vmem:[#allocation39_spill] sm:$0xff] %v4593_v9  ;;  %v4610_v12 = vor.u32 %v3890_v48, %v3533_v38  ;;  %v3515_v48 = vld [vmem:[#allocation10 + $0x40] sm:$0xf]  ;;  %v3886_v38 = vld [vmem:[#allocation10 + $0x44] sm:$0xf] }
  0xb7   :  { %6148 = vst [vmem:[#allocation40_spill] sm:$0xff] %v4596_v62  ;;  %v4612_v62 = vor.u32 %v3893_v7, %v3539_v35  ;;  %v346_v9 = vpop.f32.mrf.mxu2 }
  0xb8   :  { %6149 = vst [vmem:[#allocation41_spill] sm:$0xff] %v4598_v11  ;;  %835 = vmatpush.bf16.msra.mxu0 %v4608_v3  ;;  %v4618_v11 = vadd.f32 %v346_v9, %v4534_v40  ;;  %v4620_v24 = vpop.f32.mrf.mxu0  ;;  %848 = vmatpush.bf16.msrb.mxu1 %v4610_v12  ;;  %v3517_v9 = vld [vmem:[#allocation10 + $0x50] sm:$0xf0] }
  0xb9   :  { %6150 = vst [vmem:[#allocation42_spill] sm:$0xff] %v4600_v29  ;;  %v4615_v29 = vor.u32 %v3891_v61, %v3541_v49  ;;  %861 = vmatpush.bf16.msra.mxu2 %v4612_v62  ;;  %v4627_v7 = vpop.f32.mrf.mxu1  ;;  %v4630_v61 = vor.u32 %v3888_v25, %v3515_v48  ;;  %v3523_v49 = vld [vmem:[#allocation10 + $0x48] sm:$0xf]  ;;  %v3884_v48 = vld [vmem:[#allocation10 + $0x2c] sm:$0xf0] }
  0xba   :  { %6151 = vst [vmem:[#allocation43_spill] sm:$0xff] %v4603_v20  ;;  %v375_v20 = vpop.f32.mrf.mxu3  ;;  %v3882_v25 = vld [vmem:[#allocation10 + $0x24] sm:$0xf] }
  0xbb   :  { %6152 = vst [vmem:[#allocation44_spill] sm:$0xff] %v4608_v3  ;;  %v4625_v35 = vadd.f32 %v375_v20, %v4541_v51  ;;  %874 = vmatpush.bf16.msra.mxu3 %v4615_v29  ;;  %v3525_v3 = vld [vmem:[#allocation10 + $0x58] sm:$0xf0]  ;;  %v3499_v20 = vld [vmem:[#allocation10 + $0x20] sm:$0xf] }
  0xbc   :  { %6153 = vst [vmem:[#allocation45_spill] sm:$0xff] %v4610_v12  ;;  %836 = vmatpush.bf16.msra.mxu0 %v4630_v61 }
  0xbd   :  { %6154 = vst [vmem:[#allocation46_spill] sm:$0xff] %v4612_v62  ;;  %v3887_v62 = vld [vmem:[#allocation10 + $0x4c] sm:$0xf] }
  0xbe   :  { %6155 = vst [vmem:[#allocation47_spill] sm:$0xff] %v4615_v29  ;;  %v4637_v17 = vor.u32 %v3887_v62, %v3525_v3  ;;  %v3883_v62 = vld [vmem:[#allocation10 + $0x2c] sm:$0xf]  ;;  %v3509_v3 = vld [vmem:[#allocation10 + $0x38] sm:$0xf0] }
  0xbf   :  { %6156 = vst [vmem:[#allocation48_spill] sm:$0xff] %v4618_v11  ;;  %v3889_v11 = vld [vmem:[#allocation10 + $0x54] sm:$0xf0]  ;;  %v3723_v29 = vld [vmem:[#allocation8 + $0xe0] sm:$0xf] }
  0xc0   :  { %6157 = vst [vmem:[#allocation49_spill] sm:$0xff] %v4620_v24  ;;  %v4632_v24 = vor.u32 %v3886_v38, %v3517_v9  ;;  %v4634_v12 = vor.u32 %v3889_v11, %v3523_v49  ;;  %875 = vmatpush.bf16.msra.mxu3 %v4637_v17  ;;  %v3501_v38 = vld [vmem:[#allocation10 + $0x30] sm:$0xf0]  ;;  %v3507_v11 = vld [vmem:[#allocation10 + $0x28] sm:$0xf] }
  0xc1   :  { %6158 = vst [vmem:[#allocation50_spill] sm:$0xff] %v4625_v35  ;;  %v4642_v35 = vor.u32 %v3884_v48, %v3499_v20  ;;  %v3885_v9 = vld [vmem:[#allocation10 + $0x34] sm:$0xf0]  ;;  %v4644_v49 = vor.u32 %v3882_v25, %v3501_v38  ;;  %v559_v48 = vpop.f32.mrf.mxu0  ;;  %v3483_v25 = vld [vmem:[#allocation10] sm:$0xf] }
  0xc2   :  { %6159 = vst [vmem:[#allocation51_spill] sm:$0xff] %v4627_v7  ;;  %849 = vmatpush.bf16.msrb.mxu1 %v4632_v24  ;;  %862 = vmatpush.bf16.msra.mxu2 %v4634_v12  ;;  %v4646_v7 = vor.u32 %v3885_v9, %v3507_v11  ;;  %v4655_v20 = vpop.f32.mrf.mxu3  ;;  %v3880_v38 = vld [vmem:[#allocation10 + $0xc] sm:$0xf0]  ;;  %v3878_v11 = vld [vmem:[#allocation10 + $0x4] sm:$0xf]  ;;  %v317_v9 = vpop.f32.mrf.mxu1 }
  0xc3   :  { %6160 = vst [vmem:[#allocation52_spill] sm:$0xff] %v4630_v61  ;;  %837 = vmatpush.bf16.msra.mxu0 %v4642_v35  ;;  %v4653_v61 = vor.u32 %v3883_v62, %v3509_v3  ;;  %v3881_v62 = vld [vmem:[#allocation10 + $0x14] sm:$0xf0]  ;;  %v4663_v3 = vadd.f32 %v317_v9, %v4578_v21 }
  0xc4   :  { %6161 = vst [vmem:[#allocation53_spill] sm:$0xff] %v4632_v24  ;;  %v279_v24 = vadd.f32 %v4509_v5, %v4507_v4  ;;  %v4660_v5 = vor.u32 %v3880_v38, %v3483_v25  ;;  %v3491_v4 = vld [vmem:[#allocation10 + $0x8] sm:$0xf]  ;;  %v3874_v25 = vld [vmem:[#allocation8 + $0xe4] sm:$0xf] }
  0xc5   :  { %6162 = vst [vmem:[#allocation54_spill] sm:$0xff] %v4634_v12  ;;  %v4650_v12 = vpop.f32.mrf.mxu2  ;;  %876 = vmatpush.bf16.msra.mxu3 %v4653_v61 }
  0xc6   :  { %6163 = vst [vmem:[#allocation55_spill] sm:$0xff] %v4637_v17  ;;  %850 = vmatpush.bf16.msrb.mxu1 %v4644_v49  ;;  %863 = vmatpush.bf16.msra.mxu2 %v4646_v7  ;;  %v602_v17 = vadd.f32 %v559_v48, %v279_v24  ;;  %v3876_v48 = vld [vmem:[#allocation8 + $0xec] sm:$0xf0] }
  0xc7   :  { %6164 = vst [vmem:[#allocation56_spill] sm:$0xff] %v4642_v35  ;;  %v3493_v35 = vld [vmem:[#allocation10 + $0x18] sm:$0xf0]  ;;  %838 = vmatpush.bf16.msra.mxu0 %v4660_v5  ;;  %v4674_v38 = vor.u32 %v3876_v48, %v3723_v29  ;;  %v3870_v29 = vld [vmem:[#allocation8 + $0xc4] sm:$0xf] }
  0xc8   :  { %6165 = vst [vmem:[#allocation57_spill] sm:$0xff] %v4644_v49  ;;  %v4667_v49 = vor.u32 %v3881_v62, %v3491_v4  ;;  %v3478_v6 = vmul.f32 -1.442695, %v602_v17  ;;  %v3877_v4 = vld [vmem:[#allocation8 + $0xf4] sm:$0xf0] }
  0xc9   :  { %6166 = vst [vmem:[#allocation58_spill] sm:$0xff] %v4646_v7  ;;  %v3879_v7 = vld [vmem:[#allocation10 + $0xc] sm:$0xf]  ;;  %v3707_v62 = vld [vmem:[#allocation8 + $0xc0] sm:$0xf] }
  0xca   :  { %6167 = vst [vmem:[#allocation59_spill] sm:$0xff] %v4650_v12  ;;  %v3485_v12 = vld [vmem:[#allocation10 + $0x10] sm:$0xf0]  ;;  %v4670_v24 = vor.u32 %v3879_v7, %v3493_v35  ;;  %864 = vmatpush.bf16.msra.mxu2 %v4667_v49  ;;  %3934 = vpow2.f32 %v3478_v6  ;;  %v3875_v35 = vld [vmem:[#allocation8 + $0xec] sm:$0xf] }
  0xcb   :  { %6168 = vst [vmem:[#allocation60_spill] sm:$0xff] %v4653_v61  ;;  %v3733_v7 = vld [vmem:[#allocation8 + $0xf8] sm:$0xf0]  ;;  %1043 = vmatpush.bf16.msrb.mxu0 %v4674_v38  ;;  %v3709_v48 = vld [vmem:[#allocation8 + $0xd0] sm:$0xf0] }
  0xcc   :  { %6169 = vst [vmem:[#allocation61_spill] sm:$0xff] %v4655_v20  ;;  %v4665_v20 = vor.u32 %v3878_v11, %v3485_v12  ;;  %v3725_v12 = vld [vmem:[#allocation8 + $0xf0] sm:$0xf0]  ;;  %v3731_v11 = vld [vmem:[#allocation8 + $0xe8] sm:$0xf]  ;;  %877 = vmatpush.bf16.msra.mxu3 %v4670_v24 }
  0xcd   :  { %6170 = vst [vmem:[#allocation62_spill] sm:$0xff] %v4660_v5  ;;  %v4677_v9 = vor.u32 %v3874_v25, %v3725_v12  ;;  %v4679_v17 = vor.u32 %v3877_v4, %v3731_v11  ;;  %v4688_v25 = vor.u32 %v3870_v29, %v3709_v48  ;;  %v3715_v12 = vld [vmem:[#allocation8 + $0xc8] sm:$0xf]  ;;  %v3873_v11 = vld [vmem:[#allocation8 + $0xd4] sm:$0xf0] }
  0xce   :  { %6171 = vst [vmem:[#allocation63_spill] sm:$0xff] %v4663_v3  ;;  %851 = vmatpush.bf16.msrb.mxu1 %v4665_v20  ;;  %v4682_v3 = vor.u32 %v3875_v35, %v3733_v7  ;;  %v3871_v4 = vld [vmem:[#allocation8 + $0xcc] sm:$0xf]  ;;  %v380_v35 = vpop.f32.mrf.mxu3  ;;  %v561_v7 = vpop.f32.mrf.mxu0  ;;  %v3717_v5 = vld [vmem:[#allocation8 + $0xd8] sm:$0xf0] }
  0xcf   :  { %6172 = vst [vmem:[#allocation64_spill] sm:$0xff] %v4665_v20  ;;  %v351_v20 = vpop.f32.mrf.mxu2  ;;  %1069 = vmatpush.bf16.msrb.mxu2 %v4679_v17  ;;  %v4702_v29 = vor.u32 %v3871_v4, %v3717_v5  ;;  %v3691_v48 = vld [vmem:[#allocation8 + $0xa0] sm:$0xf]  ;;  %v3699_v7 = vld [vmem:[#allocation8 + $0xa8] sm:$0xf] }
  0xd0   :  { %6173 = vst [vmem:[#allocation65_spill] sm:$0xff] %v4667_v49  ;;  %v3872_v49 = vld [vmem:[#allocation8 + $0xcc] sm:$0xf0]  ;;  %1082 = vmatpush.bf16.msrb.mxu3 %v4682_v3 }
  0xd1   :  { %6174 = vst [vmem:[#allocation66_spill] sm:$0xff] %v4670_v24  ;;  %v4686_v6 = vor.u32 %v3872_v49, %v3707_v62  ;;  %v4691_v24 = vadd.f32 %v351_v20, %v4534_v40  ;;  %v4698_v49 = vadd.f32 %v380_v35, %v4541_v51  ;;  %v4700_v62 = vpop.f32.mrf.mxu1  ;;  %v3866_v20 = vld [vmem:[#allocation8 + $0xa4] sm:$0xf]  ;;  %v3935_v35 = vpop.eup %3934  ;;  %v3860_v61 = vld [vmem:[#allocation8 + $0x6c] sm:$0xf0] }
  0xd2   :  { %6175 = vst [vmem:[#allocation67_spill] sm:$0xff] %v4674_v38  ;;  %1056 = vmatpush.bf16.msra.mxu1 %v4677_v9  ;;  %v4694_v38 = vor.u32 %v3873_v11, %v3715_v12  ;;  %v3693_v11 = vld [vmem:[#allocation8 + $0xb0] sm:$0xf0] }
  0xd3   :  { %6176 = vst [vmem:[#allocation68_spill] sm:$0xff] %v4677_v9  ;;  %v6183_v9 = vmov 0.0|0.0   ;;  %1044 = vmatpush.bf16.msrb.mxu0 %v4686_v6  ;;  %v4712_v5 = vor.u32 %v3866_v20, %v3693_v11 }
  0xd4   :  { %6177 = vst [vmem:[#allocation69_spill] sm:$0xff] %v4679_v17  ;;  %839 = vmatmul.bf16.vlgmr.msra.gmra.mxu0 %v6183_v9  ;;  %v3868_v17 = vld [vmem:[#allocation8 + $0xac] sm:$0xf0]  ;;  %852 = vmatmul.bf16.vlgmr.msrb.gmra.mxu1 %v6183_v9 }
  0xd5   :  { %6178 = vst [vmem:[#allocation70_spill] sm:$0xff] %v4682_v3  ;;  %878 = vmatmul.bf16.vlgmr.msra.gmra.mxu3 %v6183_v9  ;;  %v4707_v12 = vor.u32 %v3868_v17, %v3691_v48  ;;  %865 = vmatmul.bf16.vlgmr.msra.gmra.mxu2 %v6183_v9  ;;  %v4716_v3 = vadd.f32 1.0, %v3935_v35  ;;  %v3675_v48 = vld [vmem:[#allocation8 + $0x80] sm:$0xf]  ;;  %v3862_v9 = vld [vmem:[#allocation8 + $0x84] sm:$0xf] }
  0xd6   :  { %6179 = vst [vmem:[#allocation71_spill] sm:$0xff] %v4686_v6  ;;  %1057 = vmatpush.bf16.msra.mxu1 %v4688_v25  ;;  %1070 = vmatpush.bf16.msrb.mxu2 %v4694_v38  ;;  %v3864_v6 = vld [vmem:[#allocation8 + $0x8c] sm:$0xf0]  ;;  %v4731_v35 = vpop.f32.mrf.mxu3 }
  0xd7   :  { %6180 = vst [vmem:[#allocation72_spill] sm:$0xff] %v4688_v25  ;;  %1083 = vmatpush.bf16.msrb.mxu3 %v4702_v29  ;;  %3936 = vrcp.f32 %v4716_v3  ;;  %1045 = vmatpush.bf16.msrb.mxu0 %v4707_v12  ;;  %v4723_v20 = vpop.f32.mrf.mxu2  ;;  %vm615_vm2 = vweird.f32 %v4716_v3 }
  0xd8   :  { %6181 = vst [vmem:[#allocation73_spill] sm:$0xff] %v4691_v24  ;;  %v3869_v24 = vld [vmem:[#allocation8 + $0xb4] sm:$0xf0] }
  0xd9   :  { %6182 = vst [vmem:[#allocation74_spill] sm:$0xff] %v4694_v38  ;;  %v4714_v4 = vor.u32 %v3869_v24, %v3699_v7  ;;  %v3677_v38 = vld [vmem:[#allocation8 + $0x90] sm:$0xf0]  ;;  %v4727_v24 = vor.u32 %v3864_v6, %v3675_v48  ;;  %v3863_v7 = vld [vmem:[#allocation8 + $0x8c] sm:$0xf]  ;;  %v322_v25 = vpop.f32.mrf.mxu1 }
  0xda   :  { %6184 = vst [vmem:[#allocation75_spill] sm:$0xff] %v4698_v49  ;;  %v3867_v49 = vld [vmem:[#allocation8 + $0xac] sm:$0xf]  ;;  %1058 = vmatpush.bf16.msra.mxu1 %v4712_v5  ;;  %v4729_v11 = vor.u32 %v3862_v9, %v3677_v38  ;;  %v4739_v6 = vadd.f32 %v322_v25, %v4578_v21  ;;  %v3661_v48 = vld [vmem:[#allocation8 + $0x70] sm:$0xf0] }
  0xdb   :  { %6185 = vst [vmem:[#allocation76_spill] sm:$0xff] %v4700_v62  ;;  %v3701_v62 = vld [vmem:[#allocation8 + $0xb8] sm:$0xf0]  ;;  %1071 = vmatpush.bf16.msrb.mxu2 %v4714_v4  ;;  %1046 = vmatpush.bf16.msrb.mxu0 %v4727_v24  ;;  %v3667_v9 = vld [vmem:[#allocation8 + $0x68] sm:$0xf] }
  0xdc   :  { %6186 = vst [vmem:[#allocation77_spill] sm:$0xff] %v4702_v29  ;;  %v4719_v17 = vor.u32 %v3867_v49, %v3701_v62  ;;  %v3683_v49 = vld [vmem:[#allocation8 + $0x88] sm:$0xf]  ;;  %v3865_v62 = vld [vmem:[#allocation8 + $0x94] sm:$0xf0] }
  0xdd   :  { %6187 = vst [vmem:[#allocation78_spill] sm:$0xff] %v4707_v12  ;;  %v4734_v29 = vor.u32 %v3865_v62, %v3683_v49  ;;  %v3685_v12 = vld [vmem:[#allocation8 + $0x98] sm:$0xf0]  ;;  %v3859_v62 = vld [vmem:[#allocation8 + $0x6c] sm:$0xf] }
  0xde   :  { %6188 = vst [vmem:[#allocation79_spill] sm:$0xff] %v4712_v5  ;;  %1084 = vmatpush.bf16.msrb.mxu3 %v4719_v17  ;;  %v3659_v5 = vld [vmem:[#allocation8 + $0x60] sm:$0xf]  ;;  %1059 = vmatpush.bf16.msra.mxu1 %v4729_v11 }
  0xdf   :  { %6189 = vst [vmem:[#allocation80_spill] sm:$0xff] %v4714_v4  ;;  %v3858_v4 = vld [vmem:[#allocation8 + $0x64] sm:$0xf]  ;;  %v4742_v38 = vor.u32 %v3860_v61, %v3659_v5  ;;  %1072 = vmatpush.bf16.msrb.mxu2 %v4734_v29  ;;  %v3643_v5 = vld [vmem:[#allocation8 + $0x40] sm:$0xf] }
  0xe0   :  { %6190 = vst [vmem:[#allocation81_spill] sm:$0xff] %v4719_v17  ;;  %v4746_v49 = vor.u32 %v3858_v4, %v3661_v48  ;;  %v3937_v17 = vpop.eup %3936  ;;  %v3651_v48 = vld [vmem:[#allocation8 + $0x48] sm:$0xf] }
  0xe1   :  { %6191 = vst [vmem:[#allocation82_spill] sm:$0xff] %v4723_v20  ;;  %v4736_v20 = vor.u32 %v3863_v7, %v3685_v12  ;;  %v3669_v7 = vld [vmem:[#allocation8 + $0x78] sm:$0xf0]  ;;  %v611_v61 = vmul.f32 %v3937_v17, %v4716_v3  ;;  %1047 = vmatpush.bf16.msrb.mxu0 %v4742_v38  ;;  %vm616_vm1 = vweird.f32 %v3937_v17 }
  0xe2   :  { %6192 = vst [vmem:[#allocation83_spill] sm:$0xff] %v4727_v24  ;;  %v4751_v25 = vor.u32 %v3859_v62, %v3669_v7  ;;  %v3854_v24 = vld [vmem:[#allocation8 + $0x44] sm:$0xf]  ;;  %v585_v62 = vpop.f32.mrf.mxu2  ;;  %1060 = vmatpush.bf16.msra.mxu1 %v4746_v49  ;;  %vm617_vm3 = vmor %vm615_vm2, %vm616_vm1 }
  0xe3   :  { %6193 = vst [vmem:[#allocation84_spill] sm:$0xff] %v4729_v11  ;;  %1085 = vmatpush.bf16.msrb.mxu3 %v4736_v20  ;;  %v337_v11 = vadd.f32 %v4514_v10, %v4534_v40  ;;  %v619_v40 = vand.u32 2147483647, %v4716_v3 }
  0xe4   :  { %6194 = vst [vmem:[#allocation85_spill] sm:$0xff] %v4731_v35  ;;  %v3861_v35 = vld [vmem:[#allocation8 + $0x74] sm:$0xf0] }
  0xe5   :  { %6195 = vst [vmem:[#allocation86_spill] sm:$0xff] %v4734_v29  ;;  %v4748_v12 = vor.u32 %v3861_v35, %v3667_v9  ;;  %v3645_v35 = vld [vmem:[#allocation8 + $0x50] sm:$0xf0]  ;;  %v366_v9 = vadd.f32 %v4516_v8, %v4541_v51  ;;  %v3857_v29 = vld [vmem:[#allocation8 + $0x54] sm:$0xf0]  ;;  %v604_v10 = vadd.f32 %v585_v62, %v337_v11  ;;  %vm620_vm4 = vcmp.eq.f32.partialorder %v619_v40, 8.507059e+37 }
  0xe6   :  { %6196 = vst [vmem:[#allocation87_spill] sm:$0xff] %v4736_v20  ;;  %v612_v20 = vsub.f32 1.0, %v611_v61  ;;  %v4763_v7 = vor.u32 %v3854_v24, %v3645_v35  ;;  %v3653_v8 = vld [vmem:[#allocation8 + $0x58] sm:$0xf0]  ;;  %v3627_v35 = vld [vmem:[#allocation8 + $0x20] sm:$0xf] }
  0xe7   :  { %6197 = vst [vmem:[#allocation88_spill] sm:$0xff] %v4739_v6  ;;  %v3856_v6 = vld [vmem:[#allocation8 + $0x4c] sm:$0xf0]  ;;  %1073 = vmatpush.bf16.msrb.mxu2 %v4748_v12  ;;  %1086 = vmatpush.bf16.msrb.mxu3 %v4751_v25  ;;  %v4772_v24 = vor.u32 %v3855_v60, %v3653_v8  ;;  %v3850_v11 = vld [vmem:[#allocation8 + $0x24] sm:$0xf]  ;;  %3938 = vtanh.f32 %v604_v10 }
  0xe8   :  { %6198 = vst [vmem:[#allocation89_spill] sm:$0xff] %v4742_v38  ;;  %v4757_v4 = vor.u32 %v3856_v6, %v3643_v5  ;;  %v621_v6 = vand.u32 2147483648, %v4716_v3  ;;  %v598_v5 = vpop.f32.mrf.mxu3  ;;  %v4768_v38 = vor.u32 %v3857_v29, %v3651_v48  ;;  %v613_v61 = vmul.f32 %v3937_v17, %v612_v20  ;;  %v3853_v29 = vld [vmem:[#allocation8 + $0x34] sm:$0xf0]  ;;  %1061 = vmatpush.bf16.msra.mxu1 %v4763_v7  ;;  %v3637_v10 = vld [vmem:[#allocation8 + $0x38] sm:$0xf0] }
  0xe9   :  { %6199 = vst [vmem:[#allocation90_spill] sm:$0xff] %v4746_v49  ;;  %v605_v51 = vadd.f32 %v598_v5, %v366_v9  ;;  %v4770_v49 = vpop.f32.mrf.mxu1  ;;  %v4780_v60 = vor.u32 %v3850_v11, %v3629_v56  ;;  %v3851_v9 = vld [vmem:[#allocation8 + $0x2c] sm:$0xf]  ;;  %v3619_v11 = vld [vmem:[#allocation8 + $0x8] sm:$0xf] }
  0xea   :  { %6200 = vst [vmem:[#allocation91_spill] sm:$0xff] %v4748_v12  ;;  %v3852_v12 = vld [vmem:[#allocation8 + $0x2c] sm:$0xf0]  ;;  %1048 = vmatpush.bf16.msrb.mxu0 %v4757_v4  ;;  %v614_v48 = vadd.f32 %v3937_v17, %v613_v61  ;;  %v4786_v8 = vor.u32 %v3851_v9, %v3637_v10  ;;  %v3611_v61 = vld [vmem:[#allocation8] sm:$0xf]  ;;  %v308_v9 = vadd.f32 %v4529_v22, %v4578_v21 }
  0xeb   :  { %6201 = vst [vmem:[#allocation92_spill] sm:$0xff] %v4751_v25  ;;  %v4775_v62 = vor.u32 %v3852_v12, %v3627_v35  ;;  %v3635_v25 = vld [vmem:[#allocation8 + $0x28] sm:$0xf]  ;;  %1074 = vmatpush.bf16.msrb.mxu2 %v4768_v38  ;;  %v622_v12 = vor.u32 1.1754944e-38, %v621_v6  ;;  %v3480_v5 = vmul.f32 -1.442695, %v605_v51  ;;  %1087 = vmatpush.bf16.msrb.mxu3 %v4772_v24 }
  0xec   :  { %6202 = vst [vmem:[#allocation93_spill] sm:$0xff] %v4757_v4  ;;  %v4782_v20 = vor.u32 %v3853_v29, %v3635_v25  ;;  %v618_v3 = vsel %vm617_vm3, %v3937_v17, %v614_v48  ;;  %v3848_v35 = vld [vmem:[#allocation8 + $0xc] sm:$0xf0]  ;;  %v3613_v25 = vld [vmem:[#allocation8 + $0x10] sm:$0xf0]  ;;  %1062 = vmatpush.bf16.msra.mxu1 %v4780_v60 }
  0xed   :  { %6203 = vst [vmem:[#allocation94_spill] sm:$0xff] %v4763_v7  ;;  %v4789_v56 = vor.u32 %v3848_v35, %v3611_v61  ;;  %v3849_v29 = vld [vmem:[#allocation8 + $0x14] sm:$0xf0]  ;;  %v587_v7 = vpop.f32.mrf.mxu2  ;;  %v3847_v17 = vld [vmem:[#allocation8 + $0xc] sm:$0xf]  ;;  %v3939_v48 = vpop.eup %3938  ;;  %3940 = vpow2.f32 %v3480_v5 }
  0xee   :  { %6204 = vst [vmem:[#allocation95_spill] sm:$0xff] %v4768_v38  ;;  %v623_v38 = vsel %vm620_vm4, %v622_v12, %v618_v3  ;;  %1049 = vmatpush.bf16.msrb.mxu0 %v4775_v62  ;;  %v4795_v51 = vor.u32 %v3849_v29, %v3619_v11  ;;  %v3621_v6 = vld [vmem:[#allocation8 + $0x18] sm:$0xf0] }
  0xef   :  { %6205 = vst [vmem:[#allocation96_spill] sm:$0xff] %v4770_v49  ;;  %v3846_v49 = vld [vmem:[#allocation8 + $0x4] sm:$0xf]  ;;  %1075 = vmatpush.bf16.msrb.mxu2 %v4782_v20  ;;  %1088 = vmatpush.bf16.msrb.mxu3 %v4786_v8  ;;  %v4800_v12 = vor.u32 %v3847_v17, %v3621_v6  ;;  %v4802_v7 = vmul.f32 %v3939_v48, %v623_v38 }
  0xf0   :  { %6206 = vst [vmem:[#allocation97_spill] sm:$0xff] %v4772_v24  ;;  %v4793_v40 = vor.u32 %v3846_v49, %v3613_v25  ;;  %v600_v10 = vpop.f32.mrf.mxu3 }
  0xf1   :  { %6207 = vst [vmem:[#allocation98_spill] sm:$0xff] %v4775_v62  ;;  %v572_v3 = vpop.f32.mrf.mxu1 }
  0xf2   :  { %6208 = vst [vmem:[#allocation99_spill] sm:$0xff] %v4780_v60  ;;  %v603_v61 = vadd.f32 %v572_v3, %v308_v9  ;;  %1050 = vmatpush.bf16.msrb.mxu0 %v4789_v56  ;;  %1063 = vmatpush.bf16.msra.mxu1 %v4793_v40 }
  0xf3   :  { %6209 = vst [vmem:[#allocation100_spill] sm:$0xff] %v4782_v20  ;;  %1076 = vmatpush.bf16.msrb.mxu2 %v4795_v51  ;;  %1089 = vmatpush.bf16.msrb.mxu3 %v4800_v12  ;;  %v3941_v22 = vpop.eup %3940 }
  0xf4   :  { %6210 = vst [vmem:[#allocation101_spill] sm:$0xff] %v4786_v8  ;;  %v3479_v49 = vmul.f32 -1.442695, %v603_v61  ;;  %v648_v5 = vadd.f32 1.0, %v3941_v22 }
  0xf5   :  { %6211 = vst [vmem:[#allocation102_spill] sm:$0xff] %v4789_v56 }
  0xf6   :  { %6212 = vst [vmem:[#allocation103_spill] sm:$0xff] %v4793_v40  ;;  %1162 = vmatpush.bf16.msra.mxu0 %v4367_v19  ;;  %1175 = vmatpush.bf16.msrb.mxu1 %v4365_v18  ;;  %3942 = vpow2.f32 %v3479_v49  ;;  %vm654_vm10 = vweird.f32 %v648_v5 }
  0xf7   :  { %6213 = vst [vmem:[#allocation104_spill] sm:$0xff] %v4795_v51  ;;  %1188 = vmatpush.bf16.msra.mxu2 %v4388_v36  ;;  %1201 = vmatpush.bf16.msra.mxu3 %v4375_v26  ;;  %3944 = vrcp.f32 %v648_v5 }
  0xf8   :  { %6214 = vst [vmem:[#allocation105_spill] sm:$0xff] %v4800_v12 }
  0xf9   :  { %v574_v38 = vpop.f32.mrf.mxu1 }
  0xfa   :  { %1163 = vmatpush.bf16.msra.mxu0 %v4383_v30  ;;  %1176 = vmatpush.bf16.msrb.mxu1 %v4380_v27 }
  0xfb   :  { %1189 = vmatpush.bf16.msra.mxu2 %v4398_v44  ;;  %1202 = vmatpush.bf16.msra.mxu3 %v4386_v32 }
  0xfc   :  { %v3943_v35 = vpop.eup %3942 }
  0xfd   :  { %v628_v25 = vadd.f32 1.0, %v3943_v35  ;;  %v3945_v11 = vpop.eup %3944 }
  0xfe   :  { %1164 = vmatpush.bf16.msra.mxu0 %v4395_v43  ;;  %1177 = vmatpush.bf16.msrb.mxu1 %v4392_v39  ;;  %v650_v6 = vmul.f32 %v3945_v11, %v648_v5  ;;  %vm655_vm9 = vweird.f32 %v3945_v11 }
  0xff   :  { %1190 = vmatpush.bf16.msra.mxu2 %v4406_v54  ;;  %1203 = vmatpush.bf16.msra.mxu3 %v4400_v50  ;;  %3946 = vrcp.f32 %v628_v25  ;;  %v640_v9 = vand.u32 2147483648, %v628_v25  ;;  %v638_v3 = vand.u32 2147483647, %v628_v25  ;;  %vm634_vm6 = vweird.f32 %v628_v25  ;;  %vm656_vm11 = vmor %vm654_vm10, %vm655_vm9 }
 0x100   :  { %v651_v61 = vsub.f32 1.0, %v650_v6 }
 0x101   :  { %v641_v22 = vor.u32 1.1754944e-38, %v640_v9  ;;  %vm639_vm8 = vcmp.eq.f32.partialorder %v638_v3, 8.507059e+37  ;;  %v660_v9 = vand.u32 2147483648, %v648_v5 }
 0x102   :  { %1165 = vmatpush.bf16.msra.mxu0 %v4409_v57  ;;  %1178 = vmatpush.bf16.msrb.mxu1 %v4404_v53  ;;  %v652_v35 = vmul.f32 %v3945_v11, %v651_v61 }
 0x103   :  { %1191 = vmatpush.bf16.msra.mxu2 %v4421_v0  ;;  %1204 = vmatpush.bf16.msra.mxu3 %v4417_v63  ;;  %v661_v3 = vor.u32 1.1754944e-38, %v660_v9  ;;  %v6222_v9 = vld [vmem:[#allocation39_spill] sm:$0xff] }
 0x104   :  { %v653_v6 = vadd.f32 %v3945_v11, %v652_v35  ;;  %v6218_v35 = vld [vmem:[#allocation31_spill] sm:$0xff] }
 0x105   :  { %v3947_v29 = vpop.eup %3946 }
 0x106   :  { %1166 = vmatpush.bf16.msra.mxu0 %v4424_v1  ;;  %1179 = vmatpush.bf16.msrb.mxu1 %v4443_v16  ;;  %v630_v17 = vmul.f32 %v3947_v29, %v628_v25  ;;  %vm635_vm5 = vweird.f32 %v3947_v29 }
 0x107   :  { %1192 = vmatpush.bf16.msra.mxu2 %v4436_v13  ;;  %1205 = vmatpush.bf16.msra.mxu3 %v4438_v14  ;;  %vm636_vm7 = vmor %vm634_vm6, %vm635_vm5 }
 0x108   :  { %v631_v48 = vsub.f32 1.0, %v630_v17 }
 0x10a   :  { %1167 = vmatpush.bf16.msra.mxu0 %v4441_v15  ;;  %1180 = vmatpush.bf16.msrb.mxu1 %v4449_v28  ;;  %v632_v10 = vmul.f32 %v3947_v29, %v631_v48 }
 0x10b   :  { %1193 = vmatpush.bf16.msra.mxu2 %v4452_v33  ;;  %1206 = vmatpush.bf16.msra.mxu3 %v4446_v23 }
 0x10c   :  { %v633_v49 = vadd.f32 %v3947_v29, %v632_v10  ;;  %v657_v10 = vsel %vm656_vm11, %v3945_v11, %v653_v6  ;;  %v6217_v11 = vld [vmem:[#allocation30_spill] sm:$0xff]  ;;  %v6221_v6 = vld [vmem:[#allocation36_spill] sm:$0xff] }
 0x10e   :  { %1168 = vmatpush.bf16.msra.mxu0 %v4455_v34  ;;  %1181 = vmatpush.bf16.msrb.mxu1 %v4482_v59  ;;  %v637_v38 = vsel %vm636_vm7, %v3947_v29, %v633_v49  ;;  %v658_v29 = vand.u32 2147483647, %v648_v5  ;;  %v6216_v5 = vld [vmem:[#allocation29_spill] sm:$0xff] }
 0x10f   :  { %1194 = vmatpush.bf16.msra.mxu2 %v4462_v42  ;;  %1207 = vmatpush.bf16.msra.mxu3 %v4458_v41  ;;  %v642_v17 = vsel %vm639_vm8, %v641_v22, %v637_v38 }
 0x110   :  { %v664_v48 = vmul.f32 0.0, %v642_v17  ;;  %vm659_vm12 = vcmp.eq.f32.partialorder %v658_v29, 8.507059e+37  ;;  %v6219_v17 = vld [vmem:[#allocation32_spill] sm:$0xff]  ;;  %v6223_v29 = vld [vmem:[#allocation41_spill] sm:$0xff] }
 0x111   :  { %v662_v49 = vsel %vm659_vm12, %v661_v3, %v657_v10  ;;  %v6224_v10 = vld [vmem:[#allocation42_spill] sm:$0xff]  ;;  %v6225_v3 = vld [vmem:[#allocation43_spill] sm:$0xff] }
 0x112   :  { %1169 = vmatpush.bf16.msra.mxu0 %v4465_v47  ;;  %1182 = vmatpush.bf16.msrb.mxu1 %v4487_v2  ;;  %v4841_v25 = vadd.f32 %v4802_v7, %v664_v48  ;;  %v6215_v7 = vld [vmem:[#allocation28_spill] sm:$0xff]  ;;  %v6220_v48 = vld [vmem:[#allocation33_spill] sm:$0xff] }
 0x113   :  { %1195 = vmatpush.bf16.msra.mxu2 %v4474_v55  ;;  %1208 = vmatpush.bf16.msra.mxu3 %v4471_v52 }
 0x114   :  { %3948 = vtanh.f32 %v4841_v25 }
 0x11a   :  { %v3949_v61 = vpop.eup %3948 }
 0x11b   :  { %v668_v22 = vmul.f32 %v3949_v61, %v662_v49  ;;  %v6226_v61 = vld [vmem:[#allocation44_spill] sm:$0xff]  ;;  %v6227_v49 = vld [vmem:[#allocation45_spill] sm:$0xff] }
 0x11d   :  { %v669_v38 = vpack.c.bf16 %v668_v22, %v668_v22  ;;  %v6228_v22 = vld [vmem:[#allocation46_spill] sm:$0xff] }
 0x11f   :  { %1051 = vmatmul.bf16.vlgmr.msrb.gmra.mxu0 %v669_v38  ;;  %1064 = vmatmul.bf16.vlgmr.msra.gmra.mxu1 %v669_v38 }
 0x120   :  { %1077 = vmatmul.bf16.vlgmr.msrb.gmra.mxu2 %v669_v38  ;;  %1090 = vmatmul.bf16.vlgmr.msrb.gmra.mxu3 %v669_v38 }
 0x121   :  { %1283 = vmatpush.bf16.msrb.mxu0 %v4531_v31  ;;  %1296 = vmatpush.bf16.msra.mxu1 %v4536_v45 }
 0x122   :  { %1309 = vmatpush.bf16.msrb.mxu2 %v4538_v46  ;;  %1322 = vmatpush.bf16.msrb.mxu3 %v4544_v58 }
 0x125   :  { %1284 = vmatpush.bf16.msrb.mxu0 %v4559_v37  ;;  %1297 = vmatpush.bf16.msra.mxu1 %v6215_v7 }
 0x126   :  { %1310 = vmatpush.bf16.msrb.mxu2 %v6216_v5  ;;  %1323 = vmatpush.bf16.msrb.mxu3 %v6217_v11 }
 0x129   :  { %1285 = vmatpush.bf16.msrb.mxu0 %v6218_v35  ;;  %1298 = vmatpush.bf16.msra.mxu1 %v6219_v17  ;;  %v6235_v17 = vld [vmem:[#allocation57_spill] sm:$0xff] }
 0x12a   :  { %1311 = vmatpush.bf16.msrb.mxu2 %v6220_v48  ;;  %1324 = vmatpush.bf16.msrb.mxu3 %v6221_v6  ;;  %v6229_v48 = vld [vmem:[#allocation47_spill] sm:$0xff]  ;;  %v6230_v6 = vld [vmem:[#allocation52_spill] sm:$0xff] }
 0x12d   :  { %1286 = vmatpush.bf16.msrb.mxu0 %v6222_v9  ;;  %1299 = vmatpush.bf16.msra.mxu1 %v6223_v29  ;;  %v6231_v9 = vld [vmem:[#allocation53_spill] sm:$0xff]  ;;  %v6232_v29 = vld [vmem:[#allocation54_spill] sm:$0xff] }
 0x12e   :  { %1312 = vmatpush.bf16.msrb.mxu2 %v6224_v10  ;;  %1325 = vmatpush.bf16.msrb.mxu3 %v6225_v3  ;;  %v6233_v10 = vld [vmem:[#allocation55_spill] sm:$0xff]  ;;  %v6234_v3 = vld [vmem:[#allocation56_spill] sm:$0xff] }
 0x12f   :  { %1170 = vmatmul.bf16.vlgmr.msra.gmra.mxu0 %v669_v38  ;;  %1183 = vmatmul.bf16.vlgmr.msrb.gmra.mxu1 %v669_v38 }
 0x130   :  { %1196 = vmatmul.bf16.vlgmr.msra.gmra.mxu2 %v669_v38  ;;  %1209 = vmatmul.bf16.vlgmr.msra.gmra.mxu3 %v669_v38  ;;  %v6236_v38 = vld [vmem:[#allocation58_spill] sm:$0xff] }
 0x131   :  { %1287 = vmatpush.bf16.msrb.mxu0 %v6226_v61  ;;  %1300 = vmatpush.bf16.msra.mxu1 %v6227_v49  ;;  %v6237_v61 = vld [vmem:[#allocation60_spill] sm:$0xff]  ;;  %v6238_v49 = vld [vmem:[#allocation62_spill] sm:$0xff] }
 0x132   :  { %1313 = vmatpush.bf16.msrb.mxu2 %v6228_v22  ;;  %1326 = vmatpush.bf16.msrb.mxu3 %v6229_v48  ;;  %v6239_v22 = vld [vmem:[#allocation64_spill] sm:$0xff]  ;;  %v6240_v48 = vld [vmem:[#allocation65_spill] sm:$0xff] }
 0x135   :  { %1288 = vmatpush.bf16.msrb.mxu0 %v6230_v6  ;;  %1301 = vmatpush.bf16.msra.mxu1 %v6231_v9  ;;  %v6241_v6 = vld [vmem:[#allocation66_spill] sm:$0xff]  ;;  %v6242_v9 = vld [vmem:[#allocation67_spill] sm:$0xff] }
 0x136   :  { %1314 = vmatpush.bf16.msrb.mxu2 %v6232_v29  ;;  %1327 = vmatpush.bf16.msrb.mxu3 %v6233_v10  ;;  %v6243_v29 = vld [vmem:[#allocation68_spill] sm:$0xff]  ;;  %v6244_v10 = vld [vmem:[#allocation69_spill] sm:$0xff] }
 0x139   :  { %1289 = vmatpush.bf16.msrb.mxu0 %v6234_v3  ;;  %1302 = vmatpush.bf16.msra.mxu1 %v6235_v17  ;;  %v6245_v3 = vld [vmem:[#allocation70_spill] sm:$0xff]  ;;  %v6246_v17 = vld [vmem:[#allocation71_spill] sm:$0xff] }
 0x13a   :  { %1315 = vmatpush.bf16.msrb.mxu2 %v6236_v38  ;;  %1328 = vmatpush.bf16.msrb.mxu3 %v6237_v61  ;;  %v6247_v38 = vld [vmem:[#allocation72_spill] sm:$0xff]  ;;  %v6248_v61 = vld [vmem:[#allocation74_spill] sm:$0xff] }
 0x13d   :  { %1290 = vmatpush.bf16.msrb.mxu0 %v6238_v49  ;;  %1303 = vmatpush.bf16.msra.mxu1 %v6239_v22  ;;  %v6249_v49 = vld [vmem:[#allocation77_spill] sm:$0xff]  ;;  %v6250_v22 = vld [vmem:[#allocation78_spill] sm:$0xff] }
 0x13e   :  { %1316 = vmatpush.bf16.msrb.mxu2 %v6240_v48  ;;  %1329 = vmatpush.bf16.msrb.mxu3 %v6241_v6  ;;  %v6251_v48 = vld [vmem:[#allocation79_spill] sm:$0xff]  ;;  %v6252_v6 = vld [vmem:[#allocation80_spill] sm:$0xff] }
 0x141   :  { %1335 = vmatpush.bf16.msra.mxu0 %v6242_v9  ;;  %1348 = vmatpush.bf16.msrb.mxu1 %v6243_v29  ;;  %v6253_v9 = vld [vmem:[#allocation81_spill] sm:$0xff]  ;;  %v6254_v29 = vld [vmem:[#allocation83_spill] sm:$0xff] }
 0x142   :  { %1361 = vmatpush.bf16.msra.mxu2 %v6244_v10  ;;  %1374 = vmatpush.bf16.msra.mxu3 %v6245_v3  ;;  %v6255_v10 = vld [vmem:[#allocation84_spill] sm:$0xff]  ;;  %v6256_v3 = vld [vmem:[#allocation86_spill] sm:$0xff] }
 0x145   :  { %1336 = vmatpush.bf16.msra.mxu0 %v6246_v17  ;;  %1349 = vmatpush.bf16.msrb.mxu1 %v6247_v38  ;;  %v6257_v17 = vld [vmem:[#allocation87_spill] sm:$0xff]  ;;  %v6258_v38 = vld [vmem:[#allocation89_spill] sm:$0xff] }
 0x146   :  { %1362 = vmatpush.bf16.msra.mxu2 %v6248_v61  ;;  %1375 = vmatpush.bf16.msra.mxu3 %v6249_v49  ;;  %v6259_v61 = vld [vmem:[#allocation90_spill] sm:$0xff]  ;;  %v6260_v49 = vld [vmem:[#allocation91_spill] sm:$0xff] }
 0x149   :  { %1337 = vmatpush.bf16.msra.mxu0 %v6250_v22  ;;  %1350 = vmatpush.bf16.msrb.mxu1 %v6251_v48  ;;  %v6261_v22 = vld [vmem:[#allocation92_spill] sm:$0xff] }
 0x14a   :  { %1363 = vmatpush.bf16.msra.mxu2 %v6252_v6  ;;  %1376 = vmatpush.bf16.msra.mxu3 %v6253_v9  ;;  %v6262_v6 = vld [vmem:[#allocation94_spill] sm:$0xff] }
 0x14d   :  { %1338 = vmatpush.bf16.msra.mxu0 %v6254_v29  ;;  %1351 = vmatpush.bf16.msrb.mxu1 %v6255_v10  ;;  %v6263_v29 = vld [vmem:[#allocation95_spill] sm:$0xff] }
 0x14e   :  { %1364 = vmatpush.bf16.msra.mxu2 %v6256_v3  ;;  %1377 = vmatpush.bf16.msra.mxu3 %v6257_v17 }
 0x151   :  { %1339 = vmatpush.bf16.msra.mxu0 %v6258_v38  ;;  %1352 = vmatpush.bf16.msrb.mxu1 %v6259_v61  ;;  %v840_v9 = vpop.f32.mrf.mxu0  ;;  %v853_v3 = vpop.f32.mrf.mxu1 }
 0x152   :  { %1365 = vmatpush.bf16.msra.mxu2 %v6260_v49  ;;  %1378 = vmatpush.bf16.msra.mxu3 %v6261_v22 }
 0x155   :  { %1340 = vmatpush.bf16.msra.mxu0 %v4757_v4  ;;  %1353 = vmatpush.bf16.msrb.mxu1 %v6262_v6 }
 0x156   :  { %1366 = vmatpush.bf16.msra.mxu2 %v6263_v29  ;;  %1379 = vmatpush.bf16.msra.mxu3 %v4772_v24 }
 0x158   :  { %v879_v49 = vpop.f32.mrf.mxu3  ;;  %v866_v4 = vpop.f32.mrf.mxu2 }
 0x159   :  { %1341 = vmatpush.bf16.msra.mxu0 %v4775_v62  ;;  %1354 = vmatpush.bf16.msrb.mxu1 %v4780_v60  ;;  %v842_v6 = vpop.f32.mrf.mxu0  ;;  %v855_v24 = vpop.f32.mrf.mxu1 }
 0x15a   :  { %1367 = vmatpush.bf16.msra.mxu2 %v4782_v20  ;;  %1380 = vmatpush.bf16.msra.mxu3 %v4786_v8  ;;  %v184_v20 = vld [vmem:[%s5976_s6] sm:$0xf] }
 0x15b   :  { %v4911_v60 = vperm.slane %v184_v20, 0  ;;  %v4913_v8 = vperm.slane %v184_v20, 1 }
 0x15d   :  { %1342 = vmatpush.bf16.msra.mxu0 %v4789_v56  ;;  %1355 = vmatpush.bf16.msrb.mxu1 %v4793_v40  ;;  %6264 = vst [vmem:[#allocation106_spill] sm:$0xff] %v4911_v60 }
 0x15e   :  { %1368 = vmatpush.bf16.msra.mxu2 %v4795_v51  ;;  %1381 = vmatpush.bf16.msra.mxu3 %v4800_v12  ;;  %6265 = vst [vmem:[#allocation107_spill] sm:$0xff] %v4913_v8 }
 0x160   :  { %v881_v29 = vpop.f32.mrf.mxu3  ;;  %v868_v62 = vpop.f32.mrf.mxu2 }
 0x161   :  { %v4917_v29 = vperm.slane %v184_v20, 3 }
 0x163   :  { %6266 = vst [vmem:[#allocation108_spill] sm:$0xff] %v4917_v29 }
 0x19c   :  { %v1052_v56 = vpop.f32.mrf.mxu0  ;;  %v1065_v22 = vpop.f32.mrf.mxu1 }
 0x19d   :  { %v1053_v40 = vadd.f32 %v1052_v56, %v840_v9  ;;  %v1066_v6 = vadd.f32 %v1065_v22, %v853_v3  ;;  %v6267_v22 = vld [vmem:[#allocation13_spill] sm:$0xff] }
 0x19f   :  { %v1095_v61 = vadd.f32 %v1053_v40, %v4911_v60  ;;  %v1096_v51 = vadd.f32 %v1066_v6, %v4913_v8  ;;  %v6268_v6 = vld [vmem:[#allocation15_spill] sm:$0xff]  ;;  %v6269_v8 = vld [vmem:[#allocation26_spill] sm:$0xff] }
 0x1a1   :  { %v3737_v12 = vmul.f32 -1.442695, %v1095_v61  ;;  %v3738_v24 = vmul.f32 -1.442695, %v1096_v51 }
 0x1a3   :  { %3950 = vpow2.f32 %v3737_v12  ;;  %v1078_v62 = vpop.f32.mrf.mxu2  ;;  %v1091_v38 = vpop.f32.mrf.mxu3  ;;  %v281_v12 = vadd.f32 %v6268_v6, %v6267_v22  ;;  %v6272_v22 = vld [vmem:[#allocation18_spill] sm:$0xff] }
 0x1a4   :  { %3952 = vpow2.f32 %v3738_v24  ;;  %v1092_v17 = vadd.f32 %v1091_v38, %v879_v49  ;;  %v1054_v10 = vpop.f32.mrf.mxu0  ;;  %v1067_v48 = vpop.f32.mrf.mxu1  ;;  %v310_v24 = vadd.f32 %v6269_v8, %v4578_v21  ;;  %v6271_v21 = vld [vmem:[#allocation21_spill] sm:$0xff] }
 0x1a6   :  { %v1098_v35 = vadd.f32 %v1092_v17, %v4917_v29  ;;  %v1079_v17 = vadd.f32 %v1078_v62, %v866_v4  ;;  %v368_v29 = vadd.f32 %v6272_v22, %v6271_v21 }
 0x1a8   :  { %v3739_v11 = vmul.f32 -1.442695, %v1098_v35  ;;  %v4927_v35 = vperm.slane %v184_v20, 2 }
 0x1a9   :  { %v3951_v56 = vpop.eup %3950 }
 0x1aa   :  { %v3953_v9 = vpop.eup %3952  ;;  %v1102_v3 = vadd.f32 1.0, %v3951_v56  ;;  %3954 = vpow2.f32 %v3739_v11  ;;  %6270 = vst [vmem:[#allocation15_spill] sm:$0xff] %v4927_v35  ;;  %v1097_v6 = vadd.f32 %v1079_v17, %v4927_v35 }
 0x1ab   :  { %v4920_v40 = vadd.f32 1.0, %v3953_v9  ;;  %v1080_v61 = vpop.f32.mrf.mxu2  ;;  %v1093_v51 = vpop.f32.mrf.mxu3 }
 0x1ac   :  { %3956 = vrcp.f32 %v1102_v3  ;;  %v1171_v10 = vpop.f32.mrf.mxu0  ;;  %v1184_v48 = vpop.f32.mrf.mxu1  ;;  %v1114_v17 = vand.u32 2147483648, %v1102_v3  ;;  %vm1108_vm14 = vweird.f32 %v1102_v3 }
 0x1ad   :  { %3958 = vrcp.f32 %v4920_v40  ;;  %v1214_v49 = vadd.f32 %v1171_v10, %v281_v12  ;;  %v1215_v11 = vadd.f32 %v1184_v48, %v310_v24  ;;  %v1131_v5 = vand.u32 2147483647, %v4920_v40 }
 0x1ae   :  { %vm1127_vm0 = vweird.f32 %v4920_v40 }
 0x1af   :  { %v3740_v56 = vmul.f32 -1.442695, %v1214_v49  ;;  %v3741_v9 = vmul.f32 -1.442695, %v1215_v11  ;;  %v1112_v11 = vand.u32 2147483647, %v1102_v3 }
 0x1b0   :  { %v3955_v38 = vpop.eup %3954  ;;  %vm1132_vm4 = vcmp.eq.f32.partialorder %v1131_v5, 8.507059e+37 }
 0x1b1   :  { %v4929_v61 = vadd.f32 1.0, %v3955_v38  ;;  %3960 = vpow2.f32 %v3740_v56  ;;  %v1133_v38 = vand.u32 2147483648, %v4920_v40  ;;  %vm1113_vm2 = vcmp.eq.f32.partialorder %v1112_v11, 8.507059e+37 }
 0x1b2   :  { %v3957_v51 = vpop.eup %3956 }
 0x1b3   :  { %v3959_v8 = vpop.eup %3958  ;;  %v1104_v60 = vmul.f32 %v3957_v51, %v1102_v3  ;;  %3962 = vrcp.f32 %v4929_v61  ;;  %v1197_v20 = vpop.f32.mrf.mxu2  ;;  %vm1109_vm13 = vweird.f32 %v3957_v51  ;;  %v1134_v3 = vor.u32 1.1754944e-38, %v1133_v38 }
 0x1b4   :  { %v1210_v4 = vpop.f32.mrf.mxu3  ;;  %v1123_v62 = vmul.f32 %v3959_v8, %v4920_v40  ;;  %3964 = vpow2.f32 %v3741_v9  ;;  %v1173_v12 = vpop.f32.mrf.mxu0  ;;  %vm1128_vm15 = vweird.f32 %v3959_v8  ;;  %vm1110_vm1 = vmor %vm1108_vm14, %vm1109_vm13  ;;  %vm1147_vm6 = vweird.f32 %v4929_v61 }
 0x1b5   :  { %v1186_v24 = vpop.f32.mrf.mxu1  ;;  %v1105_v10 = vsub.f32 1.0, %v1104_v60  ;;  %v1217_v48 = vadd.f32 %v1210_v4, %v368_v29  ;;  %3966 = vtanh.f32 %v1097_v6  ;;  %v1115_v4 = vor.u32 1.1754944e-38, %v1114_v17  ;;  %vm1129_vm3 = vmor %vm1127_vm0, %vm1128_vm15 }
 0x1b6   :  { %v1124_v49 = vsub.f32 1.0, %v1123_v62 }
 0x1b7   :  { %v1106_v56 = vmul.f32 %v3957_v51, %v1105_v10  ;;  %v3742_v22 = vmul.f32 -1.442695, %v1217_v48  ;;  %v3961_v21 = vpop.eup %3960 }
 0x1b8   :  { %v1125_v35 = vmul.f32 %v3959_v8, %v1124_v49  ;;  %v4941_v29 = vadd.f32 1.0, %v3961_v21 }
 0x1b9   :  { %v4938_v9 = vpop.eup %3962  ;;  %v1107_v60 = vadd.f32 %v3957_v51, %v1106_v56  ;;  %3968 = vpow2.f32 %v3742_v22 }
 0x1ba   :  { %v3965_v6 = vpop.eup %3964  ;;  %v1126_v62 = vadd.f32 %v3959_v8, %v1125_v35  ;;  %v1143_v12 = vmul.f32 %v4938_v9, %v4929_v61  ;;  %3970 = vrcp.f32 %v4941_v29  ;;  %vm1148_vm5 = vweird.f32 %v4938_v9 }
 0x1bb   :  { %v1111_v24 = vsel %vm1110_vm1, %v3957_v51, %v1107_v60  ;;  %v4947_v10 = vadd.f32 1.0, %v3965_v6  ;;  %v1199_v40 = vpop.f32.mrf.mxu2  ;;  %v3967_v48 = vpop.eup %3966  ;;  %v6273_v51 = vld [vmem:[#allocation20_spill] sm:$0xff]  ;;  %v6274_v60 = vld [vmem:[#allocation17_spill] sm:$0xff]  ;;  %vm4966_vm7 = vmor %vm1147_vm6, %vm1148_vm5  ;;  %vm1227_vm9 = vweird.f32 %v4941_v29 }
 0x1bc   :  { %v1212_v21 = vpop.f32.mrf.mxu3  ;;  %v1116_v49 = vsel %vm1113_vm2, %v1115_v4, %v1111_v24  ;;  %v1130_v56 = vsel %vm1129_vm3, %v3959_v8, %v1126_v62  ;;  %v1144_v11 = vsub.f32 1.0, %v1143_v12  ;;  %v339_v7 = vadd.f32 %v6274_v60, %v6273_v51 }
 0x1bd   :  { %v1135_v17 = vsel %vm1132_vm4, %v1134_v3, %v1130_v56  ;;  %v1158_v35 = vmul.f32 %v3967_v48, %v1116_v49  ;;  %3972 = vrcp.f32 %v4947_v10  ;;  %v1153_v8 = vand.u32 2147483648, %v4929_v61 }
 0x1be   :  { %v1157_v22 = vmul.f32 0.0, %v1135_v17  ;;  %v1145_v37 = vmul.f32 %v4938_v9, %v1144_v11  ;;  %v1216_v4 = vadd.f32 %v1197_v20, %v339_v7  ;;  %v1151_v3 = vand.u32 2147483647, %v4929_v61 }
 0x1bf   :  { %v3969_v38 = vpop.eup %3968  ;;  %v1233_v20 = vand.u32 2147483648, %v4941_v29  ;;  %v1154_v49 = vor.u32 1.1754944e-38, %v1153_v8  ;;  %v1231_v61 = vand.u32 2147483647, %v4941_v29  ;;  %v1252_v17 = vand.u32 2147483648, %v4947_v10 }
 0x1c0   :  { %v4953_v6 = vadd.f32 %v1158_v35, %v1157_v22  ;;  %v4955_v40 = vadd.f32 1.0, %v3969_v38  ;;  %v3971_v21 = vpop.eup %3970  ;;  %v1146_v5 = vadd.f32 %v4938_v9, %v1145_v37  ;;  %v1250_v35 = vand.u32 2147483647, %v4947_v10 }
 0x1c1   :  { %v1223_v62 = vmul.f32 %v3971_v21, %v4941_v29  ;;  %vm1228_vm8 = vweird.f32 %v3971_v21  ;;  %vm1152_vm10 = vcmp.eq.f32.partialorder %v1151_v3, 8.507059e+37  ;;  %vm1246_vm12 = vweird.f32 %v4947_v10 }
 0x1c2   :  { %3974 = vtanh.f32 %v4953_v6  ;;  %v1150_v48 = vsel %vm4966_vm7, %v4938_v9, %v1146_v5  ;;  %vm1229_vm13 = vmor %vm1227_vm9, %vm1228_vm8  ;;  %v1234_v9 = vor.u32 1.1754944e-38, %v1233_v20  ;;  %vm1232_vm14 = vcmp.eq.f32.partialorder %v1231_v61, 8.507059e+37 }
 0x1c3   :  { %v3973_v12 = vpop.eup %3972  ;;  %3976 = vrcp.f32 %v4955_v40  ;;  %v1224_v24 = vsub.f32 1.0, %v1223_v62  ;;  %v1253_v37 = vor.u32 1.1754944e-38, %v1252_v17  ;;  %vm1251_vm0 = vcmp.eq.f32.partialorder %v1250_v35, 8.507059e+37 }
 0x1c4   :  { %v1242_v7 = vmul.f32 %v3973_v12, %v4947_v10  ;;  %3978 = vtanh.f32 %v1216_v4  ;;  %vm1247_vm11 = vweird.f32 %v3973_v12  ;;  %v1155_v4 = vsel %vm1152_vm10, %v1154_v49, %v1150_v48 }
 0x1c5   :  { %v1225_v11 = vmul.f32 %v3971_v21, %v1224_v24  ;;  %vm1248_vm15 = vmor %vm1246_vm12, %vm1247_vm11  ;;  %v1272_v61 = vand.u32 2147483648, %v4955_v40  ;;  %vm1266_vm2 = vweird.f32 %v4955_v40 }
 0x1c6   :  { %v1243_v56 = vsub.f32 1.0, %v1242_v7 }
 0x1c7   :  { %v1226_v60 = vadd.f32 %v3971_v21, %v1225_v11  ;;  %v1273_v17 = vor.u32 1.1754944e-38, %v1272_v61  ;;  %v6295_v61 = vld [vmem:[#allocation54_spill] sm:$0xff] }
 0x1c8   :  { %v3975_v22 = vpop.eup %3974  ;;  %v1244_v38 = vmul.f32 %v3973_v12, %v1243_v56 }
 0x1c9   :  { %v3977_v62 = vpop.eup %3976  ;;  %v1161_v5 = vmul.f32 %v3975_v22, %v1155_v4  ;;  %v1230_v8 = vsel %vm1229_vm13, %v3971_v21, %v1226_v60  ;;  %v6277_v60 = vld [vmem:[#allocation27_spill] sm:$0xff]  ;;  %v6278_v4 = vld [vmem:[#allocation28_spill] sm:$0xff] }
 0x1ca   :  { %v1245_v24 = vadd.f32 %v3973_v12, %v1244_v38  ;;  %v1262_v7 = vmul.f32 %v3977_v62, %v4955_v40  ;;  %v3979_v29 = vpop.eup %3978  ;;  %v1235_v3 = vsel %vm1232_vm14, %v1234_v9, %v1230_v8  ;;  %vm1267_vm1 = vweird.f32 %v3977_v62  ;;  %v6280_v9 = vld [vmem:[#allocation30_spill] sm:$0xff]  ;;  %v6282_v8 = vld [vmem:[#allocation32_spill] sm:$0xff] }
 0x1cb   :  { %v1282_v51 = vpack.c.bf16 %v1161_v5, %v1161_v5  ;;  %v1277_v11 = vmul.f32 %v3979_v29, %v1235_v3  ;;  %vm1268_vm3 = vmor %vm1266_vm2, %vm1267_vm1  ;;  %v6281_v5 = vld [vmem:[#allocation31_spill] sm:$0xff]  ;;  %v6287_v3 = vld [vmem:[#allocation42_spill] sm:$0xff] }
 0x1cc   :  { %v1249_v56 = vsel %vm1248_vm15, %v3973_v12, %v1245_v24  ;;  %v1263_v48 = vsub.f32 1.0, %v1262_v7  ;;  %v6283_v24 = vld [vmem:[#allocation33_spill] sm:$0xff]  ;;  %v6284_v7 = vld [vmem:[#allocation36_spill] sm:$0xff]  ;;  %v6285_v29 = vld [vmem:[#allocation39_spill] sm:$0xff] }
 0x1cd   :  { %v1254_v49 = vsel %vm1251_vm0, %v1253_v37, %v1249_v56  ;;  %1291 = vmatmul.bf16.vlgmr.msrb.gmra.mxu0 %v1282_v51  ;;  %1304 = vmatmul.bf16.vlgmr.msra.gmra.mxu1 %v1282_v51  ;;  %v6286_v37 = vld [vmem:[#allocation41_spill] sm:$0xff]  ;;  %v6288_v56 = vld [vmem:[#allocation43_spill] sm:$0xff] }
 0x1ce   :  { %v1276_v10 = vmul.f32 %v1254_v49, %v4841_v25  ;;  %v1264_v20 = vmul.f32 %v3977_v62, %v1263_v48  ;;  %1317 = vmatmul.bf16.vlgmr.msrb.gmra.mxu2 %v1282_v51  ;;  %1330 = vmatmul.bf16.vlgmr.msrb.gmra.mxu3 %v1282_v51  ;;  %v1270_v25 = vand.u32 2147483647, %v4955_v40  ;;  %v6290_v48 = vld [vmem:[#allocation45_spill] sm:$0xff]  ;;  %v6291_v49 = vld [vmem:[#allocation46_spill] sm:$0xff] }
 0x1cf   :  { %1454 = vmatpush.bf16.msrb.mxu0 %v4367_v19  ;;  %1467 = vmatpush.bf16.msra.mxu1 %v4365_v18 }
 0x1d0   :  { %v4983_v21 = vadd.f32 %v1277_v11, %v1276_v10  ;;  %1480 = vmatpush.bf16.msrb.mxu2 %v4388_v36  ;;  %1493 = vmatpush.bf16.msrb.mxu3 %v4375_v26  ;;  %v1265_v12 = vadd.f32 %v3977_v62, %v1264_v20  ;;  %vm1271_vm4 = vcmp.eq.f32.partialorder %v1270_v25, 8.507059e+37  ;;  %v6289_v11 = vld [vmem:[#allocation44_spill] sm:$0xff]  ;;  %v6292_v10 = vld [vmem:[#allocation47_spill] sm:$0xff] }
 0x1d1   :  { %v6293_v20 = vld [vmem:[#allocation52_spill] sm:$0xff]  ;;  %v6296_v25 = vld [vmem:[#allocation55_spill] sm:$0xff] }
 0x1d2   :  { %3980 = vtanh.f32 %v4983_v21  ;;  %v1269_v51 = vsel %vm1268_vm3, %v3977_v62, %v1265_v12  ;;  %v6279_v62 = vld [vmem:[#allocation29_spill] sm:$0xff] }
 0x1d3   :  { %1455 = vmatpush.bf16.msrb.mxu0 %v4383_v30  ;;  %1468 = vmatpush.bf16.msra.mxu1 %v4380_v27  ;;  %v1274_v22 = vsel %vm1271_vm4, %v1273_v17, %v1269_v51  ;;  %v6294_v12 = vld [vmem:[#allocation53_spill] sm:$0xff]  ;;  %v6297_v51 = vld [vmem:[#allocation56_spill] sm:$0xff] }
 0x1d4   :  { %1481 = vmatpush.bf16.msrb.mxu2 %v4398_v44  ;;  %1494 = vmatpush.bf16.msrb.mxu3 %v4386_v32  ;;  %v6298_v17 = vld [vmem:[#allocation57_spill] sm:$0xff] }
 0x1d7   :  { %1456 = vmatpush.bf16.msrb.mxu0 %v4395_v43  ;;  %1469 = vmatpush.bf16.msra.mxu1 %v4392_v39 }
 0x1d8   :  { %v3981_v35 = vpop.eup %3980  ;;  %1482 = vmatpush.bf16.msrb.mxu2 %v4406_v54  ;;  %1495 = vmatpush.bf16.msrb.mxu3 %v4400_v50 }
 0x1d9   :  { %v1280_v40 = vmul.f32 %v3981_v35, %v1274_v22  ;;  %v6299_v35 = vld [vmem:[#allocation58_spill] sm:$0xff]  ;;  %v6300_v22 = vld [vmem:[#allocation60_spill] sm:$0xff] }
 0x1db   :  { %v1281_v38 = vpack.c.bf16 %v1280_v40, %v1280_v40  ;;  %1457 = vmatpush.bf16.msrb.mxu0 %v4409_v57  ;;  %1470 = vmatpush.bf16.msra.mxu1 %v4404_v53  ;;  %v6301_v40 = vld [vmem:[#allocation62_spill] sm:$0xff] }
 0x1dc   :  { %1483 = vmatpush.bf16.msrb.mxu2 %v4421_v0  ;;  %1496 = vmatpush.bf16.msrb.mxu3 %v4417_v63 }
 0x1dd   :  { %1343 = vmatmul.bf16.vlgmr.msra.gmra.mxu0 %v1281_v38  ;;  %1356 = vmatmul.bf16.vlgmr.msrb.gmra.mxu1 %v1281_v38 }
 0x1de   :  { %1369 = vmatmul.bf16.vlgmr.msra.gmra.mxu2 %v1281_v38  ;;  %1382 = vmatmul.bf16.vlgmr.msra.gmra.mxu3 %v1281_v38 }
 0x1df   :  { %1458 = vmatpush.bf16.msrb.mxu0 %v4424_v1  ;;  %1471 = vmatpush.bf16.msra.mxu1 %v4443_v16 }
 0x1e0   :  { %1484 = vmatpush.bf16.msrb.mxu2 %v4436_v13  ;;  %1497 = vmatpush.bf16.msrb.mxu3 %v4438_v14 }
 0x1e3   :  { %1459 = vmatpush.bf16.msrb.mxu0 %v4441_v15  ;;  %1472 = vmatpush.bf16.msra.mxu1 %v4449_v28 }
 0x1e4   :  { %1485 = vmatpush.bf16.msrb.mxu2 %v4452_v33  ;;  %1498 = vmatpush.bf16.msrb.mxu3 %v4446_v23 }
 0x1e7   :  { %1460 = vmatpush.bf16.msrb.mxu0 %v4455_v34  ;;  %1473 = vmatpush.bf16.msra.mxu1 %v4482_v59 }
 0x1e8   :  { %1486 = vmatpush.bf16.msrb.mxu2 %v4462_v42  ;;  %1499 = vmatpush.bf16.msrb.mxu3 %v4458_v41 }
 0x1eb   :  { %1461 = vmatpush.bf16.msrb.mxu0 %v4465_v47  ;;  %1474 = vmatpush.bf16.msra.mxu1 %v4487_v2 }
 0x1ec   :  { %1487 = vmatpush.bf16.msrb.mxu2 %v4474_v55  ;;  %1500 = vmatpush.bf16.msrb.mxu3 %v4471_v52 }
 0x1ee   :  { %1462 = vmatmul.bf16.vlgmr.msrb.gmra.mxu0 %v1281_v38  ;;  %1475 = vmatmul.bf16.vlgmr.msra.gmra.mxu1 %v1281_v38 }
 0x1ef   :  { %1575 = vmatpush.bf16.msra.mxu0 %v4531_v31  ;;  %1588 = vmatpush.bf16.msrb.mxu1 %v4536_v45 }
 0x1f0   :  { %1488 = vmatmul.bf16.vlgmr.msrb.gmra.mxu2 %v1281_v38  ;;  %1501 = vmatmul.bf16.vlgmr.msrb.gmra.mxu3 %v1281_v38  ;;  %v6302_v38 = vld [vmem:[#allocation64_spill] sm:$0xff] }
 0x1f1   :  { %1601 = vmatpush.bf16.msra.mxu2 %v4538_v46  ;;  %1614 = vmatpush.bf16.msra.mxu3 %v4544_v58 }
 0x1f3   :  { %1576 = vmatpush.bf16.msra.mxu0 %v6277_v60  ;;  %1589 = vmatpush.bf16.msrb.mxu1 %v6278_v4 }
 0x1f5   :  { %1602 = vmatpush.bf16.msra.mxu2 %v6279_v62  ;;  %1615 = vmatpush.bf16.msra.mxu3 %v6280_v9 }
 0x1f7   :  { %1577 = vmatpush.bf16.msra.mxu0 %v6281_v5  ;;  %1590 = vmatpush.bf16.msrb.mxu1 %v6282_v8 }
 0x1f9   :  { %1603 = vmatpush.bf16.msra.mxu2 %v6283_v24  ;;  %1616 = vmatpush.bf16.msra.mxu3 %v6284_v7 }
 0x1fb   :  { %1578 = vmatpush.bf16.msra.mxu0 %v6285_v29  ;;  %1591 = vmatpush.bf16.msrb.mxu1 %v6286_v37  ;;  %v6337_v37 = vld [vmem:[#allocation106_spill] sm:$0xff]  ;;  %v6338_v29 = vld [vmem:[#allocation107_spill] sm:$0xff] }
 0x1fd   :  { %1604 = vmatpush.bf16.msra.mxu2 %v6287_v3  ;;  %1617 = vmatpush.bf16.msra.mxu3 %v6288_v56 }
 0x1ff   :  { %1579 = vmatpush.bf16.msra.mxu0 %v6289_v11  ;;  %1592 = vmatpush.bf16.msrb.mxu1 %v6290_v48 }
 0x201   :  { %1605 = vmatpush.bf16.msra.mxu2 %v6291_v49  ;;  %1618 = vmatpush.bf16.msra.mxu3 %v6292_v10  ;;  %v6303_v10 = vld [vmem:[#allocation67_spill] sm:$0xff] }
 0x203   :  { %1580 = vmatpush.bf16.msra.mxu0 %v6293_v20  ;;  %1593 = vmatpush.bf16.msrb.mxu1 %v6294_v12  ;;  %v6304_v20 = vld [vmem:[#allocation68_spill] sm:$0xff]  ;;  %v6305_v12 = vld [vmem:[#allocation65_spill] sm:$0xff] }
 0x205   :  { %1606 = vmatpush.bf16.msra.mxu2 %v6295_v61  ;;  %1619 = vmatpush.bf16.msra.mxu3 %v6296_v25  ;;  %v6306_v61 = vld [vmem:[#allocation66_spill] sm:$0xff]  ;;  %v6307_v25 = vld [vmem:[#allocation69_spill] sm:$0xff] }
 0x207   :  { %1581 = vmatpush.bf16.msra.mxu0 %v6297_v51  ;;  %1594 = vmatpush.bf16.msrb.mxu1 %v6298_v17  ;;  %v6308_v51 = vld [vmem:[#allocation70_spill] sm:$0xff]  ;;  %v6309_v17 = vld [vmem:[#allocation71_spill] sm:$0xff] }
 0x209   :  { %1607 = vmatpush.bf16.msra.mxu2 %v6299_v35  ;;  %1620 = vmatpush.bf16.msra.mxu3 %v6300_v22  ;;  %v6310_v35 = vld [vmem:[#allocation72_spill] sm:$0xff]  ;;  %v6311_v22 = vld [vmem:[#allocation74_spill] sm:$0xff] }
 0x20b   :  { %1582 = vmatpush.bf16.msra.mxu0 %v6301_v40  ;;  %1595 = vmatpush.bf16.msrb.mxu1 %v6302_v38  ;;  %v6312_v40 = vld [vmem:[#allocation77_spill] sm:$0xff]  ;;  %v6313_v38 = vld [vmem:[#allocation78_spill] sm:$0xff] }
 0x20d   :  { %1608 = vmatpush.bf16.msra.mxu2 %v6305_v12  ;;  %1621 = vmatpush.bf16.msra.mxu3 %v6306_v61  ;;  %v6316_v12 = vld [vmem:[#allocation81_spill] sm:$0xff]  ;;  %v6317_v61 = vld [vmem:[#allocation83_spill] sm:$0xff] }
 0x20f   :  { %1627 = vmatpush.bf16.msrb.mxu0 %v6303_v10  ;;  %1640 = vmatpush.bf16.msra.mxu1 %v6304_v20  ;;  %v6314_v10 = vld [vmem:[#allocation79_spill] sm:$0xff]  ;;  %v6315_v20 = vld [vmem:[#allocation80_spill] sm:$0xff] }
 0x211   :  { %1653 = vmatpush.bf16.msrb.mxu2 %v6307_v25  ;;  %1666 = vmatpush.bf16.msrb.mxu3 %v6308_v51  ;;  %v6318_v25 = vld [vmem:[#allocation84_spill] sm:$0xff]  ;;  %v6319_v51 = vld [vmem:[#allocation86_spill] sm:$0xff] }
 0x213   :  { %1628 = vmatpush.bf16.msrb.mxu0 %v6309_v17  ;;  %1641 = vmatpush.bf16.msra.mxu1 %v6310_v35  ;;  %v6320_v17 = vld [vmem:[#allocation87_spill] sm:$0xff]  ;;  %v6321_v35 = vld [vmem:[#allocation89_spill] sm:$0xff] }
 0x215   :  { %1654 = vmatpush.bf16.msrb.mxu2 %v6311_v22  ;;  %1667 = vmatpush.bf16.msrb.mxu3 %v6312_v40  ;;  %v6322_v22 = vld [vmem:[#allocation90_spill] sm:$0xff]  ;;  %v6323_v40 = vld [vmem:[#allocation91_spill] sm:$0xff] }
 0x217   :  { %1629 = vmatpush.bf16.msrb.mxu0 %v6313_v38  ;;  %1642 = vmatpush.bf16.msra.mxu1 %v6314_v10  ;;  %v6324_v38 = vld [vmem:[#allocation92_spill] sm:$0xff]  ;;  %v6325_v10 = vld [vmem:[#allocation93_spill] sm:$0xff] }
 0x219   :  { %1655 = vmatpush.bf16.msrb.mxu2 %v6315_v20  ;;  %1668 = vmatpush.bf16.msrb.mxu3 %v6316_v12  ;;  %v6326_v20 = vld [vmem:[#allocation94_spill] sm:$0xff]  ;;  %v6327_v12 = vld [vmem:[#allocation95_spill] sm:$0xff] }
 0x21b   :  { %1630 = vmatpush.bf16.msrb.mxu0 %v6317_v61  ;;  %1643 = vmatpush.bf16.msra.mxu1 %v6318_v25  ;;  %v6328_v61 = vld [vmem:[#allocation97_spill] sm:$0xff]  ;;  %v6329_v25 = vld [vmem:[#allocation98_spill] sm:$0xff] }
 0x21d   :  { %1656 = vmatpush.bf16.msrb.mxu2 %v6319_v51  ;;  %1669 = vmatpush.bf16.msrb.mxu3 %v6320_v17  ;;  %v6330_v51 = vld [vmem:[#allocation99_spill] sm:$0xff]  ;;  %v6331_v17 = vld [vmem:[#allocation100_spill] sm:$0xff] }
 0x21f   :  { %1631 = vmatpush.bf16.msrb.mxu0 %v6321_v35  ;;  %1644 = vmatpush.bf16.msra.mxu1 %v6322_v22  ;;  %v6332_v35 = vld [vmem:[#allocation101_spill] sm:$0xff]  ;;  %v6333_v22 = vld [vmem:[#allocation102_spill] sm:$0xff] }
 0x221   :  { %1657 = vmatpush.bf16.msrb.mxu2 %v6323_v40  ;;  %1670 = vmatpush.bf16.msrb.mxu3 %v6324_v38  ;;  %v6334_v40 = vld [vmem:[#allocation103_spill] sm:$0xff]  ;;  %v6335_v38 = vld [vmem:[#allocation104_spill] sm:$0xff] }
 0x223   :  { %1632 = vmatpush.bf16.msrb.mxu0 %v6325_v10  ;;  %1645 = vmatpush.bf16.msra.mxu1 %v6326_v20  ;;  %v6336_v10 = vld [vmem:[#allocation105_spill] sm:$0xff] }
 0x225   :  { %1658 = vmatpush.bf16.msrb.mxu2 %v6327_v12  ;;  %1671 = vmatpush.bf16.msrb.mxu3 %v6328_v61 }
 0x227   :  { %1633 = vmatpush.bf16.msrb.mxu0 %v6329_v25  ;;  %1646 = vmatpush.bf16.msra.mxu1 %v6330_v51 }
 0x229   :  { %1659 = vmatpush.bf16.msrb.mxu2 %v6331_v17  ;;  %1672 = vmatpush.bf16.msrb.mxu3 %v6332_v35 }
 0x22b   :  { %1634 = vmatpush.bf16.msrb.mxu0 %v6333_v22  ;;  %1647 = vmatpush.bf16.msra.mxu1 %v6334_v40 }
 0x22d   :  { %1660 = vmatpush.bf16.msrb.mxu2 %v6335_v38  ;;  %1673 = vmatpush.bf16.msrb.mxu3 %v6336_v10 }
 0x24a   :  { %v1292_v20 = vpop.f32.mrf.mxu0  ;;  %v1305_v12 = vpop.f32.mrf.mxu1 }
 0x251   :  { %v1318_v49 = vpop.f32.mrf.mxu2  ;;  %v1331_v61 = vpop.f32.mrf.mxu3 }
 0x252   :  { %v1294_v48 = vpop.f32.mrf.mxu0  ;;  %v1307_v25 = vpop.f32.mrf.mxu1 }
 0x253   :  { %v6339_v25 = vld [vmem:[#allocation108_spill] sm:$0xff] }
 0x259   :  { %v1320_v11 = vpop.f32.mrf.mxu2  ;;  %v1333_v51 = vpop.f32.mrf.mxu3 }
 0x25a   :  { %v1344_v56 = vpop.f32.mrf.mxu0  ;;  %v1357_v17 = vpop.f32.mrf.mxu1 }
 0x25b   :  { %v1345_v3 = vadd.f32 %v1344_v56, %v1292_v20  ;;  %v1358_v35 = vadd.f32 %v1357_v17, %v1305_v12 }
 0x25d   :  { %v1387_v22 = vadd.f32 %v1345_v3, %v6337_v37  ;;  %v1388_v40 = vadd.f32 %v1358_v35, %v6338_v29 }
 0x25f   :  { %v3743_v7 = vmul.f32 -1.442695, %v1387_v22  ;;  %v3744_v38 = vmul.f32 -1.442695, %v1388_v40  ;;  %v6340_v22 = vld [vmem:[#allocation19_spill] sm:$0xff] }
 0x261   :  { %3982 = vpow2.f32 %v3743_v7  ;;  %v1370_v10 = vpop.f32.mrf.mxu2  ;;  %v1383_v24 = vpop.f32.mrf.mxu3 }
 0x262   :  { %3984 = vpow2.f32 %v3744_v38  ;;  %v1384_v8 = vadd.f32 %v1383_v24, %v1331_v61  ;;  %v1346_v5 = vpop.f32.mrf.mxu0  ;;  %v1359_v48 = vpop.f32.mrf.mxu1  ;;  %v1371_v35 = vadd.f32 %v1370_v10, %v1318_v49  ;;  %v6341_v24 = vld [vmem:[#allocation40_spill] sm:$0xff] }
 0x264   :  { %v1390_v11 = vadd.f32 %v1384_v8, %v6339_v25 }
 0x266   :  { %v3745_v51 = vmul.f32 -1.442695, %v1390_v11 }
 0x267   :  { %v3983_v9 = vpop.eup %3982 }
 0x268   :  { %v3985_v62 = vpop.eup %3984  ;;  %v1394_v56 = vadd.f32 1.0, %v3983_v9  ;;  %3986 = vpow2.f32 %v3745_v51  ;;  %v6342_v9 = vld [vmem:[#allocation15_spill] sm:$0xff] }
 0x269   :  { %v1413_v20 = vadd.f32 1.0, %v3985_v62  ;;  %v1372_v3 = vpop.f32.mrf.mxu2  ;;  %v1385_v12 = vpop.f32.mrf.mxu3  ;;  %v1389_v51 = vadd.f32 %v1371_v35, %v6342_v9 }
 0x26a   :  { %3988 = vrcp.f32 %v1394_v56  ;;  %v1406_v25 = vand.u32 2147483648, %v1394_v56  ;;  %vm1400_vm7 = vweird.f32 %v1394_v56 }
 0x26b   :  { %3990 = vrcp.f32 %v1413_v20  ;;  %v1463_v17 = vpop.f32.mrf.mxu0  ;;  %v1476_v7 = vpop.f32.mrf.mxu1  ;;  %v1425_v29 = vand.u32 2147483648, %v1413_v20  ;;  %vm1419_vm8 = vweird.f32 %v1413_v20 }
 0x26c   :  { %v1506_v40 = vadd.f32 %v1463_v17, %v6340_v22  ;;  %v1507_v5 = vadd.f32 %v1476_v7, %v6341_v24  ;;  %v6343_v22 = vld [vmem:[#allocation25_spill] sm:$0xff] }
 0x26e   :  { %v3987_v61 = vpop.eup %3986  ;;  %v3746_v38 = vmul.f32 -1.442695, %v1506_v40  ;;  %v3747_v8 = vmul.f32 -1.442695, %v1507_v5 }
 0x26f   :  { %v5088_v48 = vadd.f32 1.0, %v3987_v61  ;;  %v1404_v61 = vand.u32 2147483647, %v1394_v56 }
 0x270   :  { %v3989_v11 = vpop.eup %3988  ;;  %3992 = vpow2.f32 %v3746_v38 }
 0x271   :  { %v3991_v62 = vpop.eup %3990  ;;  %v1396_v3 = vmul.f32 %v3989_v11, %v1394_v56  ;;  %3994 = vrcp.f32 %v5088_v48  ;;  %vm1401_vm5 = vweird.f32 %v3989_v11  ;;  %vm1405_vm10 = vcmp.eq.f32.partialorder %v1404_v61, 8.507059e+37 }
 0x272   :  { %v1415_v12 = vmul.f32 %v3991_v62, %v1413_v20  ;;  %3996 = vpow2.f32 %v3747_v8  ;;  %vm1420_vm6 = vweird.f32 %v3991_v62  ;;  %v1423_v8 = vand.u32 2147483647, %v1413_v20  ;;  %vm1402_vm9 = vmor %vm1400_vm7, %vm1401_vm5 }
 0x273   :  { %v1489_v49 = vpop.f32.mrf.mxu2  ;;  %v1502_v10 = vpop.f32.mrf.mxu3  ;;  %v1397_v17 = vsub.f32 1.0, %v1396_v3  ;;  %3998 = vtanh.f32 %v1389_v51  ;;  %v1407_v51 = vor.u32 1.1754944e-38, %v1406_v25  ;;  %vm1421_vm11 = vmor %vm1419_vm8, %vm1420_vm6  ;;  %vm1439_vm14 = vweird.f32 %v5088_v48 }
 0x274   :  { %v1509_v7 = vadd.f32 %v1502_v10, %v6343_v22  ;;  %v1465_v24 = vpop.f32.mrf.mxu0  ;;  %v1478_v40 = vpop.f32.mrf.mxu1  ;;  %v1416_v5 = vsub.f32 1.0, %v1415_v12  ;;  %vm1424_vm12 = vcmp.eq.f32.partialorder %v1423_v8, 8.507059e+37 }
 0x275   :  { %v1398_v35 = vmul.f32 %v3989_v11, %v1397_v17 }
 0x276   :  { %v3748_v38 = vmul.f32 -1.442695, %v1509_v7  ;;  %v3993_v9 = vpop.eup %3992  ;;  %v1417_v37 = vmul.f32 %v3991_v62, %v1416_v5  ;;  %v1426_v7 = vor.u32 1.1754944e-38, %v1425_v29 }
 0x277   :  { %v5093_v4 = vpop.eup %3994  ;;  %v1399_v3 = vadd.f32 %v3989_v11, %v1398_v35  ;;  %v5095_v10 = vadd.f32 1.0, %v3993_v9 }
 0x278   :  { %4000 = vpow2.f32 %v3748_v38  ;;  %v3997_v12 = vpop.eup %3996  ;;  %v1418_v22 = vadd.f32 %v3991_v62, %v1417_v37  ;;  %v1435_v17 = vmul.f32 %v5093_v4, %v5088_v48  ;;  %vm1440_vm13 = vweird.f32 %v5093_v4 }
 0x279   :  { %v1403_v24 = vsel %vm1402_vm9, %v3989_v11, %v1399_v3  ;;  %4002 = vrcp.f32 %v5095_v10  ;;  %v5100_v56 = vadd.f32 1.0, %v3997_v12  ;;  %v3999_v20 = vpop.eup %3998  ;;  %vm5119_vm15 = vmor %vm1439_vm14, %vm1440_vm13  ;;  %vm1519_vm1 = vweird.f32 %v5095_v10 }
 0x27a   :  { %v1408_v40 = vsel %vm1405_vm10, %v1407_v51, %v1403_v24  ;;  %v1422_v9 = vsel %vm1421_vm11, %v3991_v62, %v1418_v22  ;;  %v1436_v5 = vsub.f32 1.0, %v1435_v17  ;;  %v6344_v51 = vld [vmem:[#allocation23_spill] sm:$0xff]  ;;  %v1445_v22 = vand.u32 2147483648, %v5088_v48 }
 0x27b   :  { %v1491_v35 = vpop.f32.mrf.mxu2  ;;  %v1504_v38 = vpop.f32.mrf.mxu3  ;;  %v1427_v61 = vsel %vm1424_vm12, %v1426_v7, %v1422_v9  ;;  %v1450_v25 = vmul.f32 %v3999_v20, %v1408_v40  ;;  %4004 = vrcp.f32 %v5100_v56  ;;  %v1508_v62 = vadd.f32 %v1489_v49, %v6344_v51 }
 0x27c   :  { %v1449_v37 = vmul.f32 %v1427_v61, %v4953_v6  ;;  %v1437_v29 = vmul.f32 %v5093_v4, %v1436_v5  ;;  %v1525_v20 = vand.u32 2147483648, %v5095_v10  ;;  %v1446_v9 = vor.u32 1.1754944e-38, %v1445_v22 }
 0x27d   :  { %v1544_v38 = vand.u32 2147483648, %v5100_v56  ;;  %v1542_v61 = vand.u32 2147483647, %v5100_v56  ;;  %vm1538_vm4 = vweird.f32 %v5100_v56 }
 0x27e   :  { %v4001_v60 = vpop.eup %4000  ;;  %v5105_v11 = vadd.f32 %v1450_v25, %v1449_v37  ;;  %v1438_v8 = vadd.f32 %v5093_v4, %v1437_v29 }
 0x27f   :  { %v5107_v3 = vadd.f32 1.0, %v4001_v60  ;;  %v4003_v12 = vpop.eup %4002  ;;  %v1443_v60 = vand.u32 2147483647, %v5088_v48  ;;  %v1523_v48 = vand.u32 2147483647, %v5095_v10  ;;  %vm1543_vm8 = vcmp.eq.f32.partialorder %v1542_v61, 8.507059e+37 }
 0x280   :  { %4006 = vtanh.f32 %v5105_v11  ;;  %v1515_v6 = vmul.f32 %v4003_v12, %v5095_v10  ;;  %v1442_v40 = vsel %vm5119_vm15, %v5093_v4, %v1438_v8  ;;  %vm1520_vm0 = vweird.f32 %v4003_v12 }
 0x281   :  { %v4005_v17 = vpop.eup %4004  ;;  %4008 = vrcp.f32 %v5107_v3  ;;  %vm1444_vm2 = vcmp.eq.f32.partialorder %v1443_v60, 8.507059e+37  ;;  %vm1521_vm5 = vmor %vm1519_vm1, %vm1520_vm0  ;;  %v1526_v4 = vor.u32 1.1754944e-38, %v1525_v20  ;;  %vm1524_vm6 = vcmp.eq.f32.partialorder %v1523_v48, 8.507059e+37 }
 0x282   :  { %v1516_v7 = vsub.f32 1.0, %v1515_v6  ;;  %v1534_v49 = vmul.f32 %v4005_v17, %v5100_v56  ;;  %4010 = vtanh.f32 %v1508_v62  ;;  %vm1539_vm3 = vweird.f32 %v4005_v17 }
 0x283   :  { %v1447_v51 = vsel %vm1444_vm2, %v1446_v9, %v1442_v40  ;;  %vm1540_vm7 = vmor %vm1538_vm4, %vm1539_vm3  ;;  %v1564_v48 = vand.u32 2147483648, %v5107_v3  ;;  %vm1558_vm10 = vweird.f32 %v5107_v3 }
 0x284   :  { %v1535_v5 = vsub.f32 1.0, %v1534_v49  ;;  %v1517_v35 = vmul.f32 %v4003_v12, %v1516_v7  ;;  %v1545_v49 = vor.u32 1.1754944e-38, %v1544_v38 }
 0x285   :  { %v1565_v61 = vor.u32 1.1754944e-38, %v1564_v48  ;;  %v6365_v48 = vld [vmem:[#allocation54_spill] sm:$0xff] }
 0x286   :  { %v4007_v25 = vpop.eup %4006  ;;  %v1536_v37 = vmul.f32 %v4005_v17, %v1535_v5  ;;  %v1518_v29 = vadd.f32 %v4003_v12, %v1517_v35 }
 0x287   :  { %v4009_v62 = vpop.eup %4008  ;;  %v1453_v8 = vmul.f32 %v4007_v25, %v1447_v51  ;;  %v6347_v51 = vld [vmem:[#allocation27_spill] sm:$0xff] }
 0x288   :  { %v1522_v22 = vsel %vm1521_vm5, %v4003_v12, %v1518_v29  ;;  %v1537_v6 = vadd.f32 %v4005_v17, %v1536_v37  ;;  %v1554_v7 = vmul.f32 %v4009_v62, %v5107_v3  ;;  %v4011_v10 = vpop.eup %4010  ;;  %vm1559_vm9 = vweird.f32 %v4009_v62 }
 0x289   :  { %v1527_v60 = vsel %vm1524_vm6, %v1526_v4, %v1522_v22  ;;  %v1574_v24 = vpack.c.bf16 %v1453_v8, %v1453_v8  ;;  %vm1560_vm11 = vmor %vm1558_vm10, %vm1559_vm9  ;;  %v6349_v4 = vld [vmem:[#allocation29_spill] sm:$0xff]  ;;  %v6350_v8 = vld [vmem:[#allocation30_spill] sm:$0xff] }
 0x28a   :  { %v1541_v5 = vsel %vm1540_vm7, %v4005_v17, %v1537_v6  ;;  %v1569_v35 = vmul.f32 %v4011_v10, %v1527_v60  ;;  %v1555_v40 = vsub.f32 1.0, %v1554_v7  ;;  %v6351_v22 = vld [vmem:[#allocation31_spill] sm:$0xff]  ;;  %v6352_v6 = vld [vmem:[#allocation32_spill] sm:$0xff]  ;;  %v6353_v7 = vld [vmem:[#allocation33_spill] sm:$0xff] }
 0x28b   :  { %v1546_v9 = vsel %vm1543_vm8, %v1545_v49, %v1541_v5  ;;  %1583 = vmatmul.bf16.vlgmr.msra.gmra.mxu0 %v1574_v24  ;;  %1596 = vmatmul.bf16.vlgmr.msrb.gmra.mxu1 %v1574_v24  ;;  %v6354_v10 = vld [vmem:[#allocation36_spill] sm:$0xff]  ;;  %v6355_v49 = vld [vmem:[#allocation39_spill] sm:$0xff]  ;;  %v6356_v60 = vld [vmem:[#allocation41_spill] sm:$0xff] }
 0x28c   :  { %v1568_v56 = vmul.f32 %v1546_v9, %v4983_v21  ;;  %v1556_v20 = vmul.f32 %v4009_v62, %v1555_v40  ;;  %1609 = vmatmul.bf16.vlgmr.msra.gmra.mxu2 %v1574_v24  ;;  %1622 = vmatmul.bf16.vlgmr.msra.gmra.mxu3 %v1574_v24  ;;  %v1562_v21 = vand.u32 2147483647, %v5107_v3  ;;  %v6357_v24 = vld [vmem:[#allocation42_spill] sm:$0xff]  ;;  %v6358_v5 = vld [vmem:[#allocation43_spill] sm:$0xff]  ;;  %v6360_v40 = vld [vmem:[#allocation45_spill] sm:$0xff] }
 0x28d   :  { %1746 = vmatpush.bf16.msra.mxu0 %v4367_v19  ;;  %1759 = vmatpush.bf16.msrb.mxu1 %v4365_v18  ;;  %v6361_v9 = vld [vmem:[#allocation46_spill] sm:$0xff] }
 0x28e   :  { %v5136_v12 = vadd.f32 %v1569_v35, %v1568_v56  ;;  %1772 = vmatpush.bf16.msra.mxu2 %v4388_v36  ;;  %1785 = vmatpush.bf16.msra.mxu3 %v4375_v26  ;;  %v1557_v17 = vadd.f32 %v4009_v62, %v1556_v20  ;;  %vm1563_vm12 = vcmp.eq.f32.partialorder %v1562_v21, 8.507059e+37  ;;  %v6359_v35 = vld [vmem:[#allocation44_spill] sm:$0xff]  ;;  %v6362_v56 = vld [vmem:[#allocation47_spill] sm:$0xff] }
 0x28f   :  { %v6363_v20 = vld [vmem:[#allocation52_spill] sm:$0xff]  ;;  %v6366_v21 = vld [vmem:[#allocation55_spill] sm:$0xff] }
 0x290   :  { %4012 = vtanh.f32 %v5136_v12  ;;  %v1561_v38 = vsel %vm1560_vm11, %v4009_v62, %v1557_v17  ;;  %v6348_v62 = vld [vmem:[#allocation28_spill] sm:$0xff]  ;;  %v6364_v17 = vld [vmem:[#allocation53_spill] sm:$0xff] }
 0x291   :  { %1747 = vmatpush.bf16.msra.mxu0 %v4383_v30  ;;  %1760 = vmatpush.bf16.msrb.mxu1 %v4380_v27  ;;  %v1566_v37 = vsel %vm1563_vm12, %v1565_v61, %v1561_v38  ;;  %v6367_v38 = vld [vmem:[#allocation56_spill] sm:$0xff]  ;;  %v6368_v61 = vld [vmem:[#allocation57_spill] sm:$0xff] }
 0x292   :  { %1773 = vmatpush.bf16.msra.mxu2 %v4398_v44  ;;  %1786 = vmatpush.bf16.msra.mxu3 %v4386_v32 }
 0x295   :  { %1748 = vmatpush.bf16.msra.mxu0 %v4395_v43  ;;  %1761 = vmatpush.bf16.msrb.mxu1 %v4392_v39 }
 0x296   :  { %v4013_v25 = vpop.eup %4012  ;;  %1774 = vmatpush.bf16.msra.mxu2 %v4406_v54  ;;  %1787 = vmatpush.bf16.msra.mxu3 %v4400_v50 }
 0x297   :  { %v1572_v3 = vmul.f32 %v4013_v25, %v1566_v37  ;;  %v6369_v25 = vld [vmem:[#allocation58_spill] sm:$0xff]  ;;  %v6370_v37 = vld [vmem:[#allocation60_spill] sm:$0xff] }
 0x299   :  { %v1573_v29 = vpack.c.bf16 %v1572_v3, %v1572_v3  ;;  %1749 = vmatpush.bf16.msra.mxu0 %v4409_v57  ;;  %1762 = vmatpush.bf16.msrb.mxu1 %v4404_v53  ;;  %v6371_v3 = vld [vmem:[#allocation62_spill] sm:$0xff] }
 0x29a   :  { %1775 = vmatpush.bf16.msra.mxu2 %v4421_v0  ;;  %1788 = vmatpush.bf16.msra.mxu3 %v4417_v63 }
 0x29b   :  { %1635 = vmatmul.bf16.vlgmr.msrb.gmra.mxu0 %v1573_v29  ;;  %1648 = vmatmul.bf16.vlgmr.msra.gmra.mxu1 %v1573_v29 }
 0x29c   :  { %1661 = vmatmul.bf16.vlgmr.msrb.gmra.mxu2 %v1573_v29  ;;  %1674 = vmatmul.bf16.vlgmr.msrb.gmra.mxu3 %v1573_v29 }
 0x29d   :  { %1750 = vmatpush.bf16.msra.mxu0 %v4424_v1  ;;  %1763 = vmatpush.bf16.msrb.mxu1 %v4443_v16 }
 0x29e   :  { %1776 = vmatpush.bf16.msra.mxu2 %v4436_v13  ;;  %1789 = vmatpush.bf16.msra.mxu3 %v4438_v14 }
 0x2a1   :  { %1751 = vmatpush.bf16.msra.mxu0 %v4441_v15  ;;  %1764 = vmatpush.bf16.msrb.mxu1 %v4449_v28 }
 0x2a2   :  { %1777 = vmatpush.bf16.msra.mxu2 %v4452_v33  ;;  %1790 = vmatpush.bf16.msra.mxu3 %v4446_v23 }
 0x2a5   :  { %1752 = vmatpush.bf16.msra.mxu0 %v4455_v34  ;;  %1765 = vmatpush.bf16.msrb.mxu1 %v4482_v59 }
 0x2a6   :  { %1778 = vmatpush.bf16.msra.mxu2 %v4462_v42  ;;  %1791 = vmatpush.bf16.msra.mxu3 %v4458_v41 }
 0x2a9   :  { %1753 = vmatpush.bf16.msra.mxu0 %v4465_v47  ;;  %1766 = vmatpush.bf16.msrb.mxu1 %v4487_v2 }
 0x2aa   :  { %1779 = vmatpush.bf16.msra.mxu2 %v4474_v55  ;;  %1792 = vmatpush.bf16.msra.mxu3 %v4471_v52 }
 0x2ac   :  { %1754 = vmatmul.bf16.vlgmr.msra.gmra.mxu0 %v1573_v29  ;;  %1767 = vmatmul.bf16.vlgmr.msrb.gmra.mxu1 %v1573_v29 }
 0x2ad   :  { %1867 = vmatpush.bf16.msrb.mxu0 %v4531_v31  ;;  %1880 = vmatpush.bf16.msra.mxu1 %v4536_v45 }
 0x2ae   :  { %1780 = vmatmul.bf16.vlgmr.msra.gmra.mxu2 %v1573_v29  ;;  %1793 = vmatmul.bf16.vlgmr.msra.gmra.mxu3 %v1573_v29  ;;  %v6372_v29 = vld [vmem:[#allocation64_spill] sm:$0xff] }
 0x2af   :  { %1893 = vmatpush.bf16.msrb.mxu2 %v4538_v46  ;;  %1906 = vmatpush.bf16.msrb.mxu3 %v4544_v58 }
 0x2b1   :  { %1868 = vmatpush.bf16.msrb.mxu0 %v6347_v51  ;;  %1881 = vmatpush.bf16.msra.mxu1 %v6348_v62  ;;  %v6418_v51 = vld [vmem:[#allocation35_spill] sm:$0xff] }
 0x2b3   :  { %1894 = vmatpush.bf16.msrb.mxu2 %v6349_v4  ;;  %1907 = vmatpush.bf16.msrb.mxu3 %v6350_v8 }
 0x2b5   :  { %1869 = vmatpush.bf16.msrb.mxu0 %v6351_v22  ;;  %1882 = vmatpush.bf16.msra.mxu1 %v6352_v6 }
 0x2b7   :  { %1895 = vmatpush.bf16.msrb.mxu2 %v6353_v7  ;;  %1908 = vmatpush.bf16.msrb.mxu3 %v6354_v10 }
 0x2b9   :  { %1870 = vmatpush.bf16.msrb.mxu0 %v6355_v49  ;;  %1883 = vmatpush.bf16.msra.mxu1 %v6356_v60  ;;  %v6407_v60 = vld [vmem:[#allocation106_spill] sm:$0xff]  ;;  %v6408_v49 = vld [vmem:[#allocation107_spill] sm:$0xff] }
 0x2bb   :  { %1896 = vmatpush.bf16.msrb.mxu2 %v6357_v24  ;;  %1909 = vmatpush.bf16.msrb.mxu3 %v6358_v5 }
 0x2bd   :  { %1871 = vmatpush.bf16.msrb.mxu0 %v6359_v35  ;;  %1884 = vmatpush.bf16.msra.mxu1 %v6360_v40 }
 0x2bf   :  { %1897 = vmatpush.bf16.msrb.mxu2 %v6361_v9  ;;  %1910 = vmatpush.bf16.msrb.mxu3 %v6362_v56  ;;  %v6373_v56 = vld [vmem:[#allocation67_spill] sm:$0xff] }
 0x2c1   :  { %1872 = vmatpush.bf16.msrb.mxu0 %v6363_v20  ;;  %1885 = vmatpush.bf16.msra.mxu1 %v6364_v17  ;;  %v6374_v20 = vld [vmem:[#allocation68_spill] sm:$0xff]  ;;  %v6375_v17 = vld [vmem:[#allocation65_spill] sm:$0xff] }
 0x2c3   :  { %1898 = vmatpush.bf16.msrb.mxu2 %v6365_v48  ;;  %1911 = vmatpush.bf16.msrb.mxu3 %v6366_v21  ;;  %v6376_v48 = vld [vmem:[#allocation66_spill] sm:$0xff]  ;;  %v6377_v21 = vld [vmem:[#allocation69_spill] sm:$0xff] }
 0x2c5   :  { %1873 = vmatpush.bf16.msrb.mxu0 %v6367_v38  ;;  %1886 = vmatpush.bf16.msra.mxu1 %v6368_v61  ;;  %v6378_v38 = vld [vmem:[#allocation70_spill] sm:$0xff]  ;;  %v6379_v61 = vld [vmem:[#allocation71_spill] sm:$0xff] }
 0x2c7   :  { %1899 = vmatpush.bf16.msrb.mxu2 %v6369_v25  ;;  %1912 = vmatpush.bf16.msrb.mxu3 %v6370_v37  ;;  %v6380_v25 = vld [vmem:[#allocation72_spill] sm:$0xff]  ;;  %v6381_v37 = vld [vmem:[#allocation74_spill] sm:$0xff] }
 0x2c9   :  { %1874 = vmatpush.bf16.msrb.mxu0 %v6371_v3  ;;  %1887 = vmatpush.bf16.msra.mxu1 %v6372_v29  ;;  %v6382_v3 = vld [vmem:[#allocation77_spill] sm:$0xff]  ;;  %v6383_v29 = vld [vmem:[#allocation78_spill] sm:$0xff] }
 0x2cb   :  { %1900 = vmatpush.bf16.msrb.mxu2 %v6375_v17  ;;  %1913 = vmatpush.bf16.msrb.mxu3 %v6376_v48  ;;  %v6386_v17 = vld [vmem:[#allocation81_spill] sm:$0xff]  ;;  %v6387_v48 = vld [vmem:[#allocation83_spill] sm:$0xff] }
 0x2cd   :  { %1919 = vmatpush.bf16.msra.mxu0 %v6373_v56  ;;  %1932 = vmatpush.bf16.msrb.mxu1 %v6374_v20  ;;  %v6384_v56 = vld [vmem:[#allocation79_spill] sm:$0xff]  ;;  %v6385_v20 = vld [vmem:[#allocation80_spill] sm:$0xff] }
 0x2cf   :  { %1945 = vmatpush.bf16.msra.mxu2 %v6377_v21  ;;  %1958 = vmatpush.bf16.msra.mxu3 %v6378_v38  ;;  %v6388_v21 = vld [vmem:[#allocation84_spill] sm:$0xff]  ;;  %v6389_v38 = vld [vmem:[#allocation86_spill] sm:$0xff] }
 0x2d1   :  { %1920 = vmatpush.bf16.msra.mxu0 %v6379_v61  ;;  %1933 = vmatpush.bf16.msrb.mxu1 %v6380_v25  ;;  %v6390_v61 = vld [vmem:[#allocation87_spill] sm:$0xff]  ;;  %v6391_v25 = vld [vmem:[#allocation89_spill] sm:$0xff] }
 0x2d3   :  { %1946 = vmatpush.bf16.msra.mxu2 %v6381_v37  ;;  %1959 = vmatpush.bf16.msra.mxu3 %v6382_v3  ;;  %v6392_v37 = vld [vmem:[#allocation90_spill] sm:$0xff]  ;;  %v6393_v3 = vld [vmem:[#allocation91_spill] sm:$0xff] }
 0x2d5   :  { %1921 = vmatpush.bf16.msra.mxu0 %v6383_v29  ;;  %1934 = vmatpush.bf16.msrb.mxu1 %v6384_v56  ;;  %v6394_v29 = vld [vmem:[#allocation92_spill] sm:$0xff]  ;;  %v6395_v56 = vld [vmem:[#allocation93_spill] sm:$0xff] }
 0x2d7   :  { %1947 = vmatpush.bf16.msra.mxu2 %v6385_v20  ;;  %1960 = vmatpush.bf16.msra.mxu3 %v6386_v17  ;;  %v6396_v20 = vld [vmem:[#allocation94_spill] sm:$0xff]  ;;  %v6397_v17 = vld [vmem:[#allocation95_spill] sm:$0xff] }
 0x2d9   :  { %1922 = vmatpush.bf16.msra.mxu0 %v6387_v48  ;;  %1935 = vmatpush.bf16.msrb.mxu1 %v6388_v21  ;;  %v6398_v48 = vld [vmem:[#allocation97_spill] sm:$0xff]  ;;  %v6399_v21 = vld [vmem:[#allocation98_spill] sm:$0xff] }
 0x2db   :  { %1948 = vmatpush.bf16.msra.mxu2 %v6389_v38  ;;  %1961 = vmatpush.bf16.msra.mxu3 %v6390_v61  ;;  %v6400_v38 = vld [vmem:[#allocation99_spill] sm:$0xff]  ;;  %v6401_v61 = vld [vmem:[#allocation100_spill] sm:$0xff] }
 0x2dd   :  { %1923 = vmatpush.bf16.msra.mxu0 %v6391_v25  ;;  %1936 = vmatpush.bf16.msrb.mxu1 %v6392_v37  ;;  %v6402_v25 = vld [vmem:[#allocation101_spill] sm:$0xff]  ;;  %v6403_v37 = vld [vmem:[#allocation102_spill] sm:$0xff] }
 0x2df   :  { %1949 = vmatpush.bf16.msra.mxu2 %v6393_v3  ;;  %1962 = vmatpush.bf16.msra.mxu3 %v6394_v29  ;;  %v6404_v3 = vld [vmem:[#allocation103_spill] sm:$0xff]  ;;  %v6405_v29 = vld [vmem:[#allocation104_spill] sm:$0xff] }
 0x2e1   :  { %1924 = vmatpush.bf16.msra.mxu0 %v6395_v56  ;;  %1937 = vmatpush.bf16.msrb.mxu1 %v6396_v20  ;;  %v6406_v56 = vld [vmem:[#allocation105_spill] sm:$0xff] }
 0x2e3   :  { %1950 = vmatpush.bf16.msra.mxu2 %v6397_v17  ;;  %1963 = vmatpush.bf16.msra.mxu3 %v6398_v48 }
 0x2e5   :  { %1925 = vmatpush.bf16.msra.mxu0 %v6399_v21  ;;  %1938 = vmatpush.bf16.msrb.mxu1 %v6400_v38 }
 0x2e7   :  { %1951 = vmatpush.bf16.msra.mxu2 %v6401_v61  ;;  %1964 = vmatpush.bf16.msra.mxu3 %v6402_v25 }
 0x2e9   :  { %1926 = vmatpush.bf16.msra.mxu0 %v6403_v37  ;;  %1939 = vmatpush.bf16.msrb.mxu1 %v6404_v3 }
 0x2eb   :  { %1952 = vmatpush.bf16.msra.mxu2 %v6405_v29  ;;  %1965 = vmatpush.bf16.msra.mxu3 %v6406_v56 }
 0x308   :  { %v1584_v20 = vpop.f32.mrf.mxu0  ;;  %v1597_v17 = vpop.f32.mrf.mxu1 }
 0x30f   :  { %v1610_v9 = vpop.f32.mrf.mxu2  ;;  %v1623_v48 = vpop.f32.mrf.mxu3 }
 0x310   :  { %v1586_v40 = vpop.f32.mrf.mxu0  ;;  %v1599_v21 = vpop.f32.mrf.mxu1 }
 0x311   :  { %v6409_v21 = vld [vmem:[#allocation108_spill] sm:$0xff] }
 0x317   :  { %v1612_v35 = vpop.f32.mrf.mxu2  ;;  %v1625_v38 = vpop.f32.mrf.mxu3 }
 0x318   :  { %v1636_v5 = vpop.f32.mrf.mxu0  ;;  %v1649_v61 = vpop.f32.mrf.mxu1 }
 0x319   :  { %v1637_v24 = vadd.f32 %v1636_v5, %v1584_v20  ;;  %v1650_v25 = vadd.f32 %v1649_v61, %v1597_v17  ;;  %v6410_v61 = vld [vmem:[#allocation13_spill] sm:$0xff] }
 0x31b   :  { %v1679_v37 = vadd.f32 %v1637_v24, %v6407_v60  ;;  %v1680_v3 = vadd.f32 %v1650_v25, %v6408_v49  ;;  %v6411_v25 = vld [vmem:[#allocation24_spill] sm:$0xff] }
 0x31d   :  { %v3749_v10 = vmul.f32 -1.442695, %v1679_v37  ;;  %v3750_v29 = vmul.f32 -1.442695, %v1680_v3  ;;  %v6412_v37 = vld [vmem:[#allocation34_spill] sm:$0xff]  ;;  %v6413_v3 = vld [vmem:[#allocation51_spill] sm:$0xff] }
 0x31f   :  { %4014 = vpow2.f32 %v3749_v10  ;;  %v1662_v56 = vpop.f32.mrf.mxu2  ;;  %v1675_v7 = vpop.f32.mrf.mxu3  ;;  %v286_v10 = vadd.f32 %v6411_v25, %v6410_v61  ;;  %v6415_v61 = vld [vmem:[#allocation21_spill] sm:$0xff] }
 0x320   :  { %4016 = vpow2.f32 %v3750_v29  ;;  %v1676_v6 = vadd.f32 %v1675_v7, %v1623_v48  ;;  %v1638_v22 = vpop.f32.mrf.mxu0  ;;  %v1651_v40 = vpop.f32.mrf.mxu1  ;;  %v315_v29 = vadd.f32 %v6413_v3, %v6412_v37  ;;  %v1663_v7 = vadd.f32 %v1662_v56, %v1610_v9  ;;  %v6416_v3 = vld [vmem:[#allocation37_spill] sm:$0xff] }
 0x321   :  { %v373_v37 = vadd.f32 %v6416_v3, %v6415_v61 }
 0x322   :  { %v1682_v35 = vadd.f32 %v1676_v6, %v6409_v21 }
 0x324   :  { %v3751_v38 = vmul.f32 -1.442695, %v1682_v35 }
 0x325   :  { %v4015_v8 = vpop.eup %4014 }
 0x326   :  { %v4017_v4 = vpop.eup %4016  ;;  %v1686_v5 = vadd.f32 1.0, %v4015_v8  ;;  %4018 = vpow2.f32 %v3751_v38 }
 0x327   :  { %v5239_v20 = vadd.f32 1.0, %v4017_v4  ;;  %v1664_v24 = vpop.f32.mrf.mxu2  ;;  %v1677_v17 = vpop.f32.mrf.mxu3 }
 0x328   :  { %4020 = vrcp.f32 %v1686_v5  ;;  %v6414_v17 = vld [vmem:[#allocation15_spill] sm:$0xff]  ;;  %vm1692_vm15 = vweird.f32 %v1686_v5 }
 0x329   :  { %4022 = vrcp.f32 %v5239_v20  ;;  %v1755_v22 = vpop.f32.mrf.mxu0  ;;  %v1768_v6 = vpop.f32.mrf.mxu1  ;;  %v1681_v21 = vadd.f32 %v1663_v7, %v6414_v17  ;;  %v1698_v7 = vand.u32 2147483648, %v1686_v5  ;;  %vm1711_vm0 = vweird.f32 %v5239_v20 }
 0x32a   :  { %v1798_v48 = vadd.f32 %v1755_v22, %v286_v10  ;;  %v1799_v40 = vadd.f32 %v1768_v6, %v315_v29 }
 0x32c   :  { %v4019_v8 = vpop.eup %4018  ;;  %v3752_v35 = vmul.f32 -1.442695, %v1798_v48  ;;  %v3753_v4 = vmul.f32 -1.442695, %v1799_v40 }
 0x32d   :  { %v5246_v38 = vadd.f32 1.0, %v4019_v8  ;;  %v1696_v8 = vand.u32 2147483647, %v1686_v5 }
 0x32e   :  { %v4021_v24 = vpop.eup %4020  ;;  %4024 = vpow2.f32 %v3752_v35  ;;  %v1717_v35 = vand.u32 2147483648, %v5239_v20 }
 0x32f   :  { %v4023_v25 = vpop.eup %4022  ;;  %v1688_v49 = vmul.f32 %v4021_v24, %v1686_v5  ;;  %4026 = vrcp.f32 %v5246_v38  ;;  %vm1693_vm13 = vweird.f32 %v4021_v24  ;;  %vm1697_vm2 = vcmp.eq.f32.partialorder %v1696_v8, 8.507059e+37 }
 0x330   :  { %v1707_v9 = vmul.f32 %v4023_v25, %v5239_v20  ;;  %4028 = vpow2.f32 %v3753_v4  ;;  %vm1712_vm14 = vweird.f32 %v4023_v25  ;;  %v1715_v4 = vand.u32 2147483647, %v5239_v20  ;;  %vm1694_vm1 = vmor %vm1692_vm15, %vm1693_vm13 }
 0x331   :  { %v1781_v56 = vpop.f32.mrf.mxu2  ;;  %v1794_v10 = vpop.f32.mrf.mxu3  ;;  %v1689_v29 = vsub.f32 1.0, %v1688_v49  ;;  %4030 = vtanh.f32 %v1681_v21  ;;  %vm1713_vm3 = vmor %vm1711_vm0, %vm1712_vm14  ;;  %v1718_v5 = vor.u32 1.1754944e-38, %v1717_v35  ;;  %vm1731_vm6 = vweird.f32 %v5246_v38 }
 0x332   :  { %v1801_v22 = vadd.f32 %v1794_v10, %v373_v37  ;;  %v1757_v6 = vpop.f32.mrf.mxu0  ;;  %v1770_v48 = vpop.f32.mrf.mxu1  ;;  %v1708_v40 = vsub.f32 1.0, %v1707_v9  ;;  %v1699_v9 = vor.u32 1.1754944e-38, %v1698_v7  ;;  %vm1716_vm4 = vcmp.eq.f32.partialorder %v1715_v4, 8.507059e+37 }
 0x333   :  { %v1690_v17 = vmul.f32 %v4021_v24, %v1689_v29  ;;  %v1737_v4 = vand.u32 2147483648, %v5246_v38 }
 0x334   :  { %v3754_v3 = vmul.f32 -1.442695, %v1801_v22  ;;  %v4025_v61 = vpop.eup %4024  ;;  %v1709_v60 = vmul.f32 %v4023_v25, %v1708_v40 }
 0x335   :  { %v5255_v62 = vpop.eup %4026  ;;  %v1691_v49 = vadd.f32 %v4021_v24, %v1690_v17  ;;  %v5258_v37 = vadd.f32 1.0, %v4025_v61 }
 0x336   :  { %4032 = vpow2.f32 %v3754_v3  ;;  %v4029_v21 = vpop.eup %4028  ;;  %v1710_v10 = vadd.f32 %v4023_v25, %v1709_v60  ;;  %v1727_v29 = vmul.f32 %v5255_v62, %v5246_v38  ;;  %vm1732_vm5 = vweird.f32 %v5255_v62 }
 0x337   :  { %v1695_v22 = vsel %vm1694_vm1, %v4021_v24, %v1691_v49  ;;  %4034 = vrcp.f32 %v5258_v37  ;;  %v5263_v6 = vadd.f32 1.0, %v4029_v21  ;;  %v4031_v20 = vpop.eup %4030  ;;  %v6417_v49 = vld [vmem:[#allocation20_spill] sm:$0xff]  ;;  %vm5283_vm7 = vmor %vm1731_vm6, %vm1732_vm5  ;;  %vm1811_vm9 = vweird.f32 %v5258_v37 }
 0x338   :  { %v1700_v17 = vsel %vm1697_vm2, %v1699_v9, %v1695_v22  ;;  %v1714_v61 = vsel %vm1713_vm3, %v4023_v25, %v1710_v10  ;;  %v1728_v48 = vsub.f32 1.0, %v1727_v29  ;;  %v344_v21 = vadd.f32 %v6418_v51, %v6417_v49  ;;  %v6447_v49 = vld [vmem:[#allocation64_spill] sm:$0xff] }
 0x339   :  { %v1783_v40 = vpop.f32.mrf.mxu2  ;;  %v1796_v3 = vpop.f32.mrf.mxu3  ;;  %v1719_v8 = vsel %vm1716_vm4, %v1718_v5, %v1714_v61  ;;  %v1742_v7 = vmul.f32 %v4031_v20, %v1700_v17  ;;  %4036 = vrcp.f32 %v5263_v6  ;;  %v1735_v51 = vand.u32 2147483647, %v5246_v38 }
 0x33a   :  { %v1741_v60 = vmul.f32 %v1719_v8, %v5105_v11  ;;  %v1729_v35 = vmul.f32 %v5255_v62, %v1728_v48  ;;  %v1800_v10 = vadd.f32 %v1781_v56, %v344_v21  ;;  %v1817_v17 = vand.u32 2147483648, %v5258_v37 }
 0x33b   :  { %v1738_v48 = vor.u32 1.1754944e-38, %v1737_v4  ;;  %v1815_v38 = vand.u32 2147483647, %v5258_v37  ;;  %v1836_v8 = vand.u32 2147483648, %v5263_v6  ;;  %vm1736_vm10 = vcmp.eq.f32.partialorder %v1735_v51, 8.507059e+37 }
 0x33c   :  { %v4033_v24 = vpop.eup %4032  ;;  %v5270_v58 = vadd.f32 %v1742_v7, %v1741_v60  ;;  %v1730_v29 = vadd.f32 %v5255_v62, %v1729_v35  ;;  %v1834_v7 = vand.u32 2147483647, %v5263_v6  ;;  %vm1830_vm12 = vweird.f32 %v5263_v6 }
 0x33d   :  { %v5272_v9 = vadd.f32 1.0, %v4033_v24  ;;  %v4035_v25 = vpop.eup %4034  ;;  %vm1816_vm14 = vcmp.eq.f32.partialorder %v1815_v38, 8.507059e+37 }
 0x33e   :  { %4038 = vtanh.f32 %v5270_v58  ;;  %v1807_v11 = vmul.f32 %v4035_v25, %v5258_v37  ;;  %v1734_v61 = vsel %vm5283_vm7, %v5255_v62, %v1730_v29  ;;  %vm1812_vm8 = vweird.f32 %v4035_v25 }
 0x33f   :  { %v4037_v5 = vpop.eup %4036  ;;  %4040 = vrcp.f32 %v5272_v9  ;;  %v1739_v21 = vsel %vm1736_vm10, %v1738_v48, %v1734_v61  ;;  %vm1813_vm13 = vmor %vm1811_vm9, %vm1812_vm8  ;;  %v1818_v62 = vor.u32 1.1754944e-38, %v1817_v17  ;;  %vm1835_vm0 = vcmp.eq.f32.partialorder %v1834_v7, 8.507059e+37 }
 0x340   :  { %v1808_v22 = vsub.f32 1.0, %v1807_v11  ;;  %v1826_v20 = vmul.f32 %v4037_v5, %v5263_v6  ;;  %4042 = vtanh.f32 %v1800_v10  ;;  %vm1831_vm11 = vweird.f32 %v4037_v5 }
 0x341   :  { %vm1832_vm15 = vmor %vm1830_vm12, %vm1831_vm11  ;;  %v1856_v38 = vand.u32 2147483648, %v5272_v9  ;;  %vm1850_vm2 = vweird.f32 %v5272_v9 }
 0x342   :  { %v1827_v40 = vsub.f32 1.0, %v1826_v20  ;;  %v1809_v3 = vmul.f32 %v4035_v25, %v1808_v22  ;;  %v1837_v20 = vor.u32 1.1754944e-38, %v1836_v8 }
 0x343   :  { %v1857_v7 = vor.u32 1.1754944e-38, %v1856_v38  ;;  %v6439_v38 = vld [vmem:[#allocation53_spill] sm:$0xff] }
 0x344   :  { %v4039_v60 = vpop.eup %4038  ;;  %v1828_v35 = vmul.f32 %v4037_v5, %v1827_v40  ;;  %v1810_v24 = vadd.f32 %v4035_v25, %v1809_v3 }
 0x345   :  { %v4041_v10 = vpop.eup %4040  ;;  %v1745_v4 = vmul.f32 %v4039_v60, %v1739_v21  ;;  %v6421_v21 = vld [vmem:[#allocation22_spill] sm:$0xff] }
 0x346   :  { %v1814_v29 = vsel %vm1813_vm13, %v4035_v25, %v1810_v24  ;;  %v1829_v11 = vadd.f32 %v4037_v5, %v1828_v35  ;;  %v1846_v22 = vmul.f32 %v4041_v10, %v5272_v9  ;;  %v4043_v37 = vpop.eup %4042  ;;  %vm1851_vm1 = vweird.f32 %v4041_v10 }
 0x347   :  { %v1819_v51 = vsel %vm1816_vm14, %v1818_v62, %v1814_v29  ;;  %v1866_v56 = vpack.c.bf16 %v1745_v4, %v1745_v4  ;;  %vm1852_vm3 = vmor %vm1850_vm2, %vm1851_vm1  ;;  %v6423_v62 = vld [vmem:[#allocation28_spill] sm:$0xff]  ;;  %v6424_v4 = vld [vmem:[#allocation29_spill] sm:$0xff] }
 0x348   :  { %v1833_v40 = vsel %vm1832_vm15, %v4037_v5, %v1829_v11  ;;  %v1861_v3 = vmul.f32 %v4043_v37, %v1819_v51  ;;  %v1847_v61 = vsub.f32 1.0, %v1846_v22  ;;  %v6425_v29 = vld [vmem:[#allocation30_spill] sm:$0xff]  ;;  %v6426_v11 = vld [vmem:[#allocation31_spill] sm:$0xff]  ;;  %v6427_v22 = vld [vmem:[#allocation32_spill] sm:$0xff] }
 0x349   :  { %v1838_v48 = vsel %vm1835_vm0, %v1837_v20, %v1833_v40  ;;  %1875 = vmatmul.bf16.vlgmr.msrb.gmra.mxu0 %v1866_v56  ;;  %1888 = vmatmul.bf16.vlgmr.msra.gmra.mxu1 %v1866_v56  ;;  %v6428_v37 = vld [vmem:[#allocation33_spill] sm:$0xff]  ;;  %v6429_v20 = vld [vmem:[#allocation36_spill] sm:$0xff]  ;;  %v6430_v51 = vld [vmem:[#allocation39_spill] sm:$0xff] }
 0x34a   :  { %v1860_v6 = vmul.f32 %v1838_v48, %v5136_v12  ;;  %v1848_v17 = vmul.f32 %v4041_v10, %v1847_v61  ;;  %1901 = vmatmul.bf16.vlgmr.msrb.gmra.mxu2 %v1866_v56  ;;  %1914 = vmatmul.bf16.vlgmr.msrb.gmra.mxu3 %v1866_v56  ;;  %v1854_v12 = vand.u32 2147483647, %v5272_v9  ;;  %v6431_v56 = vld [vmem:[#allocation41_spill] sm:$0xff]  ;;  %v6432_v40 = vld [vmem:[#allocation42_spill] sm:$0xff]  ;;  %v6434_v61 = vld [vmem:[#allocation44_spill] sm:$0xff] }
 0x34b   :  { %2038 = vmatpush.bf16.msrb.mxu0 %v4367_v19  ;;  %2051 = vmatpush.bf16.msra.mxu1 %v4365_v18  ;;  %v6435_v48 = vld [vmem:[#allocation45_spill] sm:$0xff] }
 0x34c   :  { %v5300_v25 = vadd.f32 %v1861_v3, %v1860_v6  ;;  %2064 = vmatpush.bf16.msrb.mxu2 %v4388_v36  ;;  %2077 = vmatpush.bf16.msrb.mxu3 %v4375_v26  ;;  %v1849_v5 = vadd.f32 %v4041_v10, %v1848_v17  ;;  %vm1855_vm4 = vcmp.eq.f32.partialorder %v1854_v12, 8.507059e+37  ;;  %v6433_v3 = vld [vmem:[#allocation43_spill] sm:$0xff]  ;;  %v6436_v6 = vld [vmem:[#allocation46_spill] sm:$0xff] }
 0x34d   :  { %v6437_v17 = vld [vmem:[#allocation47_spill] sm:$0xff]  ;;  %v6440_v12 = vld [vmem:[#allocation54_spill] sm:$0xff] }
 0x34e   :  { %4044 = vtanh.f32 %v5300_v25  ;;  %v1853_v8 = vsel %vm1852_vm3, %v4041_v10, %v1849_v5  ;;  %v6422_v10 = vld [vmem:[#allocation27_spill] sm:$0xff]  ;;  %v6438_v5 = vld [vmem:[#allocation52_spill] sm:$0xff] }
 0x34f   :  { %2039 = vmatpush.bf16.msrb.mxu0 %v4383_v30  ;;  %2052 = vmatpush.bf16.msra.mxu1 %v4380_v27  ;;  %v1858_v35 = vsel %vm1855_vm4, %v1857_v7, %v1853_v8  ;;  %v6441_v8 = vld [vmem:[#allocation55_spill] sm:$0xff]  ;;  %v6442_v7 = vld [vmem:[#allocation56_spill] sm:$0xff] }
 0x350   :  { %2065 = vmatpush.bf16.msrb.mxu2 %v4398_v44  ;;  %2078 = vmatpush.bf16.msrb.mxu3 %v4386_v32 }
 0x353   :  { %2040 = vmatpush.bf16.msrb.mxu0 %v4395_v43  ;;  %2053 = vmatpush.bf16.msra.mxu1 %v4392_v39 }
 0x354   :  { %v4045_v60 = vpop.eup %4044  ;;  %2066 = vmatpush.bf16.msrb.mxu2 %v4406_v54  ;;  %2079 = vmatpush.bf16.msrb.mxu3 %v4400_v50 }
 0x355   :  { %v1864_v9 = vmul.f32 %v4045_v60, %v1858_v35  ;;  %v6443_v60 = vld [vmem:[#allocation57_spill] sm:$0xff]  ;;  %v6444_v35 = vld [vmem:[#allocation58_spill] sm:$0xff] }
 0x357   :  { %v1865_v24 = vpack.c.bf16 %v1864_v9, %v1864_v9  ;;  %2041 = vmatpush.bf16.msrb.mxu0 %v4409_v57  ;;  %2054 = vmatpush.bf16.msra.mxu1 %v4404_v53  ;;  %v6445_v9 = vld [vmem:[#allocation60_spill] sm:$0xff] }
 0x358   :  { %2067 = vmatpush.bf16.msrb.mxu2 %v4421_v0  ;;  %2080 = vmatpush.bf16.msrb.mxu3 %v4417_v63 }
 0x359   :  { %1927 = vmatmul.bf16.vlgmr.msra.gmra.mxu0 %v1865_v24  ;;  %1940 = vmatmul.bf16.vlgmr.msrb.gmra.mxu1 %v1865_v24 }
 0x35a   :  { %1953 = vmatmul.bf16.vlgmr.msra.gmra.mxu2 %v1865_v24  ;;  %1966 = vmatmul.bf16.vlgmr.msra.gmra.mxu3 %v1865_v24 }
 0x35b   :  { %2042 = vmatpush.bf16.msrb.mxu0 %v4424_v1  ;;  %2055 = vmatpush.bf16.msra.mxu1 %v4443_v16 }
 0x35c   :  { %2068 = vmatpush.bf16.msrb.mxu2 %v4436_v13  ;;  %2081 = vmatpush.bf16.msrb.mxu3 %v4438_v14 }
 0x35f   :  { %2043 = vmatpush.bf16.msrb.mxu0 %v4441_v15  ;;  %2056 = vmatpush.bf16.msra.mxu1 %v4449_v28 }
 0x360   :  { %2069 = vmatpush.bf16.msrb.mxu2 %v4452_v33  ;;  %2082 = vmatpush.bf16.msrb.mxu3 %v4446_v23 }
 0x363   :  { %2044 = vmatpush.bf16.msrb.mxu0 %v4455_v34  ;;  %2057 = vmatpush.bf16.msra.mxu1 %v4482_v59 }
 0x364   :  { %2070 = vmatpush.bf16.msrb.mxu2 %v4462_v42  ;;  %2083 = vmatpush.bf16.msrb.mxu3 %v4458_v41 }
 0x367   :  { %2045 = vmatpush.bf16.msrb.mxu0 %v4465_v47  ;;  %2058 = vmatpush.bf16.msra.mxu1 %v4487_v2 }
 0x368   :  { %2071 = vmatpush.bf16.msrb.mxu2 %v4474_v55  ;;  %2084 = vmatpush.bf16.msrb.mxu3 %v4471_v52 }
 0x36a   :  { %2046 = vmatmul.bf16.vlgmr.msrb.gmra.mxu0 %v1865_v24  ;;  %2059 = vmatmul.bf16.vlgmr.msra.gmra.mxu1 %v1865_v24 }
 0x36b   :  { %2159 = vmatpush.bf16.msra.mxu0 %v4531_v31  ;;  %2172 = vmatpush.bf16.msrb.mxu1 %v4536_v45 }
 0x36c   :  { %2072 = vmatmul.bf16.vlgmr.msrb.gmra.mxu2 %v1865_v24  ;;  %2085 = vmatmul.bf16.vlgmr.msrb.gmra.mxu3 %v1865_v24  ;;  %v6446_v24 = vld [vmem:[#allocation62_spill] sm:$0xff] }
 0x36d   :  { %2185 = vmatpush.bf16.msra.mxu2 %v4538_v46  ;;  %2198 = vmatpush.bf16.msra.mxu3 %v6421_v21 }
 0x36f   :  { %2160 = vmatpush.bf16.msra.mxu0 %v6422_v10  ;;  %2173 = vmatpush.bf16.msrb.mxu1 %v6423_v62 }
 0x371   :  { %2186 = vmatpush.bf16.msra.mxu2 %v6424_v4  ;;  %2199 = vmatpush.bf16.msra.mxu3 %v6425_v29 }
 0x373   :  { %2161 = vmatpush.bf16.msra.mxu0 %v6426_v11  ;;  %2174 = vmatpush.bf16.msrb.mxu1 %v6427_v22 }
 0x375   :  { %2187 = vmatpush.bf16.msra.mxu2 %v6428_v37  ;;  %2200 = vmatpush.bf16.msra.mxu3 %v6429_v20 }
 0x377   :  { %2162 = vmatpush.bf16.msra.mxu0 %v6430_v51  ;;  %2175 = vmatpush.bf16.msrb.mxu1 %v6431_v56  ;;  %v6482_v56 = vld [vmem:[#allocation106_spill] sm:$0xff]  ;;  %v6483_v51 = vld [vmem:[#allocation107_spill] sm:$0xff] }
 0x379   :  { %2188 = vmatpush.bf16.msra.mxu2 %v6432_v40  ;;  %2201 = vmatpush.bf16.msra.mxu3 %v6433_v3 }
 0x37b   :  { %2163 = vmatpush.bf16.msra.mxu0 %v6434_v61  ;;  %2176 = vmatpush.bf16.msrb.mxu1 %v6435_v48 }
 0x37d   :  { %2189 = vmatpush.bf16.msra.mxu2 %v6436_v6  ;;  %2202 = vmatpush.bf16.msra.mxu3 %v6437_v17  ;;  %v6448_v17 = vld [vmem:[#allocation67_spill] sm:$0xff] }
 0x37f   :  { %2164 = vmatpush.bf16.msra.mxu0 %v6438_v5  ;;  %2177 = vmatpush.bf16.msrb.mxu1 %v6439_v38  ;;  %v6449_v5 = vld [vmem:[#allocation68_spill] sm:$0xff]  ;;  %v6450_v38 = vld [vmem:[#allocation65_spill] sm:$0xff] }
 0x381   :  { %2190 = vmatpush.bf16.msra.mxu2 %v6440_v12  ;;  %2203 = vmatpush.bf16.msra.mxu3 %v6441_v8  ;;  %v6451_v12 = vld [vmem:[#allocation66_spill] sm:$0xff]  ;;  %v6452_v8 = vld [vmem:[#allocation69_spill] sm:$0xff] }
 0x383   :  { %2165 = vmatpush.bf16.msra.mxu0 %v6442_v7  ;;  %2178 = vmatpush.bf16.msrb.mxu1 %v6443_v60  ;;  %v6453_v7 = vld [vmem:[#allocation70_spill] sm:$0xff]  ;;  %v6454_v60 = vld [vmem:[#allocation71_spill] sm:$0xff] }
 0x385   :  { %2191 = vmatpush.bf16.msra.mxu2 %v6444_v35  ;;  %2204 = vmatpush.bf16.msra.mxu3 %v6445_v9  ;;  %v6455_v35 = vld [vmem:[#allocation72_spill] sm:$0xff]  ;;  %v6456_v9 = vld [vmem:[#allocation74_spill] sm:$0xff] }
 0x387   :  { %2166 = vmatpush.bf16.msra.mxu0 %v6446_v24  ;;  %2179 = vmatpush.bf16.msrb.mxu1 %v6447_v49  ;;  %v6457_v24 = vld [vmem:[#allocation77_spill] sm:$0xff]  ;;  %v6458_v49 = vld [vmem:[#allocation78_spill] sm:$0xff] }
 0x389   :  { %2192 = vmatpush.bf16.msra.mxu2 %v6450_v38  ;;  %2205 = vmatpush.bf16.msra.mxu3 %v6451_v12  ;;  %v6461_v38 = vld [vmem:[#allocation81_spill] sm:$0xff]  ;;  %v6462_v12 = vld [vmem:[#allocation83_spill] sm:$0xff] }
 0x38b   :  { %2211 = vmatpush.bf16.msrb.mxu0 %v6448_v17  ;;  %2224 = vmatpush.bf16.msra.mxu1 %v6449_v5  ;;  %v6459_v17 = vld [vmem:[#allocation79_spill] sm:$0xff]  ;;  %v6460_v5 = vld [vmem:[#allocation80_spill] sm:$0xff] }
 0x38d   :  { %2237 = vmatpush.bf16.msrb.mxu2 %v6452_v8  ;;  %2250 = vmatpush.bf16.msrb.mxu3 %v6453_v7  ;;  %v6463_v8 = vld [vmem:[#allocation84_spill] sm:$0xff]  ;;  %v6464_v7 = vld [vmem:[#allocation86_spill] sm:$0xff] }
 0x38f   :  { %2212 = vmatpush.bf16.msrb.mxu0 %v6454_v60  ;;  %2225 = vmatpush.bf16.msra.mxu1 %v6455_v35  ;;  %v6465_v60 = vld [vmem:[#allocation87_spill] sm:$0xff]  ;;  %v6466_v35 = vld [vmem:[#allocation89_spill] sm:$0xff] }
 0x391   :  { %2238 = vmatpush.bf16.msrb.mxu2 %v6456_v9  ;;  %2251 = vmatpush.bf16.msrb.mxu3 %v6457_v24  ;;  %v6467_v9 = vld [vmem:[#allocation90_spill] sm:$0xff]  ;;  %v6468_v24 = vld [vmem:[#allocation91_spill] sm:$0xff] }
 0x393   :  { %2213 = vmatpush.bf16.msrb.mxu0 %v6458_v49  ;;  %2226 = vmatpush.bf16.msra.mxu1 %v6459_v17  ;;  %v6469_v49 = vld [vmem:[#allocation92_spill] sm:$0xff]  ;;  %v6470_v17 = vld [vmem:[#allocation93_spill] sm:$0xff] }
 0x395   :  { %2239 = vmatpush.bf16.msrb.mxu2 %v6460_v5  ;;  %2252 = vmatpush.bf16.msrb.mxu3 %v6461_v38  ;;  %v6471_v5 = vld [vmem:[#allocation94_spill] sm:$0xff]  ;;  %v6472_v38 = vld [vmem:[#allocation95_spill] sm:$0xff] }
 0x397   :  { %2214 = vmatpush.bf16.msrb.mxu0 %v6462_v12  ;;  %2227 = vmatpush.bf16.msra.mxu1 %v6463_v8  ;;  %v6473_v12 = vld [vmem:[#allocation97_spill] sm:$0xff]  ;;  %v6474_v8 = vld [vmem:[#allocation98_spill] sm:$0xff] }
 0x399   :  { %2240 = vmatpush.bf16.msrb.mxu2 %v6464_v7  ;;  %2253 = vmatpush.bf16.msrb.mxu3 %v6465_v60  ;;  %v6475_v7 = vld [vmem:[#allocation99_spill] sm:$0xff]  ;;  %v6476_v60 = vld [vmem:[#allocation100_spill] sm:$0xff] }
 0x39b   :  { %2215 = vmatpush.bf16.msrb.mxu0 %v6466_v35  ;;  %2228 = vmatpush.bf16.msra.mxu1 %v6467_v9  ;;  %v6477_v35 = vld [vmem:[#allocation101_spill] sm:$0xff]  ;;  %v6478_v9 = vld [vmem:[#allocation102_spill] sm:$0xff] }
 0x39d   :  { %2241 = vmatpush.bf16.msrb.mxu2 %v6468_v24  ;;  %2254 = vmatpush.bf16.msrb.mxu3 %v6469_v49  ;;  %v6479_v24 = vld [vmem:[#allocation103_spill] sm:$0xff]  ;;  %v6480_v49 = vld [vmem:[#allocation104_spill] sm:$0xff] }
 0x39f   :  { %2216 = vmatpush.bf16.msrb.mxu0 %v6470_v17  ;;  %2229 = vmatpush.bf16.msra.mxu1 %v6471_v5  ;;  %v6481_v17 = vld [vmem:[#allocation105_spill] sm:$0xff] }
 0x3a1   :  { %2242 = vmatpush.bf16.msrb.mxu2 %v6472_v38  ;;  %2255 = vmatpush.bf16.msrb.mxu3 %v6473_v12 }
 0x3a3   :  { %2217 = vmatpush.bf16.msrb.mxu0 %v6474_v8  ;;  %2230 = vmatpush.bf16.msra.mxu1 %v6475_v7 }
 0x3a5   :  { %2243 = vmatpush.bf16.msrb.mxu2 %v6476_v60  ;;  %2256 = vmatpush.bf16.msrb.mxu3 %v6477_v35 }
 0x3a7   :  { %2218 = vmatpush.bf16.msrb.mxu0 %v6478_v9  ;;  %2231 = vmatpush.bf16.msra.mxu1 %v6479_v24 }
 0x3a9   :  { %2244 = vmatpush.bf16.msrb.mxu2 %v6480_v49  ;;  %2257 = vmatpush.bf16.msrb.mxu3 %v6481_v17 }
 0x3c6   :  { %v1876_v5 = vpop.f32.mrf.mxu0  ;;  %v1889_v38 = vpop.f32.mrf.mxu1 }
 0x3cd   :  { %v1902_v6 = vpop.f32.mrf.mxu2  ;;  %v1915_v12 = vpop.f32.mrf.mxu3 }
 0x3ce   :  { %v1878_v48 = vpop.f32.mrf.mxu0  ;;  %v1891_v8 = vpop.f32.mrf.mxu1 }
 0x3cf   :  { %v6484_v8 = vld [vmem:[#allocation108_spill] sm:$0xff] }
 0x3d5   :  { %v1904_v61 = vpop.f32.mrf.mxu2  ;;  %v1917_v7 = vpop.f32.mrf.mxu3 }
 0x3d6   :  { %v1928_v3 = vpop.f32.mrf.mxu0  ;;  %v1941_v60 = vpop.f32.mrf.mxu1 }
 0x3d7   :  { %v1929_v40 = vadd.f32 %v1928_v3, %v1876_v5  ;;  %v1942_v35 = vadd.f32 %v1941_v60, %v1889_v38 }
 0x3d9   :  { %v1971_v9 = vadd.f32 %v1929_v40, %v6482_v56  ;;  %v1972_v24 = vadd.f32 %v1942_v35, %v6483_v51 }
 0x3db   :  { %v3755_v20 = vmul.f32 -1.442695, %v1971_v9  ;;  %v3756_v49 = vmul.f32 -1.442695, %v1972_v24  ;;  %v6485_v9 = vld [vmem:[#allocation38_spill] sm:$0xff] }
 0x3dd   :  { %4046 = vpow2.f32 %v3755_v20  ;;  %v1954_v17 = vpop.f32.mrf.mxu2  ;;  %v1967_v37 = vpop.f32.mrf.mxu3 }
 0x3de   :  { %4048 = vpow2.f32 %v3756_v49  ;;  %v1968_v22 = vadd.f32 %v1967_v37, %v1915_v12  ;;  %v1930_v11 = vpop.f32.mrf.mxu0  ;;  %v1943_v48 = vpop.f32.mrf.mxu1  ;;  %v1955_v35 = vadd.f32 %v1954_v17, %v1902_v6  ;;  %v6486_v37 = vld [vmem:[#allocation63_spill] sm:$0xff] }
 0x3e0   :  { %v1974_v61 = vadd.f32 %v1968_v22, %v6484_v8 }
 0x3e2   :  { %v3757_v7 = vmul.f32 -1.442695, %v1974_v61 }
 0x3e3   :  { %v4047_v29 = vpop.eup %4046 }
 0x3e4   :  { %v4049_v4 = vpop.eup %4048  ;;  %v1978_v3 = vadd.f32 1.0, %v4047_v29  ;;  %4050 = vpow2.f32 %v3757_v7  ;;  %v6487_v29 = vld [vmem:[#allocation15_spill] sm:$0xff] }
 0x3e5   :  { %v1997_v5 = vadd.f32 1.0, %v4049_v4  ;;  %v1956_v40 = vpop.f32.mrf.mxu2  ;;  %v1969_v38 = vpop.f32.mrf.mxu3  ;;  %v1973_v7 = vadd.f32 %v1955_v35, %v6487_v29 }
 0x3e6   :  { %4052 = vrcp.f32 %v1978_v3  ;;  %v1990_v8 = vand.u32 2147483648, %v1978_v3  ;;  %vm1984_vm7 = vweird.f32 %v1978_v3 }
 0x3e7   :  { %4054 = vrcp.f32 %v1997_v5  ;;  %v2047_v60 = vpop.f32.mrf.mxu0  ;;  %v2060_v20 = vpop.f32.mrf.mxu1  ;;  %v2009_v51 = vand.u32 2147483648, %v1997_v5  ;;  %vm2003_vm8 = vweird.f32 %v1997_v5 }
 0x3e8   :  { %v2090_v49 = vadd.f32 %v2047_v60, %v6485_v9  ;;  %v2091_v11 = vadd.f32 %v2060_v20, %v6486_v37  ;;  %v6488_v9 = vld [vmem:[#allocation50_spill] sm:$0xff] }
 0x3ea   :  { %v4051_v12 = vpop.eup %4050  ;;  %v3758_v24 = vmul.f32 -1.442695, %v2090_v49  ;;  %v3759_v22 = vmul.f32 -1.442695, %v2091_v11 }
 0x3eb   :  { %v5405_v48 = vadd.f32 1.0, %v4051_v12  ;;  %v1988_v12 = vand.u32 2147483647, %v1978_v3 }
 0x3ec   :  { %v4053_v61 = vpop.eup %4052  ;;  %4056 = vpow2.f32 %v3758_v24 }
 0x3ed   :  { %v4055_v4 = vpop.eup %4054  ;;  %v1980_v40 = vmul.f32 %v4053_v61, %v1978_v3  ;;  %4058 = vrcp.f32 %v5405_v48  ;;  %vm1985_vm5 = vweird.f32 %v4053_v61  ;;  %vm1989_vm10 = vcmp.eq.f32.partialorder %v1988_v12, 8.507059e+37 }
 0x3ee   :  { %v1999_v38 = vmul.f32 %v4055_v4, %v1997_v5  ;;  %4060 = vpow2.f32 %v3759_v22  ;;  %vm2004_vm6 = vweird.f32 %v4055_v4  ;;  %v2007_v22 = vand.u32 2147483647, %v1997_v5  ;;  %vm1986_vm9 = vmor %vm1984_vm7, %vm1985_vm5 }
 0x3ef   :  { %v2073_v6 = vpop.f32.mrf.mxu2  ;;  %v2086_v17 = vpop.f32.mrf.mxu3  ;;  %v1981_v60 = vsub.f32 1.0, %v1980_v40  ;;  %4062 = vtanh.f32 %v1973_v7  ;;  %v1991_v7 = vor.u32 1.1754944e-38, %v1990_v8  ;;  %vm2005_vm11 = vmor %vm2003_vm8, %vm2004_vm6  ;;  %vm2023_vm14 = vweird.f32 %v5405_v48 }
 0x3f0   :  { %v2093_v20 = vadd.f32 %v2086_v17, %v6488_v9  ;;  %v2049_v37 = vpop.f32.mrf.mxu0  ;;  %v2062_v49 = vpop.f32.mrf.mxu1  ;;  %v2000_v11 = vsub.f32 1.0, %v1999_v38  ;;  %vm2008_vm12 = vcmp.eq.f32.partialorder %v2007_v22, 8.507059e+37  ;;  %v6489_v22 = vld [vmem:[#allocation48_spill] sm:$0xff] }
 0x3f1   :  { %v1982_v35 = vmul.f32 %v4053_v61, %v1981_v60 }
 0x3f2   :  { %v3760_v24 = vmul.f32 -1.442695, %v2093_v20  ;;  %v4057_v29 = vpop.eup %4056  ;;  %v2001_v56 = vmul.f32 %v4055_v4, %v2000_v11  ;;  %v2010_v20 = vor.u32 1.1754944e-38, %v2009_v51 }
 0x3f3   :  { %v5410_v62 = vpop.eup %4058  ;;  %v1983_v40 = vadd.f32 %v4053_v61, %v1982_v35  ;;  %v5412_v17 = vadd.f32 1.0, %v4057_v29 }
 0x3f4   :  { %4064 = vpow2.f32 %v3760_v24  ;;  %v4061_v38 = vpop.eup %4060  ;;  %v2002_v9 = vadd.f32 %v4055_v4, %v2001_v56  ;;  %v2019_v60 = vmul.f32 %v5410_v62, %v5405_v48  ;;  %vm2024_vm13 = vweird.f32 %v5410_v62 }
 0x3f5   :  { %v1987_v37 = vsel %vm1986_vm9, %v4053_v61, %v1983_v40  ;;  %4066 = vrcp.f32 %v5412_v17  ;;  %v5417_v3 = vadd.f32 1.0, %v4061_v38  ;;  %v4063_v5 = vpop.eup %4062  ;;  %vm5436_vm15 = vmor %vm2023_vm14, %vm2024_vm13  ;;  %vm2103_vm1 = vweird.f32 %v5412_v17 }
 0x3f6   :  { %v1992_v49 = vsel %vm1989_vm10, %v1991_v7, %v1987_v37  ;;  %v2006_v29 = vsel %vm2005_vm11, %v4055_v4, %v2002_v9  ;;  %v2020_v11 = vsub.f32 1.0, %v2019_v60  ;;  %v2029_v4 = vand.u32 2147483648, %v5405_v48 }
 0x3f7   :  { %v2075_v35 = vpop.f32.mrf.mxu2  ;;  %v2088_v24 = vpop.f32.mrf.mxu3  ;;  %v2011_v12 = vsel %vm2008_vm12, %v2010_v20, %v2006_v29  ;;  %v2034_v8 = vmul.f32 %v4063_v5, %v1992_v49  ;;  %4068 = vrcp.f32 %v5417_v3  ;;  %v2092_v7 = vadd.f32 %v2073_v6, %v6489_v22 }
 0x3f8   :  { %v2033_v56 = vmul.f32 %v2011_v12, %v5270_v58  ;;  %v2021_v51 = vmul.f32 %v5410_v62, %v2020_v11  ;;  %v2027_v20 = vand.u32 2147483647, %v5405_v48  ;;  %v2109_v49 = vand.u32 2147483648, %v5412_v17 }
 0x3f9   :  { %v2030_v11 = vor.u32 1.1754944e-38, %v2029_v4  ;;  %v2107_v48 = vand.u32 2147483647, %v5412_v17  ;;  %v2128_v12 = vand.u32 2147483648, %v5417_v3  ;;  %vm2122_vm4 = vweird.f32 %v5417_v3 }
 0x3fa   :  { %v4065_v61 = vpop.eup %4064  ;;  %v5422_v40 = vadd.f32 %v2034_v8, %v2033_v56  ;;  %v2022_v9 = vadd.f32 %v5410_v62, %v2021_v51  ;;  %v2126_v8 = vand.u32 2147483647, %v5417_v3  ;;  %vm2028_vm2 = vcmp.eq.f32.partialorder %v2027_v20, 8.507059e+37 }
 0x3fb   :  { %v5424_v38 = vadd.f32 1.0, %v4065_v61  ;;  %v4067_v10 = vpop.eup %4066  ;;  %vm2108_vm6 = vcmp.eq.f32.partialorder %v2107_v48, 8.507059e+37 }
 0x3fc   :  { %4070 = vtanh.f32 %v5422_v40  ;;  %v2099_v58 = vmul.f32 %v4067_v10, %v5412_v17  ;;  %v2026_v29 = vsel %vm5436_vm15, %v5410_v62, %v2022_v9  ;;  %vm2104_vm0 = vweird.f32 %v4067_v10 }
 0x3fd   :  { %v4069_v60 = vpop.eup %4068  ;;  %4072 = vrcp.f32 %v5424_v38  ;;  %v2031_v22 = vsel %vm2028_vm2, %v2030_v11, %v2026_v29  ;;  %vm2105_vm5 = vmor %vm2103_vm1, %vm2104_vm0  ;;  %v2110_v62 = vor.u32 1.1754944e-38, %v2109_v49  ;;  %vm2127_vm8 = vcmp.eq.f32.partialorder %v2126_v8, 8.507059e+37 }
 0x3fe   :  { %v2100_v37 = vsub.f32 1.0, %v2099_v58  ;;  %v2118_v5 = vmul.f32 %v4069_v60, %v5417_v3  ;;  %4074 = vtanh.f32 %v2092_v7  ;;  %vm2123_vm3 = vweird.f32 %v4069_v60 }
 0x3ff   :  { %vm2124_vm7 = vmor %vm2122_vm4, %vm2123_vm3  ;;  %v2148_v48 = vand.u32 2147483648, %v5424_v38  ;;  %vm2142_vm10 = vweird.f32 %v5424_v38 }
 0x400   :  { %v2119_v35 = vsub.f32 1.0, %v2118_v5  ;;  %v2101_v24 = vmul.f32 %v4067_v10, %v2100_v37  ;;  %v2129_v5 = vor.u32 1.1754944e-38, %v2128_v12 }
 0x401   :  { %v2149_v8 = vor.u32 1.1754944e-38, %v2148_v48  ;;  %v6510_v48 = vld [vmem:[#allocation54_spill] sm:$0xff] }
 0x402   :  { %v4071_v56 = vpop.eup %4070  ;;  %v2120_v51 = vmul.f32 %v4069_v60, %v2119_v35  ;;  %v2102_v61 = vadd.f32 %v4067_v10, %v2101_v24 }
 0x403   :  { %v4073_v7 = vpop.eup %4072  ;;  %v2037_v4 = vmul.f32 %v4071_v56, %v2031_v22  ;;  %v6492_v22 = vld [vmem:[#allocation27_spill] sm:$0xff] }
 0x404   :  { %v2106_v9 = vsel %vm2105_vm5, %v4067_v10, %v2102_v61  ;;  %v2121_v58 = vadd.f32 %v4069_v60, %v2120_v51  ;;  %v2138_v37 = vmul.f32 %v4073_v7, %v5424_v38  ;;  %v4075_v17 = vpop.eup %4074  ;;  %vm2143_vm9 = vweird.f32 %v4073_v7 }
 0x405   :  { %v2111_v20 = vsel %vm2108_vm6, %v2110_v62, %v2106_v9  ;;  %v2158_v6 = vpack.c.bf16 %v2037_v4, %v2037_v4  ;;  %vm2144_vm11 = vmor %vm2142_vm10, %vm2143_vm9  ;;  %v6494_v62 = vld [vmem:[#allocation29_spill] sm:$0xff]  ;;  %v6495_v4 = vld [vmem:[#allocation30_spill] sm:$0xff] }
 0x406   :  { %v2125_v35 = vsel %vm2124_vm7, %v4069_v60, %v2121_v58  ;;  %v2153_v24 = vmul.f32 %v4075_v17, %v2111_v20  ;;  %v2139_v29 = vsub.f32 1.0, %v2138_v37  ;;  %v6496_v9 = vld [vmem:[#allocation31_spill] sm:$0xff]  ;;  %v6497_v58 = vld [vmem:[#allocation32_spill] sm:$0xff]  ;;  %v6498_v37 = vld [vmem:[#allocation33_spill] sm:$0xff] }
 0x407   :  { %v2130_v11 = vsel %vm2127_vm8, %v2129_v5, %v2125_v35  ;;  %2167 = vmatmul.bf16.vlgmr.msra.gmra.mxu0 %v2158_v6  ;;  %2180 = vmatmul.bf16.vlgmr.msrb.gmra.mxu1 %v2158_v6  ;;  %v6499_v17 = vld [vmem:[#allocation36_spill] sm:$0xff]  ;;  %v6500_v5 = vld [vmem:[#allocation39_spill] sm:$0xff]  ;;  %v6501_v20 = vld [vmem:[#allocation41_spill] sm:$0xff] }
 0x408   :  { %v2152_v3 = vmul.f32 %v2130_v11, %v5300_v25  ;;  %v2140_v49 = vmul.f32 %v4073_v7, %v2139_v29  ;;  %2193 = vmatmul.bf16.vlgmr.msra.gmra.mxu2 %v2158_v6  ;;  %2206 = vmatmul.bf16.vlgmr.msra.gmra.mxu3 %v2158_v6  ;;  %v2146_v25 = vand.u32 2147483647, %v5424_v38  ;;  %v6502_v6 = vld [vmem:[#allocation42_spill] sm:$0xff]  ;;  %v6503_v35 = vld [vmem:[#allocation43_spill] sm:$0xff]  ;;  %v6505_v29 = vld [vmem:[#allocation45_spill] sm:$0xff] }
 0x409   :  { %2330 = vmatpush.bf16.msra.mxu0 %v4367_v19  ;;  %2343 = vmatpush.bf16.msrb.mxu1 %v4365_v18  ;;  %v6506_v11 = vld [vmem:[#allocation46_spill] sm:$0xff] }
 0x40a   :  { %v5453_v10 = vadd.f32 %v2153_v24, %v2152_v3  ;;  %2356 = vmatpush.bf16.msra.mxu2 %v4388_v36  ;;  %2369 = vmatpush.bf16.msra.mxu3 %v4375_v26  ;;  %v2141_v60 = vadd.f32 %v4073_v7, %v2140_v49  ;;  %vm2147_vm12 = vcmp.eq.f32.partialorder %v2146_v25, 8.507059e+37  ;;  %v6504_v24 = vld [vmem:[#allocation44_spill] sm:$0xff]  ;;  %v6507_v3 = vld [vmem:[#allocation47_spill] sm:$0xff] }
 0x40b   :  { %v6508_v49 = vld [vmem:[#allocation52_spill] sm:$0xff]  ;;  %v6511_v25 = vld [vmem:[#allocation55_spill] sm:$0xff] }
 0x40c   :  { %4076 = vtanh.f32 %v5453_v10  ;;  %v2145_v12 = vsel %vm2144_vm11, %v4073_v7, %v2141_v60  ;;  %v6493_v7 = vld [vmem:[#allocation28_spill] sm:$0xff]  ;;  %v6509_v60 = vld [vmem:[#allocation53_spill] sm:$0xff] }
 0x40d   :  { %2331 = vmatpush.bf16.msra.mxu0 %v4383_v30  ;;  %2344 = vmatpush.bf16.msrb.mxu1 %v4380_v27  ;;  %v2150_v51 = vsel %vm2147_vm12, %v2149_v8, %v2145_v12  ;;  %v6512_v12 = vld [vmem:[#allocation56_spill] sm:$0xff]  ;;  %v6513_v8 = vld [vmem:[#allocation57_spill] sm:$0xff] }
 0x40e   :  { %2357 = vmatpush.bf16.msra.mxu2 %v4398_v44  ;;  %2370 = vmatpush.bf16.msra.mxu3 %v4386_v32 }
 0x411   :  { %2332 = vmatpush.bf16.msra.mxu0 %v4395_v43  ;;  %2345 = vmatpush.bf16.msrb.mxu1 %v4392_v39 }
 0x412   :  { %v4077_v56 = vpop.eup %4076  ;;  %2358 = vmatpush.bf16.msra.mxu2 %v4406_v54  ;;  %2371 = vmatpush.bf16.msra.mxu3 %v4400_v50 }
 0x413   :  { %v2156_v38 = vmul.f32 %v4077_v56, %v2150_v51  ;;  %v6514_v56 = vld [vmem:[#allocation58_spill] sm:$0xff]  ;;  %v6515_v51 = vld [vmem:[#allocation60_spill] sm:$0xff] }
 0x415   :  { %v2157_v61 = vpack.c.bf16 %v2156_v38, %v2156_v38  ;;  %2333 = vmatpush.bf16.msra.mxu0 %v4409_v57  ;;  %2346 = vmatpush.bf16.msrb.mxu1 %v4404_v53  ;;  %v6516_v38 = vld [vmem:[#allocation62_spill] sm:$0xff] }
 0x416   :  { %2359 = vmatpush.bf16.msra.mxu2 %v4421_v0  ;;  %2372 = vmatpush.bf16.msra.mxu3 %v4417_v63 }
 0x417   :  { %2219 = vmatmul.bf16.vlgmr.msrb.gmra.mxu0 %v2157_v61  ;;  %2232 = vmatmul.bf16.vlgmr.msra.gmra.mxu1 %v2157_v61 }
 0x418   :  { %2245 = vmatmul.bf16.vlgmr.msrb.gmra.mxu2 %v2157_v61  ;;  %2258 = vmatmul.bf16.vlgmr.msrb.gmra.mxu3 %v2157_v61 }
 0x419   :  { %2334 = vmatpush.bf16.msra.mxu0 %v4424_v1  ;;  %2347 = vmatpush.bf16.msrb.mxu1 %v4443_v16 }
 0x41a   :  { %2360 = vmatpush.bf16.msra.mxu2 %v4436_v13  ;;  %2373 = vmatpush.bf16.msra.mxu3 %v4438_v14 }
 0x41d   :  { %2335 = vmatpush.bf16.msra.mxu0 %v4441_v15  ;;  %2348 = vmatpush.bf16.msrb.mxu1 %v4449_v28 }
 0x41e   :  { %2361 = vmatpush.bf16.msra.mxu2 %v4452_v33  ;;  %2374 = vmatpush.bf16.msra.mxu3 %v4446_v23 }
 0x421   :  { %2336 = vmatpush.bf16.msra.mxu0 %v4455_v34  ;;  %2349 = vmatpush.bf16.msrb.mxu1 %v4482_v59 }
 0x422   :  { %2362 = vmatpush.bf16.msra.mxu2 %v4462_v42  ;;  %2375 = vmatpush.bf16.msra.mxu3 %v4458_v41 }
 0x425   :  { %2337 = vmatpush.bf16.msra.mxu0 %v4465_v47  ;;  %2350 = vmatpush.bf16.msrb.mxu1 %v4487_v2 }
 0x426   :  { %2363 = vmatpush.bf16.msra.mxu2 %v4474_v55  ;;  %2376 = vmatpush.bf16.msra.mxu3 %v4471_v52 }
 0x428   :  { %2338 = vmatmul.bf16.vlgmr.msra.gmra.mxu0 %v2157_v61  ;;  %2351 = vmatmul.bf16.vlgmr.msrb.gmra.mxu1 %v2157_v61 }
 0x429   :  { %2451 = vmatpush.bf16.msrb.mxu0 %v4531_v31  ;;  %2464 = vmatpush.bf16.msra.mxu1 %v4536_v45 }
 0x42a   :  { %2364 = vmatmul.bf16.vlgmr.msra.gmra.mxu2 %v2157_v61  ;;  %2377 = vmatmul.bf16.vlgmr.msra.gmra.mxu3 %v2157_v61  ;;  %v6517_v61 = vld [vmem:[#allocation64_spill] sm:$0xff] }
 0x42b   :  { %2477 = vmatpush.bf16.msrb.mxu2 %v4538_v46  ;;  %2490 = vmatpush.bf16.msrb.mxu3 %v6421_v21 }
 0x42d   :  { %2452 = vmatpush.bf16.msrb.mxu0 %v6492_v22  ;;  %2465 = vmatpush.bf16.msra.mxu1 %v6493_v7  ;;  %v6563_v22 = vld [vmem:[#allocation59_spill] sm:$0xff] }
 0x42f   :  { %2478 = vmatpush.bf16.msrb.mxu2 %v6494_v62  ;;  %2491 = vmatpush.bf16.msrb.mxu3 %v6495_v4 }
 0x431   :  { %2453 = vmatpush.bf16.msrb.mxu0 %v6496_v9  ;;  %2466 = vmatpush.bf16.msra.mxu1 %v6497_v58 }
 0x433   :  { %2479 = vmatpush.bf16.msrb.mxu2 %v6498_v37  ;;  %2492 = vmatpush.bf16.msrb.mxu3 %v6499_v17 }
 0x435   :  { %2454 = vmatpush.bf16.msrb.mxu0 %v6500_v5  ;;  %2467 = vmatpush.bf16.msra.mxu1 %v6501_v20  ;;  %v6552_v20 = vld [vmem:[#allocation106_spill] sm:$0xff]  ;;  %v6553_v5 = vld [vmem:[#allocation107_spill] sm:$0xff] }
 0x437   :  { %2480 = vmatpush.bf16.msrb.mxu2 %v6502_v6  ;;  %2493 = vmatpush.bf16.msrb.mxu3 %v6503_v35 }
 0x439   :  { %2455 = vmatpush.bf16.msrb.mxu0 %v6504_v24  ;;  %2468 = vmatpush.bf16.msra.mxu1 %v6505_v29 }
 0x43b   :  { %2481 = vmatpush.bf16.msrb.mxu2 %v6506_v11  ;;  %2494 = vmatpush.bf16.msrb.mxu3 %v6507_v3  ;;  %v6518_v3 = vld [vmem:[#allocation67_spill] sm:$0xff] }
 0x43d   :  { %2456 = vmatpush.bf16.msrb.mxu0 %v6508_v49  ;;  %2469 = vmatpush.bf16.msra.mxu1 %v6509_v60  ;;  %v6519_v49 = vld [vmem:[#allocation68_spill] sm:$0xff]  ;;  %v6520_v60 = vld [vmem:[#allocation65_spill] sm:$0xff] }
 0x43f   :  { %2482 = vmatpush.bf16.msrb.mxu2 %v6510_v48  ;;  %2495 = vmatpush.bf16.msrb.mxu3 %v6511_v25  ;;  %v6521_v48 = vld [vmem:[#allocation66_spill] sm:$0xff]  ;;  %v6522_v25 = vld [vmem:[#allocation69_spill] sm:$0xff] }
 0x441   :  { %2457 = vmatpush.bf16.msrb.mxu0 %v6512_v12  ;;  %2470 = vmatpush.bf16.msra.mxu1 %v6513_v8  ;;  %v6523_v12 = vld [vmem:[#allocation70_spill] sm:$0xff]  ;;  %v6524_v8 = vld [vmem:[#allocation71_spill] sm:$0xff] }
 0x443   :  { %2483 = vmatpush.bf16.msrb.mxu2 %v6514_v56  ;;  %2496 = vmatpush.bf16.msrb.mxu3 %v6515_v51  ;;  %v6525_v56 = vld [vmem:[#allocation72_spill] sm:$0xff]  ;;  %v6526_v51 = vld [vmem:[#allocation74_spill] sm:$0xff] }
 0x445   :  { %2458 = vmatpush.bf16.msrb.mxu0 %v6516_v38  ;;  %2471 = vmatpush.bf16.msra.mxu1 %v6517_v61  ;;  %v6527_v38 = vld [vmem:[#allocation77_spill] sm:$0xff]  ;;  %v6528_v61 = vld [vmem:[#allocation78_spill] sm:$0xff] }
 0x447   :  { %2484 = vmatpush.bf16.msrb.mxu2 %v6520_v60  ;;  %2497 = vmatpush.bf16.msrb.mxu3 %v6521_v48  ;;  %v6531_v60 = vld [vmem:[#allocation81_spill] sm:$0xff]  ;;  %v6532_v48 = vld [vmem:[#allocation83_spill] sm:$0xff] }
 0x449   :  { %2503 = vmatpush.bf16.msra.mxu0 %v6518_v3  ;;  %2516 = vmatpush.bf16.msrb.mxu1 %v6519_v49  ;;  %v6529_v3 = vld [vmem:[#allocation79_spill] sm:$0xff]  ;;  %v6530_v49 = vld [vmem:[#allocation80_spill] sm:$0xff] }
 0x44b   :  { %2529 = vmatpush.bf16.msra.mxu2 %v6522_v25  ;;  %2542 = vmatpush.bf16.msra.mxu3 %v6523_v12  ;;  %v6533_v25 = vld [vmem:[#allocation84_spill] sm:$0xff]  ;;  %v6534_v12 = vld [vmem:[#allocation86_spill] sm:$0xff] }
 0x44d   :  { %2504 = vmatpush.bf16.msra.mxu0 %v6524_v8  ;;  %2517 = vmatpush.bf16.msrb.mxu1 %v6525_v56  ;;  %v6535_v8 = vld [vmem:[#allocation87_spill] sm:$0xff]  ;;  %v6536_v56 = vld [vmem:[#allocation89_spill] sm:$0xff] }
 0x44f   :  { %2530 = vmatpush.bf16.msra.mxu2 %v6526_v51  ;;  %2543 = vmatpush.bf16.msra.mxu3 %v6527_v38  ;;  %v6537_v51 = vld [vmem:[#allocation90_spill] sm:$0xff]  ;;  %v6538_v38 = vld [vmem:[#allocation91_spill] sm:$0xff] }
 0x451   :  { %2505 = vmatpush.bf16.msra.mxu0 %v6528_v61  ;;  %2518 = vmatpush.bf16.msrb.mxu1 %v6529_v3  ;;  %v6539_v61 = vld [vmem:[#allocation92_spill] sm:$0xff]  ;;  %v6540_v3 = vld [vmem:[#allocation93_spill] sm:$0xff] }
 0x453   :  { %2531 = vmatpush.bf16.msra.mxu2 %v6530_v49  ;;  %2544 = vmatpush.bf16.msra.mxu3 %v6531_v60  ;;  %v6541_v49 = vld [vmem:[#allocation94_spill] sm:$0xff]  ;;  %v6542_v60 = vld [vmem:[#allocation95_spill] sm:$0xff] }
 0x455   :  { %2506 = vmatpush.bf16.msra.mxu0 %v6532_v48  ;;  %2519 = vmatpush.bf16.msrb.mxu1 %v6533_v25  ;;  %v6543_v48 = vld [vmem:[#allocation97_spill] sm:$0xff]  ;;  %v6544_v25 = vld [vmem:[#allocation98_spill] sm:$0xff] }
 0x457   :  { %2532 = vmatpush.bf16.msra.mxu2 %v6534_v12  ;;  %2545 = vmatpush.bf16.msra.mxu3 %v6535_v8  ;;  %v6545_v12 = vld [vmem:[#allocation99_spill] sm:$0xff]  ;;  %v6546_v8 = vld [vmem:[#allocation100_spill] sm:$0xff] }
 0x459   :  { %2507 = vmatpush.bf16.msra.mxu0 %v6536_v56  ;;  %2520 = vmatpush.bf16.msrb.mxu1 %v6537_v51  ;;  %v6547_v56 = vld [vmem:[#allocation101_spill] sm:$0xff]  ;;  %v6548_v51 = vld [vmem:[#allocation102_spill] sm:$0xff] }
 0x45b   :  { %2533 = vmatpush.bf16.msra.mxu2 %v6538_v38  ;;  %2546 = vmatpush.bf16.msra.mxu3 %v6539_v61  ;;  %v6549_v38 = vld [vmem:[#allocation103_spill] sm:$0xff]  ;;  %v6550_v61 = vld [vmem:[#allocation104_spill] sm:$0xff] }
 0x45d   :  { %2508 = vmatpush.bf16.msra.mxu0 %v6540_v3  ;;  %2521 = vmatpush.bf16.msrb.mxu1 %v6541_v49  ;;  %v6551_v3 = vld [vmem:[#allocation105_spill] sm:$0xff] }
 0x45f   :  { %2534 = vmatpush.bf16.msra.mxu2 %v6542_v60  ;;  %2547 = vmatpush.bf16.msra.mxu3 %v6543_v48 }
 0x461   :  { %2509 = vmatpush.bf16.msra.mxu0 %v6544_v25  ;;  %2522 = vmatpush.bf16.msrb.mxu1 %v6545_v12 }
 0x463   :  { %2535 = vmatpush.bf16.msra.mxu2 %v6546_v8  ;;  %2548 = vmatpush.bf16.msra.mxu3 %v6547_v56 }
 0x465   :  { %2510 = vmatpush.bf16.msra.mxu0 %v6548_v51  ;;  %2523 = vmatpush.bf16.msrb.mxu1 %v6549_v38 }
 0x467   :  { %2536 = vmatpush.bf16.msra.mxu2 %v6550_v61  ;;  %2549 = vmatpush.bf16.msra.mxu3 %v6551_v3 }
 0x484   :  { %v2168_v49 = vpop.f32.mrf.mxu0  ;;  %v2181_v60 = vpop.f32.mrf.mxu1 }
 0x48b   :  { %v2194_v11 = vpop.f32.mrf.mxu2  ;;  %v2207_v48 = vpop.f32.mrf.mxu3 }
 0x48c   :  { %v2170_v29 = vpop.f32.mrf.mxu0  ;;  %v2183_v25 = vpop.f32.mrf.mxu1 }
 0x48d   :  { %v6554_v25 = vld [vmem:[#allocation108_spill] sm:$0xff] }
 0x493   :  { %v2196_v24 = vpop.f32.mrf.mxu2  ;;  %v2209_v12 = vpop.f32.mrf.mxu3 }
 0x494   :  { %v2220_v35 = vpop.f32.mrf.mxu0  ;;  %v2233_v8 = vpop.f32.mrf.mxu1 }
 0x495   :  { %v2221_v6 = vadd.f32 %v2220_v35, %v2168_v49  ;;  %v2234_v56 = vadd.f32 %v2233_v8, %v2181_v60  ;;  %v6555_v8 = vld [vmem:[#allocation13_spill] sm:$0xff] }
 0x497   :  { %v2263_v51 = vadd.f32 %v2221_v6, %v6552_v20  ;;  %v2264_v38 = vadd.f32 %v2234_v56, %v6553_v5  ;;  %v6556_v56 = vld [vmem:[#allocation49_spill] sm:$0xff] }
 0x499   :  { %v3761_v17 = vmul.f32 -1.442695, %v2263_v51  ;;  %v3762_v61 = vmul.f32 -1.442695, %v2264_v38  ;;  %v6557_v51 = vld [vmem:[#allocation34_spill] sm:$0xff]  ;;  %v6558_v38 = vld [vmem:[#allocation76_spill] sm:$0xff] }
 0x49b   :  { %4078 = vpow2.f32 %v3761_v17  ;;  %v2246_v3 = vpop.f32.mrf.mxu2  ;;  %v2259_v37 = vpop.f32.mrf.mxu3  ;;  %v291_v17 = vadd.f32 %v6556_v56, %v6555_v8  ;;  %v6560_v8 = vld [vmem:[#allocation21_spill] sm:$0xff] }
 0x49c   :  { %4080 = vpow2.f32 %v3762_v61  ;;  %v2260_v58 = vadd.f32 %v2259_v37, %v2207_v48  ;;  %v2222_v9 = vpop.f32.mrf.mxu0  ;;  %v2235_v29 = vpop.f32.mrf.mxu1  ;;  %v320_v61 = vadd.f32 %v6558_v38, %v6557_v51  ;;  %v2247_v37 = vadd.f32 %v2246_v3, %v2194_v11  ;;  %v6561_v38 = vld [vmem:[#allocation61_spill] sm:$0xff] }
 0x49d   :  { %v378_v51 = vadd.f32 %v6561_v38, %v6560_v8 }
 0x49e   :  { %v2266_v24 = vadd.f32 %v2260_v58, %v6554_v25 }
 0x4a0   :  { %v3763_v12 = vmul.f32 -1.442695, %v2266_v24 }
 0x4a1   :  { %v4079_v4 = vpop.eup %4078 }
 0x4a2   :  { %v4081_v62 = vpop.eup %4080  ;;  %v2270_v35 = vadd.f32 1.0, %v4079_v4  ;;  %4082 = vpow2.f32 %v3763_v12 }
 0x4a3   :  { %v5556_v49 = vadd.f32 1.0, %v4081_v62  ;;  %v2248_v6 = vpop.f32.mrf.mxu2  ;;  %v2261_v60 = vpop.f32.mrf.mxu3 }
 0x4a4   :  { %4084 = vrcp.f32 %v2270_v35  ;;  %v6559_v60 = vld [vmem:[#allocation15_spill] sm:$0xff]  ;;  %vm2276_vm15 = vweird.f32 %v2270_v35 }
 0x4a5   :  { %4086 = vrcp.f32 %v5556_v49  ;;  %v2339_v9 = vpop.f32.mrf.mxu0  ;;  %v2352_v58 = vpop.f32.mrf.mxu1  ;;  %v2265_v25 = vadd.f32 %v2247_v37, %v6559_v60  ;;  %v2282_v37 = vand.u32 2147483648, %v2270_v35  ;;  %vm2295_vm0 = vweird.f32 %v5556_v49 }
 0x4a6   :  { %v2382_v48 = vadd.f32 %v2339_v9, %v291_v17  ;;  %v2383_v29 = vadd.f32 %v2352_v58, %v320_v61 }
 0x4a8   :  { %v4083_v4 = vpop.eup %4082  ;;  %v3764_v24 = vmul.f32 -1.442695, %v2382_v48  ;;  %v3765_v62 = vmul.f32 -1.442695, %v2383_v29 }
 0x4a9   :  { %v5563_v12 = vadd.f32 1.0, %v4083_v4  ;;  %v2280_v4 = vand.u32 2147483647, %v2270_v35 }
 0x4aa   :  { %v4085_v6 = vpop.eup %4084  ;;  %4088 = vpow2.f32 %v3764_v24  ;;  %v2301_v24 = vand.u32 2147483648, %v5556_v49 }
 0x4ab   :  { %v4087_v56 = vpop.eup %4086  ;;  %v2272_v5 = vmul.f32 %v4085_v6, %v2270_v35  ;;  %4090 = vrcp.f32 %v5563_v12  ;;  %vm2277_vm13 = vweird.f32 %v4085_v6  ;;  %vm2281_vm2 = vcmp.eq.f32.partialorder %v2280_v4, 8.507059e+37 }
 0x4ac   :  { %v2291_v11 = vmul.f32 %v4087_v56, %v5556_v49  ;;  %4092 = vpow2.f32 %v3765_v62  ;;  %vm2296_vm14 = vweird.f32 %v4087_v56  ;;  %v2299_v62 = vand.u32 2147483647, %v5556_v49  ;;  %vm2278_vm1 = vmor %vm2276_vm15, %vm2277_vm13 }
 0x4ad   :  { %v2365_v3 = vpop.f32.mrf.mxu2  ;;  %v2378_v17 = vpop.f32.mrf.mxu3  ;;  %v2273_v61 = vsub.f32 1.0, %v2272_v5  ;;  %4094 = vtanh.f32 %v2265_v25  ;;  %vm2297_vm3 = vmor %vm2295_vm0, %vm2296_vm14  ;;  %v2302_v35 = vor.u32 1.1754944e-38, %v2301_v24  ;;  %vm2315_vm6 = vweird.f32 %v5563_v12 }
 0x4ae   :  { %v2385_v9 = vadd.f32 %v2378_v17, %v378_v51  ;;  %v2341_v58 = vpop.f32.mrf.mxu0  ;;  %v2354_v48 = vpop.f32.mrf.mxu1  ;;  %v2292_v29 = vsub.f32 1.0, %v2291_v11  ;;  %v2283_v11 = vor.u32 1.1754944e-38, %v2282_v37  ;;  %vm2300_vm4 = vcmp.eq.f32.partialorder %v2299_v62, 8.507059e+37 }
 0x4af   :  { %v2274_v60 = vmul.f32 %v4085_v6, %v2273_v61  ;;  %v2321_v62 = vand.u32 2147483648, %v5563_v12 }
 0x4b0   :  { %v3766_v38 = vmul.f32 -1.442695, %v2385_v9  ;;  %v4089_v8 = vpop.eup %4088  ;;  %v2293_v20 = vmul.f32 %v4087_v56, %v2292_v29 }
 0x4b1   :  { %v5572_v7 = vpop.eup %4090  ;;  %v2275_v5 = vadd.f32 %v4085_v6, %v2274_v60  ;;  %v5575_v51 = vadd.f32 1.0, %v4089_v8 }
 0x4b2   :  { %4096 = vpow2.f32 %v3766_v38  ;;  %v4093_v25 = vpop.eup %4092  ;;  %v2294_v17 = vadd.f32 %v4087_v56, %v2293_v20  ;;  %v2311_v61 = vmul.f32 %v5572_v7, %v5563_v12  ;;  %vm2316_vm5 = vweird.f32 %v5572_v7 }
 0x4b3   :  { %v2279_v9 = vsel %vm2278_vm1, %v4085_v6, %v2275_v5  ;;  %4098 = vrcp.f32 %v5575_v51  ;;  %v5580_v58 = vadd.f32 1.0, %v4093_v25  ;;  %v4095_v49 = vpop.eup %4094  ;;  %v6562_v5 = vld [vmem:[#allocation20_spill] sm:$0xff]  ;;  %vm5600_vm7 = vmor %vm2315_vm6, %vm2316_vm5  ;;  %vm2395_vm9 = vweird.f32 %v5575_v51 }
 0x4b4   :  { %v2284_v60 = vsel %vm2281_vm2, %v2283_v11, %v2279_v9  ;;  %v2298_v8 = vsel %vm2297_vm3, %v4087_v56, %v2294_v17  ;;  %v2312_v48 = vsub.f32 1.0, %v2311_v61  ;;  %v349_v25 = vadd.f32 %v6563_v22, %v6562_v5  ;;  %v6592_v5 = vld [vmem:[#allocation64_spill] sm:$0xff] }
 0x4b5   :  { %v2367_v29 = vpop.f32.mrf.mxu2  ;;  %v2380_v38 = vpop.f32.mrf.mxu3  ;;  %v2303_v4 = vsel %vm2300_vm4, %v2302_v35, %v2298_v8  ;;  %v2326_v37 = vmul.f32 %v4095_v49, %v2284_v60  ;;  %4100 = vrcp.f32 %v5580_v58  ;;  %v2319_v22 = vand.u32 2147483647, %v5563_v12 }
 0x4b6   :  { %v2325_v20 = vmul.f32 %v2303_v4, %v5422_v40  ;;  %v2313_v24 = vmul.f32 %v5572_v7, %v2312_v48  ;;  %v2384_v17 = vadd.f32 %v2365_v3, %v349_v25  ;;  %v2401_v60 = vand.u32 2147483648, %v5575_v51 }
 0x4b7   :  { %v2322_v48 = vor.u32 1.1754944e-38, %v2321_v62  ;;  %v2399_v12 = vand.u32 2147483647, %v5575_v51  ;;  %v2420_v4 = vand.u32 2147483648, %v5580_v58  ;;  %vm2320_vm10 = vcmp.eq.f32.partialorder %v2319_v22, 8.507059e+37 }
 0x4b8   :  { %v4097_v6 = vpop.eup %4096  ;;  %v5587_v21 = vadd.f32 %v2326_v37, %v2325_v20  ;;  %v2314_v61 = vadd.f32 %v5572_v7, %v2313_v24  ;;  %v2418_v37 = vand.u32 2147483647, %v5580_v58  ;;  %vm2414_vm12 = vweird.f32 %v5580_v58 }
 0x4b9   :  { %v5589_v11 = vadd.f32 1.0, %v4097_v6  ;;  %v4099_v56 = vpop.eup %4098  ;;  %vm2400_vm14 = vcmp.eq.f32.partialorder %v2399_v12, 8.507059e+37 }
 0x4ba   :  { %4102 = vtanh.f32 %v5587_v21  ;;  %v2391_v40 = vmul.f32 %v4099_v56, %v5575_v51  ;;  %v2318_v8 = vsel %vm5600_vm7, %v5572_v7, %v2314_v61  ;;  %vm2396_vm8 = vweird.f32 %v4099_v56 }
 0x4bb   :  { %v4101_v35 = vpop.eup %4100  ;;  %4104 = vrcp.f32 %v5589_v11  ;;  %v2323_v25 = vsel %vm2320_vm10, %v2322_v48, %v2318_v8  ;;  %vm2397_vm13 = vmor %vm2395_vm9, %vm2396_vm8  ;;  %v2402_v7 = vor.u32 1.1754944e-38, %v2401_v60  ;;  %vm2419_vm0 = vcmp.eq.f32.partialorder %v2418_v37, 8.507059e+37 }
 0x4bc   :  { %v2392_v9 = vsub.f32 1.0, %v2391_v40  ;;  %v2410_v49 = vmul.f32 %v4101_v35, %v5580_v58  ;;  %4106 = vtanh.f32 %v2384_v17  ;;  %vm2415_vm11 = vweird.f32 %v4101_v35 }
 0x4bd   :  { %vm2416_vm15 = vmor %vm2414_vm12, %vm2415_vm11  ;;  %v2440_v12 = vand.u32 2147483648, %v5589_v11  ;;  %vm2434_vm2 = vweird.f32 %v5589_v11 }
 0x4be   :  { %v2411_v29 = vsub.f32 1.0, %v2410_v49  ;;  %v2393_v38 = vmul.f32 %v4099_v56, %v2392_v9  ;;  %v2421_v49 = vor.u32 1.1754944e-38, %v2420_v4 }
 0x4bf   :  { %v2441_v37 = vor.u32 1.1754944e-38, %v2440_v12  ;;  %v6584_v12 = vld [vmem:[#allocation53_spill] sm:$0xff] }
 0x4c0   :  { %v4103_v20 = vpop.eup %4102  ;;  %v2412_v24 = vmul.f32 %v4101_v35, %v2411_v29  ;;  %v2394_v6 = vadd.f32 %v4099_v56, %v2393_v38 }
 0x4c1   :  { %v4105_v17 = vpop.eup %4104  ;;  %v2329_v62 = vmul.f32 %v4103_v20, %v2323_v25  ;;  %v6566_v25 = vld [vmem:[#allocation22_spill] sm:$0xff] }
 0x4c2   :  { %v2398_v61 = vsel %vm2397_vm13, %v4099_v56, %v2394_v6  ;;  %v2413_v40 = vadd.f32 %v4101_v35, %v2412_v24  ;;  %v2430_v9 = vmul.f32 %v4105_v17, %v5589_v11  ;;  %v4107_v51 = vpop.eup %4106  ;;  %vm2435_vm1 = vweird.f32 %v4105_v17 }
 0x4c3   :  { %v2403_v22 = vsel %vm2400_vm14, %v2402_v7, %v2398_v61  ;;  %v2450_v3 = vpack.c.bf16 %v2329_v62, %v2329_v62  ;;  %vm2436_vm3 = vmor %vm2434_vm2, %vm2435_vm1  ;;  %v6568_v7 = vld [vmem:[#allocation28_spill] sm:$0xff]  ;;  %v6569_v62 = vld [vmem:[#allocation29_spill] sm:$0xff] }
 0x4c4   :  { %v2417_v29 = vsel %vm2416_vm15, %v4101_v35, %v2413_v40  ;;  %v2445_v38 = vmul.f32 %v4107_v51, %v2403_v22  ;;  %v2431_v8 = vsub.f32 1.0, %v2430_v9  ;;  %v6570_v61 = vld [vmem:[#allocation30_spill] sm:$0xff]  ;;  %v6571_v40 = vld [vmem:[#allocation31_spill] sm:$0xff]  ;;  %v6572_v9 = vld [vmem:[#allocation32_spill] sm:$0xff] }
 0x4c5   :  { %v2422_v48 = vsel %vm2419_vm0, %v2421_v49, %v2417_v29  ;;  %2459 = vmatmul.bf16.vlgmr.msrb.gmra.mxu0 %v2450_v3  ;;  %2472 = vmatmul.bf16.vlgmr.msra.gmra.mxu1 %v2450_v3  ;;  %v6573_v51 = vld [vmem:[#allocation33_spill] sm:$0xff]  ;;  %v6574_v49 = vld [vmem:[#allocation36_spill] sm:$0xff]  ;;  %v6575_v22 = vld [vmem:[#allocation39_spill] sm:$0xff] }
 0x4c6   :  { %v2444_v58 = vmul.f32 %v2422_v48, %v5453_v10  ;;  %v2432_v60 = vmul.f32 %v4105_v17, %v2431_v8  ;;  %2485 = vmatmul.bf16.vlgmr.msrb.gmra.mxu2 %v2450_v3  ;;  %2498 = vmatmul.bf16.vlgmr.msrb.gmra.mxu3 %v2450_v3  ;;  %v2438_v10 = vand.u32 2147483647, %v5589_v11  ;;  %v6576_v3 = vld [vmem:[#allocation41_spill] sm:$0xff]  ;;  %v6577_v29 = vld [vmem:[#allocation42_spill] sm:$0xff]  ;;  %v6579_v8 = vld [vmem:[#allocation44_spill] sm:$0xff] }
 0x4c7   :  { %2622 = vmatpush.bf16.msrb.mxu0 %v4367_v19  ;;  %2635 = vmatpush.bf16.msra.mxu1 %v4365_v18  ;;  %v6580_v48 = vld [vmem:[#allocation45_spill] sm:$0xff] }
 0x4c8   :  { %v5617_v56 = vadd.f32 %v2445_v38, %v2444_v58  ;;  %2648 = vmatpush.bf16.msrb.mxu2 %v4388_v36  ;;  %2661 = vmatpush.bf16.msrb.mxu3 %v4375_v26  ;;  %v2433_v35 = vadd.f32 %v4105_v17, %v2432_v60  ;;  %vm2439_vm4 = vcmp.eq.f32.partialorder %v2438_v10, 8.507059e+37  ;;  %v6578_v38 = vld [vmem:[#allocation43_spill] sm:$0xff]  ;;  %v6581_v58 = vld [vmem:[#allocation46_spill] sm:$0xff] }
 0x4c9   :  { %v6582_v60 = vld [vmem:[#allocation47_spill] sm:$0xff]  ;;  %v6585_v10 = vld [vmem:[#allocation54_spill] sm:$0xff] }
 0x4ca   :  { %4108 = vtanh.f32 %v5617_v56  ;;  %v2437_v4 = vsel %vm2436_vm3, %v4105_v17, %v2433_v35  ;;  %v6567_v17 = vld [vmem:[#allocation27_spill] sm:$0xff]  ;;  %v6583_v35 = vld [vmem:[#allocation52_spill] sm:$0xff] }
 0x4cb   :  { %2623 = vmatpush.bf16.msrb.mxu0 %v4383_v30  ;;  %2636 = vmatpush.bf16.msra.mxu1 %v4380_v27  ;;  %v2442_v24 = vsel %vm2439_vm4, %v2441_v37, %v2437_v4  ;;  %v6586_v4 = vld [vmem:[#allocation55_spill] sm:$0xff]  ;;  %v6587_v37 = vld [vmem:[#allocation56_spill] sm:$0xff] }
 0x4cc   :  { %2649 = vmatpush.bf16.msrb.mxu2 %v4398_v44  ;;  %2662 = vmatpush.bf16.msrb.mxu3 %v4386_v32 }
 0x4cf   :  { %2624 = vmatpush.bf16.msrb.mxu0 %v4395_v43  ;;  %2637 = vmatpush.bf16.msra.mxu1 %v4392_v39 }
 0x4d0   :  { %v4109_v20 = vpop.eup %4108  ;;  %2650 = vmatpush.bf16.msrb.mxu2 %v4406_v54  ;;  %2663 = vmatpush.bf16.msrb.mxu3 %v4400_v50 }
 0x4d1   :  { %v2448_v11 = vmul.f32 %v4109_v20, %v2442_v24  ;;  %v6588_v20 = vld [vmem:[#allocation57_spill] sm:$0xff]  ;;  %v6589_v24 = vld [vmem:[#allocation58_spill] sm:$0xff] }
 0x4d3   :  { %v2449_v6 = vpack.c.bf16 %v2448_v11, %v2448_v11  ;;  %2625 = vmatpush.bf16.msrb.mxu0 %v4409_v57  ;;  %2638 = vmatpush.bf16.msra.mxu1 %v4404_v53  ;;  %v6590_v11 = vld [vmem:[#allocation60_spill] sm:$0xff] }
 0x4d4   :  { %2651 = vmatpush.bf16.msrb.mxu2 %v4421_v0  ;;  %2664 = vmatpush.bf16.msrb.mxu3 %v4417_v63 }
 0x4d5   :  { %2511 = vmatmul.bf16.vlgmr.msra.gmra.mxu0 %v2449_v6  ;;  %2524 = vmatmul.bf16.vlgmr.msrb.gmra.mxu1 %v2449_v6 }
 0x4d6   :  { %2537 = vmatmul.bf16.vlgmr.msra.gmra.mxu2 %v2449_v6  ;;  %2550 = vmatmul.bf16.vlgmr.msra.gmra.mxu3 %v2449_v6 }
 0x4d7   :  { %2626 = vmatpush.bf16.msrb.mxu0 %v4424_v1  ;;  %2639 = vmatpush.bf16.msra.mxu1 %v4443_v16 }
 0x4d8   :  { %2652 = vmatpush.bf16.msrb.mxu2 %v4436_v13  ;;  %2665 = vmatpush.bf16.msrb.mxu3 %v4438_v14 }
 0x4db   :  { %2627 = vmatpush.bf16.msrb.mxu0 %v4441_v15  ;;  %2640 = vmatpush.bf16.msra.mxu1 %v4449_v28 }
 0x4dc   :  { %2653 = vmatpush.bf16.msrb.mxu2 %v4452_v33  ;;  %2666 = vmatpush.bf16.msrb.mxu3 %v4446_v23 }
 0x4df   :  { %2628 = vmatpush.bf16.msrb.mxu0 %v4455_v34  ;;  %2641 = vmatpush.bf16.msra.mxu1 %v4482_v59 }
 0x4e0   :  { %2654 = vmatpush.bf16.msrb.mxu2 %v4462_v42  ;;  %2667 = vmatpush.bf16.msrb.mxu3 %v4458_v41 }
 0x4e3   :  { %2629 = vmatpush.bf16.msrb.mxu0 %v4465_v47  ;;  %2642 = vmatpush.bf16.msra.mxu1 %v4487_v2 }
 0x4e4   :  { %2655 = vmatpush.bf16.msrb.mxu2 %v4474_v55  ;;  %2668 = vmatpush.bf16.msrb.mxu3 %v4471_v52 }
 0x4e6   :  { %2630 = vmatmul.bf16.vlgmr.msrb.gmra.mxu0 %v2449_v6  ;;  %2643 = vmatmul.bf16.vlgmr.msra.gmra.mxu1 %v2449_v6 }
 0x4e7   :  { %2743 = vmatpush.bf16.msra.mxu0 %v4531_v31  ;;  %2756 = vmatpush.bf16.msrb.mxu1 %v4536_v45 }
 0x4e8   :  { %2656 = vmatmul.bf16.vlgmr.msrb.gmra.mxu2 %v2449_v6  ;;  %2669 = vmatmul.bf16.vlgmr.msrb.gmra.mxu3 %v2449_v6  ;;  %v6591_v6 = vld [vmem:[#allocation62_spill] sm:$0xff] }
 0x4e9   :  { %2769 = vmatpush.bf16.msra.mxu2 %v4538_v46  ;;  %2782 = vmatpush.bf16.msra.mxu3 %v6566_v25 }
 0x4eb   :  { %2744 = vmatpush.bf16.msra.mxu0 %v6567_v17  ;;  %2757 = vmatpush.bf16.msrb.mxu1 %v6568_v7 }
 0x4ed   :  { %2770 = vmatpush.bf16.msra.mxu2 %v6569_v62  ;;  %2783 = vmatpush.bf16.msra.mxu3 %v6570_v61 }
 0x4ef   :  { %2745 = vmatpush.bf16.msra.mxu0 %v6571_v40  ;;  %2758 = vmatpush.bf16.msrb.mxu1 %v6572_v9 }
 0x4f1   :  { %2771 = vmatpush.bf16.msra.mxu2 %v6573_v51  ;;  %2784 = vmatpush.bf16.msra.mxu3 %v6574_v49 }
 0x4f3   :  { %2746 = vmatpush.bf16.msra.mxu0 %v6575_v22  ;;  %2759 = vmatpush.bf16.msrb.mxu1 %v6576_v3  ;;  %v6627_v3 = vld [vmem:[#allocation106_spill] sm:$0xff]  ;;  %v6628_v22 = vld [vmem:[#allocation107_spill] sm:$0xff] }
 0x4f5   :  { %2772 = vmatpush.bf16.msra.mxu2 %v6577_v29  ;;  %2785 = vmatpush.bf16.msra.mxu3 %v6578_v38 }
 0x4f7   :  { %2747 = vmatpush.bf16.msra.mxu0 %v6579_v8  ;;  %2760 = vmatpush.bf16.msrb.mxu1 %v6580_v48 }
 0x4f9   :  { %2773 = vmatpush.bf16.msra.mxu2 %v6581_v58  ;;  %2786 = vmatpush.bf16.msra.mxu3 %v6582_v60  ;;  %v6593_v60 = vld [vmem:[#allocation67_spill] sm:$0xff] }
 0x4fb   :  { %2748 = vmatpush.bf16.msra.mxu0 %v6583_v35  ;;  %2761 = vmatpush.bf16.msrb.mxu1 %v6584_v12  ;;  %v6594_v35 = vld [vmem:[#allocation68_spill] sm:$0xff]  ;;  %v6595_v12 = vld [vmem:[#allocation65_spill] sm:$0xff] }
 0x4fd   :  { %2774 = vmatpush.bf16.msra.mxu2 %v6585_v10  ;;  %2787 = vmatpush.bf16.msra.mxu3 %v6586_v4  ;;  %v6596_v10 = vld [vmem:[#allocation66_spill] sm:$0xff]  ;;  %v6597_v4 = vld [vmem:[#allocation69_spill] sm:$0xff] }
 0x4ff   :  { %2749 = vmatpush.bf16.msra.mxu0 %v6587_v37  ;;  %2762 = vmatpush.bf16.msrb.mxu1 %v6588_v20  ;;  %v6598_v37 = vld [vmem:[#allocation70_spill] sm:$0xff]  ;;  %v6599_v20 = vld [vmem:[#allocation71_spill] sm:$0xff] }
 0x501   :  { %2775 = vmatpush.bf16.msra.mxu2 %v6589_v24  ;;  %2788 = vmatpush.bf16.msra.mxu3 %v6590_v11  ;;  %v6600_v24 = vld [vmem:[#allocation72_spill] sm:$0xff]  ;;  %v6601_v11 = vld [vmem:[#allocation74_spill] sm:$0xff] }
 0x503   :  { %2750 = vmatpush.bf16.msra.mxu0 %v6591_v6  ;;  %2763 = vmatpush.bf16.msrb.mxu1 %v6592_v5  ;;  %v6602_v6 = vld [vmem:[#allocation77_spill] sm:$0xff]  ;;  %v6603_v5 = vld [vmem:[#allocation78_spill] sm:$0xff] }
 0x505   :  { %2776 = vmatpush.bf16.msra.mxu2 %v6595_v12  ;;  %2789 = vmatpush.bf16.msra.mxu3 %v6596_v10  ;;  %v6606_v12 = vld [vmem:[#allocation81_spill] sm:$0xff]  ;;  %v6607_v10 = vld [vmem:[#allocation83_spill] sm:$0xff] }
 0x507   :  { %2795 = vmatpush.bf16.msrb.mxu0 %v6593_v60  ;;  %2808 = vmatpush.bf16.msra.mxu1 %v6594_v35  ;;  %v6604_v60 = vld [vmem:[#allocation79_spill] sm:$0xff]  ;;  %v6605_v35 = vld [vmem:[#allocation80_spill] sm:$0xff] }
 0x509   :  { %2821 = vmatpush.bf16.msrb.mxu2 %v6597_v4  ;;  %2834 = vmatpush.bf16.msrb.mxu3 %v6598_v37  ;;  %v6608_v4 = vld [vmem:[#allocation84_spill] sm:$0xff]  ;;  %v6609_v37 = vld [vmem:[#allocation86_spill] sm:$0xff] }
 0x50b   :  { %2796 = vmatpush.bf16.msrb.mxu0 %v6599_v20  ;;  %2809 = vmatpush.bf16.msra.mxu1 %v6600_v24  ;;  %v6610_v20 = vld [vmem:[#allocation87_spill] sm:$0xff]  ;;  %v6611_v24 = vld [vmem:[#allocation89_spill] sm:$0xff] }
 0x50d   :  { %2822 = vmatpush.bf16.msrb.mxu2 %v6601_v11  ;;  %2835 = vmatpush.bf16.msrb.mxu3 %v6602_v6  ;;  %v6612_v11 = vld [vmem:[#allocation90_spill] sm:$0xff]  ;;  %v6613_v6 = vld [vmem:[#allocation91_spill] sm:$0xff] }
 0x50f   :  { %2797 = vmatpush.bf16.msrb.mxu0 %v6603_v5  ;;  %2810 = vmatpush.bf16.msra.mxu1 %v6604_v60  ;;  %v6614_v5 = vld [vmem:[#allocation92_spill] sm:$0xff]  ;;  %v6615_v60 = vld [vmem:[#allocation93_spill] sm:$0xff] }
 0x511   :  { %2823 = vmatpush.bf16.msrb.mxu2 %v6605_v35  ;;  %2836 = vmatpush.bf16.msrb.mxu3 %v6606_v12  ;;  %v6616_v35 = vld [vmem:[#allocation94_spill] sm:$0xff]  ;;  %v6617_v12 = vld [vmem:[#allocation95_spill] sm:$0xff] }
 0x513   :  { %2798 = vmatpush.bf16.msrb.mxu0 %v6607_v10  ;;  %2811 = vmatpush.bf16.msra.mxu1 %v6608_v4  ;;  %v6618_v10 = vld [vmem:[#allocation97_spill] sm:$0xff]  ;;  %v6619_v4 = vld [vmem:[#allocation98_spill] sm:$0xff] }
 0x515   :  { %2824 = vmatpush.bf16.msrb.mxu2 %v6609_v37  ;;  %2837 = vmatpush.bf16.msrb.mxu3 %v6610_v20  ;;  %v6620_v37 = vld [vmem:[#allocation99_spill] sm:$0xff]  ;;  %v6621_v20 = vld [vmem:[#allocation100_spill] sm:$0xff] }
 0x517   :  { %2799 = vmatpush.bf16.msrb.mxu0 %v6611_v24  ;;  %2812 = vmatpush.bf16.msra.mxu1 %v6612_v11  ;;  %v6622_v24 = vld [vmem:[#allocation101_spill] sm:$0xff]  ;;  %v6623_v11 = vld [vmem:[#allocation102_spill] sm:$0xff] }
 0x519   :  { %2825 = vmatpush.bf16.msrb.mxu2 %v6613_v6  ;;  %2838 = vmatpush.bf16.msrb.mxu3 %v6614_v5  ;;  %v6624_v6 = vld [vmem:[#allocation103_spill] sm:$0xff]  ;;  %v6625_v5 = vld [vmem:[#allocation104_spill] sm:$0xff] }
 0x51b   :  { %2800 = vmatpush.bf16.msrb.mxu0 %v6615_v60  ;;  %2813 = vmatpush.bf16.msra.mxu1 %v6616_v35  ;;  %v6626_v60 = vld [vmem:[#allocation105_spill] sm:$0xff] }
 0x51d   :  { %2826 = vmatpush.bf16.msrb.mxu2 %v6617_v12  ;;  %2839 = vmatpush.bf16.msrb.mxu3 %v6618_v10 }
 0x51f   :  { %2801 = vmatpush.bf16.msrb.mxu0 %v6619_v4  ;;  %2814 = vmatpush.bf16.msra.mxu1 %v6620_v37 }
 0x521   :  { %2827 = vmatpush.bf16.msrb.mxu2 %v6621_v20  ;;  %2840 = vmatpush.bf16.msrb.mxu3 %v6622_v24 }
 0x523   :  { %2802 = vmatpush.bf16.msrb.mxu0 %v6623_v11  ;;  %2815 = vmatpush.bf16.msra.mxu1 %v6624_v6 }
 0x525   :  { %2828 = vmatpush.bf16.msrb.mxu2 %v6625_v5  ;;  %2841 = vmatpush.bf16.msrb.mxu3 %v6626_v60 }
 0x542   :  { %v2460_v35 = vpop.f32.mrf.mxu0  ;;  %v2473_v12 = vpop.f32.mrf.mxu1 }
 0x549   :  { %v2486_v58 = vpop.f32.mrf.mxu2  ;;  %v2499_v10 = vpop.f32.mrf.mxu3 }
 0x54a   :  { %v2462_v48 = vpop.f32.mrf.mxu0  ;;  %v2475_v4 = vpop.f32.mrf.mxu1 }
 0x54b   :  { %v6629_v4 = vld [vmem:[#allocation108_spill] sm:$0xff] }
 0x551   :  { %v2488_v8 = vpop.f32.mrf.mxu2  ;;  %v2501_v37 = vpop.f32.mrf.mxu3 }
 0x552   :  { %v2512_v38 = vpop.f32.mrf.mxu0  ;;  %v2525_v20 = vpop.f32.mrf.mxu1 }
 0x553   :  { %v2513_v29 = vadd.f32 %v2512_v38, %v2460_v35  ;;  %v2526_v24 = vadd.f32 %v2525_v20, %v2473_v12 }
 0x555   :  { %v2555_v11 = vadd.f32 %v2513_v29, %v6627_v3  ;;  %v2556_v6 = vadd.f32 %v2526_v24, %v6628_v22 }
 0x557   :  { %v3767_v49 = vmul.f32 -1.442695, %v2555_v11  ;;  %v3768_v5 = vmul.f32 -1.442695, %v2556_v6  ;;  %v6630_v11 = vld [vmem:[#allocation14_spill] sm:$0xff] }
 0x559   :  { %4110 = vpow2.f32 %v3767_v49  ;;  %v2538_v60 = vpop.f32.mrf.mxu2  ;;  %v2551_v51 = vpop.f32.mrf.mxu3 }
 0x55a   :  { %4112 = vpow2.f32 %v3768_v5  ;;  %v2552_v9 = vadd.f32 %v2551_v51, %v2499_v10  ;;  %v2514_v40 = vpop.f32.mrf.mxu0  ;;  %v2527_v48 = vpop.f32.mrf.mxu1  ;;  %v2539_v24 = vadd.f32 %v2538_v60, %v2486_v58  ;;  %v6631_v51 = vld [vmem:[#allocation88_spill] sm:$0xff] }
 0x55c   :  { %v2558_v8 = vadd.f32 %v2552_v9, %v6629_v4 }
 0x55e   :  { %v3769_v37 = vmul.f32 -1.442695, %v2558_v8 }
 0x55f   :  { %v4111_v61 = vpop.eup %4110 }
 0x560   :  { %v4113_v62 = vpop.eup %4112  ;;  %v2562_v38 = vadd.f32 1.0, %v4111_v61  ;;  %4114 = vpow2.f32 %v3769_v37  ;;  %v6632_v61 = vld [vmem:[#allocation15_spill] sm:$0xff] }
 0x561   :  { %v2581_v35 = vadd.f32 1.0, %v4113_v62  ;;  %v2540_v29 = vpop.f32.mrf.mxu2  ;;  %v2553_v12 = vpop.f32.mrf.mxu3  ;;  %v2557_v37 = vadd.f32 %v2539_v24, %v6632_v61 }
 0x562   :  { %4116 = vrcp.f32 %v2562_v38  ;;  %v2574_v4 = vand.u32 2147483648, %v2562_v38  ;;  %vm2568_vm7 = vweird.f32 %v2562_v38 }
 0x563   :  { %4118 = vrcp.f32 %v2581_v35  ;;  %v2631_v20 = vpop.f32.mrf.mxu0  ;;  %v2644_v49 = vpop.f32.mrf.mxu1  ;;  %v2593_v22 = vand.u32 2147483648, %v2581_v35  ;;  %vm2587_vm8 = vweird.f32 %v2581_v35 }
 0x564   :  { %v2674_v5 = vadd.f32 %v2631_v20, %v6630_v11  ;;  %v2675_v40 = vadd.f32 %v2644_v49, %v6631_v51  ;;  %v6633_v11 = vld [vmem:[#allocation75_spill] sm:$0xff] }
 0x566   :  { %v4115_v10 = vpop.eup %4114  ;;  %v3770_v6 = vmul.f32 -1.442695, %v2674_v5  ;;  %v3771_v9 = vmul.f32 -1.442695, %v2675_v40 }
 0x567   :  { %v5722_v48 = vadd.f32 1.0, %v4115_v10  ;;  %v2572_v10 = vand.u32 2147483647, %v2562_v38 }
 0x568   :  { %v4117_v8 = vpop.eup %4116  ;;  %4120 = vpow2.f32 %v3770_v6 }
 0x569   :  { %v4119_v62 = vpop.eup %4118  ;;  %v2564_v29 = vmul.f32 %v4117_v8, %v2562_v38  ;;  %4122 = vrcp.f32 %v5722_v48  ;;  %vm2569_vm5 = vweird.f32 %v4117_v8  ;;  %vm2573_vm10 = vcmp.eq.f32.partialorder %v2572_v10, 8.507059e+37 }
 0x56a   :  { %v2583_v12 = vmul.f32 %v4119_v62, %v2581_v35  ;;  %4124 = vpow2.f32 %v3771_v9  ;;  %vm2588_vm6 = vweird.f32 %v4119_v62  ;;  %v2591_v9 = vand.u32 2147483647, %v2581_v35  ;;  %vm2570_vm9 = vmor %vm2568_vm7, %vm2569_vm5 }
 0x56b   :  { %v2657_v58 = vpop.f32.mrf.mxu2  ;;  %v2670_v60 = vpop.f32.mrf.mxu3  ;;  %v2565_v20 = vsub.f32 1.0, %v2564_v29  ;;  %4126 = vtanh.f32 %v2557_v37  ;;  %v2575_v37 = vor.u32 1.1754944e-38, %v2574_v4  ;;  %vm2589_vm11 = vmor %vm2587_vm8, %vm2588_vm6  ;;  %vm2607_vm14 = vweird.f32 %v5722_v48 }
 0x56c   :  { %v2677_v49 = vadd.f32 %v2670_v60, %v6633_v11  ;;  %v2633_v51 = vpop.f32.mrf.mxu0  ;;  %v2646_v5 = vpop.f32.mrf.mxu1  ;;  %v2584_v40 = vsub.f32 1.0, %v2583_v12  ;;  %vm2592_vm12 = vcmp.eq.f32.partialorder %v2591_v9, 8.507059e+37  ;;  %v6634_v9 = vld [vmem:[#allocation73_spill] sm:$0xff] }
 0x56d   :  { %v2566_v24 = vmul.f32 %v4117_v8, %v2565_v20 }
 0x56e   :  { %v3772_v6 = vmul.f32 -1.442695, %v2677_v49  ;;  %v4121_v61 = vpop.eup %4120  ;;  %v2585_v3 = vmul.f32 %v4119_v62, %v2584_v40  ;;  %v2594_v49 = vor.u32 1.1754944e-38, %v2593_v22 }
 0x56f   :  { %v5727_v7 = vpop.eup %4122  ;;  %v2567_v29 = vadd.f32 %v4117_v8, %v2566_v24  ;;  %v5729_v60 = vadd.f32 1.0, %v4121_v61 }
 0x570   :  { %4128 = vpow2.f32 %v3772_v6  ;;  %v4125_v12 = vpop.eup %4124  ;;  %v2586_v11 = vadd.f32 %v4119_v62, %v2585_v3  ;;  %v2603_v20 = vmul.f32 %v5727_v7, %v5722_v48  ;;  %vm2608_vm13 = vweird.f32 %v5727_v7 }
 0x571   :  { %v2571_v51 = vsel %vm2570_vm9, %v4117_v8, %v2567_v29  ;;  %4130 = vrcp.f32 %v5729_v60  ;;  %v5734_v38 = vadd.f32 1.0, %v4125_v12  ;;  %v4127_v35 = vpop.eup %4126  ;;  %vm5753_vm15 = vmor %vm2607_vm14, %vm2608_vm13  ;;  %vm2687_vm1 = vweird.f32 %v5729_v60 }
 0x572   :  { %v2576_v5 = vsel %vm2573_vm10, %v2575_v37, %v2571_v51  ;;  %v2590_v61 = vsel %vm2589_vm11, %v4119_v62, %v2586_v11  ;;  %v2604_v40 = vsub.f32 1.0, %v2603_v20  ;;  %v2613_v62 = vand.u32 2147483648, %v5722_v48 }
 0x573   :  { %v2659_v24 = vpop.f32.mrf.mxu2  ;;  %v2672_v6 = vpop.f32.mrf.mxu3  ;;  %v2595_v10 = vsel %vm2592_vm12, %v2594_v49, %v2590_v61  ;;  %v2618_v4 = vmul.f32 %v4127_v35, %v2576_v5  ;;  %4132 = vrcp.f32 %v5734_v38  ;;  %v2676_v37 = vadd.f32 %v2657_v58, %v6634_v9 }
 0x574   :  { %v2617_v3 = vmul.f32 %v2595_v10, %v5587_v21  ;;  %v2605_v22 = vmul.f32 %v5727_v7, %v2604_v40  ;;  %v2611_v49 = vand.u32 2147483647, %v5722_v48  ;;  %v2693_v5 = vand.u32 2147483648, %v5729_v60 }
 0x575   :  { %v2614_v40 = vor.u32 1.1754944e-38, %v2613_v62  ;;  %v2691_v48 = vand.u32 2147483647, %v5729_v60  ;;  %v2712_v10 = vand.u32 2147483648, %v5734_v38  ;;  %vm2706_vm4 = vweird.f32 %v5734_v38 }
 0x576   :  { %v4129_v8 = vpop.eup %4128  ;;  %v5739_v29 = vadd.f32 %v2618_v4, %v2617_v3  ;;  %v2606_v11 = vadd.f32 %v5727_v7, %v2605_v22  ;;  %v2710_v4 = vand.u32 2147483647, %v5734_v38  ;;  %vm2612_vm2 = vcmp.eq.f32.partialorder %v2611_v49, 8.507059e+37 }
 0x577   :  { %v5741_v12 = vadd.f32 1.0, %v4129_v8  ;;  %v4131_v17 = vpop.eup %4130  ;;  %vm2692_vm6 = vcmp.eq.f32.partialorder %v2691_v48, 8.507059e+37 }
 0x578   :  { %4134 = vtanh.f32 %v5739_v29  ;;  %v2683_v21 = vmul.f32 %v4131_v17, %v5729_v60  ;;  %v2610_v61 = vsel %vm5753_vm15, %v5727_v7, %v2606_v11  ;;  %vm2688_vm0 = vweird.f32 %v4131_v17 }
 0x579   :  { %v4133_v20 = vpop.eup %4132  ;;  %4136 = vrcp.f32 %v5741_v12  ;;  %v2615_v9 = vsel %vm2612_vm2, %v2614_v40, %v2610_v61  ;;  %vm2689_vm5 = vmor %vm2687_vm1, %vm2688_vm0  ;;  %v2694_v7 = vor.u32 1.1754944e-38, %v2693_v5  ;;  %vm2711_vm8 = vcmp.eq.f32.partialorder %v2710_v4, 8.507059e+37  ;;  %v6669_v4 = vld [vmem:[#allocation71_spill] sm:$0xff] }
 0x57a   :  { %v2684_v51 = vsub.f32 1.0, %v2683_v21  ;;  %v2702_v35 = vmul.f32 %v4133_v20, %v5734_v38  ;;  %4138 = vtanh.f32 %v2676_v37  ;;  %vm2707_vm3 = vweird.f32 %v4133_v20 }
 0x57b   :  { %vm2708_vm7 = vmor %vm2706_vm4, %vm2707_vm3  ;;  %v2732_v48 = vand.u32 2147483648, %v5741_v12  ;;  %vm2726_vm10 = vweird.f32 %v5741_v12 }
 0x57c   :  { %v2703_v24 = vsub.f32 1.0, %v2702_v35  ;;  %v2685_v6 = vmul.f32 %v4131_v17, %v2684_v51  ;;  %v2713_v35 = vor.u32 1.1754944e-38, %v2712_v10  ;;  %v6668_v10 = vld [vmem:[#allocation70_spill] sm:$0xff] }
 0x57e   :  { %v4135_v3 = vpop.eup %4134  ;;  %v2704_v22 = vmul.f32 %v4133_v20, %v2703_v24  ;;  %v2686_v8 = vadd.f32 %v4131_v17, %v2685_v6 }
 0x57f   :  { %v4137_v37 = vpop.eup %4136  ;;  %v2621_v62 = vmul.f32 %v4135_v3, %v2615_v9  ;;  %v6670_v3 = vld [vmem:[#allocation72_spill] sm:$0xff]  ;;  %v6673_v9 = vld [vmem:[#allocation78_spill] sm:$0xff] }
 0x580   :  { %v2690_v11 = vsel %vm2689_vm5, %v4131_v17, %v2686_v8  ;;  %v2705_v21 = vadd.f32 %v4133_v20, %v2704_v22  ;;  %v2722_v51 = vmul.f32 %v4137_v37, %v5741_v12  ;;  %v4139_v60 = vpop.eup %4138  ;;  %vm2727_vm9 = vweird.f32 %v4137_v37  ;;  %v6671_v22 = vld [vmem:[#allocation74_spill] sm:$0xff]  ;;  %v6672_v8 = vld [vmem:[#allocation77_spill] sm:$0xff] }
 0x581   :  { %v2695_v49 = vsel %vm2692_vm6, %v2694_v7, %v2690_v11  ;;  %v2742_v58 = vpack.c.bf16 %v2621_v62, %v2621_v62  ;;  %vm2728_vm11 = vmor %vm2726_vm10, %vm2727_vm9  ;;  %v6675_v7 = vld [vmem:[#allocation80_spill] sm:$0xff]  ;;  %v6676_v62 = vld [vmem:[#allocation81_spill] sm:$0xff] }
 0x582   :  { %v2709_v24 = vsel %vm2708_vm7, %v4133_v20, %v2705_v21  ;;  %v2737_v6 = vmul.f32 %v4139_v60, %v2695_v49  ;;  %v2723_v61 = vsub.f32 1.0, %v2722_v51  ;;  %v6677_v11 = vld [vmem:[#allocation83_spill] sm:$0xff]  ;;  %v6678_v21 = vld [vmem:[#allocation84_spill] sm:$0xff]  ;;  %v6679_v51 = vld [vmem:[#allocation86_spill] sm:$0xff] }
 0x583   :  { %v2714_v40 = vsel %vm2711_vm8, %v2713_v35, %v2709_v24  ;;  %2751 = vmatmul.bf16.vlgmr.msra.gmra.mxu0 %v2742_v58  ;;  %2764 = vmatmul.bf16.vlgmr.msrb.gmra.mxu1 %v2742_v58  ;;  %v6680_v60 = vld [vmem:[#allocation87_spill] sm:$0xff]  ;;  %v6681_v35 = vld [vmem:[#allocation89_spill] sm:$0xff]  ;;  %v6682_v49 = vld [vmem:[#allocation90_spill] sm:$0xff] }
 0x584   :  { %v2736_v38 = vmul.f32 %v2714_v40, %v5617_v56  ;;  %v2724_v5 = vmul.f32 %v4137_v37, %v2723_v61  ;;  %2777 = vmatmul.bf16.vlgmr.msra.gmra.mxu2 %v2742_v58  ;;  %2790 = vmatmul.bf16.vlgmr.msra.gmra.mxu3 %v2742_v58  ;;  %v2730_v56 = vand.u32 2147483647, %v5741_v12  ;;  %v6667_v12 = vld [vmem:[#allocation69_spill] sm:$0xff]  ;;  %v6683_v58 = vld [vmem:[#allocation91_spill] sm:$0xff]  ;;  %v6684_v24 = vld [vmem:[#allocation92_spill] sm:$0xff] }
 0x585   :  { %2914 = vmatpush.bf16.msra.mxu0 %v4367_v19  ;;  %2927 = vmatpush.bf16.msrb.mxu1 %v4365_v18  ;;  %v2733_v19 = vor.u32 1.1754944e-38, %v2732_v48  ;;  %v6686_v61 = vld [vmem:[#allocation94_spill] sm:$0xff]  ;;  %v6687_v40 = vld [vmem:[#allocation95_spill] sm:$0xff]  ;;  %v6691_v48 = vld [vmem:[#allocation100_spill] sm:$0xff] }
 0x586   :  { %v5770_v17 = vadd.f32 %v2737_v6, %v2736_v38  ;;  %2940 = vmatpush.bf16.msra.mxu2 %v4388_v36  ;;  %2953 = vmatpush.bf16.msra.mxu3 %v4375_v26  ;;  %v2725_v20 = vadd.f32 %v4137_v37, %v2724_v5  ;;  %vm2731_vm12 = vcmp.eq.f32.partialorder %v2730_v56, 8.507059e+37  ;;  %v6685_v6 = vld [vmem:[#allocation93_spill] sm:$0xff]  ;;  %v6689_v5 = vld [vmem:[#allocation98_spill] sm:$0xff] }
 0x587   :  { %v6688_v38 = vld [vmem:[#allocation97_spill] sm:$0xff] }
 0x588   :  { %4140 = vtanh.f32 %v5770_v17  ;;  %v2729_v18 = vsel %vm2728_vm11, %v4137_v37, %v2725_v20  ;;  %v6674_v37 = vld [vmem:[#allocation79_spill] sm:$0xff]  ;;  %v6692_v56 = vld [vmem:[#allocation101_spill] sm:$0xff] }
 0x589   :  { %2915 = vmatpush.bf16.msra.mxu0 %v4383_v30  ;;  %2928 = vmatpush.bf16.msrb.mxu1 %v4380_v27  ;;  %v2734_v36 = vsel %vm2731_vm12, %v2733_v19, %v2729_v18  ;;  %v6690_v20 = vld [vmem:[#allocation99_spill] sm:$0xff]  ;;  %v6693_v18 = vld [vmem:[#allocation102_spill] sm:$0xff] }
 0x58a   :  { %2941 = vmatpush.bf16.msra.mxu2 %v4398_v44  ;;  %2954 = vmatpush.bf16.msra.mxu3 %v4386_v32  ;;  %v6637_v32 = vld [vmem:[#allocation27_spill] sm:$0xff]  ;;  %v6640_v44 = vld [vmem:[#allocation30_spill] sm:$0xff] }
 0x58b   :  { %v6694_v19 = vld [vmem:[#allocation103_spill] sm:$0xff] }
 0x58d   :  { %2916 = vmatpush.bf16.msra.mxu0 %v4395_v43  ;;  %2929 = vmatpush.bf16.msrb.mxu1 %v4392_v39  ;;  %v6638_v39 = vld [vmem:[#allocation28_spill] sm:$0xff]  ;;  %v6639_v43 = vld [vmem:[#allocation29_spill] sm:$0xff] }
 0x58e   :  { %v4141_v26 = vpop.eup %4140  ;;  %2942 = vmatpush.bf16.msra.mxu2 %v4406_v54  ;;  %2955 = vmatpush.bf16.msra.mxu3 %v4400_v50  ;;  %v6641_v50 = vld [vmem:[#allocation31_spill] sm:$0xff]  ;;  %v6643_v54 = vld [vmem:[#allocation33_spill] sm:$0xff] }
 0x58f   :  { %v2740_v30 = vmul.f32 %v4141_v26, %v2734_v36  ;;  %v6695_v26 = vld [vmem:[#allocation104_spill] sm:$0xff]  ;;  %v6696_v36 = vld [vmem:[#allocation105_spill] sm:$0xff] }
 0x591   :  { %v2741_v27 = vpack.c.bf16 %v2740_v30, %v2740_v30  ;;  %2917 = vmatpush.bf16.msra.mxu0 %v4409_v57  ;;  %2930 = vmatpush.bf16.msrb.mxu1 %v4404_v53  ;;  %v6642_v53 = vld [vmem:[#allocation32_spill] sm:$0xff] }
 0x592   :  { %2943 = vmatpush.bf16.msra.mxu2 %v4421_v0  ;;  %2956 = vmatpush.bf16.msra.mxu3 %v4417_v63  ;;  %v6644_v57 = vld [vmem:[#allocation36_spill] sm:$0xff]  ;;  %v6645_v63 = vld [vmem:[#allocation39_spill] sm:$0xff]  ;;  %v6646_v0 = vld [vmem:[#allocation41_spill] sm:$0xff] }
 0x593   :  { %2803 = vmatmul.bf16.vlgmr.msrb.gmra.mxu0 %v2741_v27  ;;  %2816 = vmatmul.bf16.vlgmr.msra.gmra.mxu1 %v2741_v27 }
 0x594   :  { %2829 = vmatmul.bf16.vlgmr.msrb.gmra.mxu2 %v2741_v27  ;;  %2842 = vmatmul.bf16.vlgmr.msrb.gmra.mxu3 %v2741_v27 }
 0x595   :  { %2918 = vmatpush.bf16.msra.mxu0 %v4424_v1  ;;  %2931 = vmatpush.bf16.msrb.mxu1 %v4443_v16  ;;  %v6647_v1 = vld [vmem:[#allocation42_spill] sm:$0xff] }
 0x596   :  { %2944 = vmatpush.bf16.msra.mxu2 %v4436_v13  ;;  %2957 = vmatpush.bf16.msra.mxu3 %v4438_v14  ;;  %v6648_v13 = vld [vmem:[#allocation43_spill] sm:$0xff]  ;;  %v6649_v14 = vld [vmem:[#allocation44_spill] sm:$0xff]  ;;  %v6651_v16 = vld [vmem:[#allocation46_spill] sm:$0xff] }
 0x599   :  { %2919 = vmatpush.bf16.msra.mxu0 %v4441_v15  ;;  %2932 = vmatpush.bf16.msrb.mxu1 %v4449_v28  ;;  %v6650_v15 = vld [vmem:[#allocation45_spill] sm:$0xff]  ;;  %v6653_v28 = vld [vmem:[#allocation52_spill] sm:$0xff] }
 0x59a   :  { %2945 = vmatpush.bf16.msra.mxu2 %v4452_v33  ;;  %2958 = vmatpush.bf16.msra.mxu3 %v4446_v23  ;;  %v6652_v23 = vld [vmem:[#allocation47_spill] sm:$0xff]  ;;  %v6654_v33 = vld [vmem:[#allocation53_spill] sm:$0xff] }
 0x59d   :  { %2920 = vmatpush.bf16.msra.mxu0 %v4455_v34  ;;  %2933 = vmatpush.bf16.msrb.mxu1 %v4482_v59  ;;  %v6655_v34 = vld [vmem:[#allocation54_spill] sm:$0xff] }
 0x59e   :  { %2946 = vmatpush.bf16.msra.mxu2 %v4462_v42  ;;  %2959 = vmatpush.bf16.msra.mxu3 %v4458_v41  ;;  %v6656_v41 = vld [vmem:[#allocation55_spill] sm:$0xff]  ;;  %v6657_v42 = vld [vmem:[#allocation56_spill] sm:$0xff]  ;;  %v6661_v59 = vld [vmem:[#allocation62_spill] sm:$0xff] }
 0x5a1   :  { %2921 = vmatpush.bf16.msra.mxu0 %v4465_v47  ;;  %2934 = vmatpush.bf16.msrb.mxu1 %v4487_v2  ;;  %v6658_v47 = vld [vmem:[#allocation57_spill] sm:$0xff]  ;;  %v6662_v2 = vld [vmem:[#allocation64_spill] sm:$0xff] }
 0x5a2   :  { %2947 = vmatpush.bf16.msra.mxu2 %v4474_v55  ;;  %2960 = vmatpush.bf16.msra.mxu3 %v4471_v52  ;;  %v6659_v52 = vld [vmem:[#allocation58_spill] sm:$0xff]  ;;  %v6660_v55 = vld [vmem:[#allocation60_spill] sm:$0xff] }
 0x5a4   :  { %2922 = vmatmul.bf16.vlgmr.msra.gmra.mxu0 %v2741_v27  ;;  %2935 = vmatmul.bf16.vlgmr.msrb.gmra.mxu1 %v2741_v27 }
 0x5a5   :  { %3035 = vmatpush.bf16.msrb.mxu0 %v4531_v31  ;;  %3048 = vmatpush.bf16.msra.mxu1 %v4536_v45  ;;  %v6663_v31 = vld [vmem:[#allocation67_spill] sm:$0xff]  ;;  %v6664_v45 = vld [vmem:[#allocation68_spill] sm:$0xff] }
 0x5a6   :  { %2948 = vmatmul.bf16.vlgmr.msra.gmra.mxu2 %v2741_v27  ;;  %2961 = vmatmul.bf16.vlgmr.msra.gmra.mxu3 %v2741_v27 }
 0x5a7   :  { %3061 = vmatpush.bf16.msrb.mxu2 %v4538_v46  ;;  %3074 = vmatpush.bf16.msrb.mxu3 %v6566_v25  ;;  %v6665_v46 = vld [vmem:[#allocation65_spill] sm:$0xff]  ;;  %v6666_v25 = vld [vmem:[#allocation66_spill] sm:$0xff] }
 0x5a9   :  { %3036 = vmatpush.bf16.msrb.mxu0 %v6637_v32  ;;  %3049 = vmatpush.bf16.msra.mxu1 %v6638_v39 }
 0x5ab   :  { %3062 = vmatpush.bf16.msrb.mxu2 %v6639_v43  ;;  %3075 = vmatpush.bf16.msrb.mxu3 %v6640_v44 }
 0x5ad   :  { %3037 = vmatpush.bf16.msrb.mxu0 %v6641_v50  ;;  %3050 = vmatpush.bf16.msra.mxu1 %v6642_v53 }
 0x5af   :  { %3063 = vmatpush.bf16.msrb.mxu2 %v6643_v54  ;;  %3076 = vmatpush.bf16.msrb.mxu3 %v6644_v57 }
 0x5b1   :  { %3038 = vmatpush.bf16.msrb.mxu0 %v6645_v63  ;;  %3051 = vmatpush.bf16.msra.mxu1 %v6646_v0 }
 0x5b3   :  { %3064 = vmatpush.bf16.msrb.mxu2 %v6647_v1  ;;  %3077 = vmatpush.bf16.msrb.mxu3 %v6648_v13  ;;  %v6697_v1 = vld [vmem:[#allocation106_spill] sm:$0xff] }
 0x5b5   :  { %3039 = vmatpush.bf16.msrb.mxu0 %v6649_v14  ;;  %3052 = vmatpush.bf16.msra.mxu1 %v6650_v15  ;;  %v6698_v14 = vld [vmem:[#allocation107_spill] sm:$0xff] }
 0x5b7   :  { %3065 = vmatpush.bf16.msrb.mxu2 %v6651_v16  ;;  %3078 = vmatpush.bf16.msrb.mxu3 %v6652_v23 }
 0x5b9   :  { %3040 = vmatpush.bf16.msrb.mxu0 %v6653_v28  ;;  %3053 = vmatpush.bf16.msra.mxu1 %v6654_v33 }
 0x5bb   :  { %3066 = vmatpush.bf16.msrb.mxu2 %v6655_v34  ;;  %3079 = vmatpush.bf16.msrb.mxu3 %v6656_v41 }
 0x5bd   :  { %3041 = vmatpush.bf16.msrb.mxu0 %v6657_v42  ;;  %3054 = vmatpush.bf16.msra.mxu1 %v6658_v47  ;;  %v6699_v47 = vld [vmem:[#allocation108_spill] sm:$0xff] }
 0x5bf   :  { %3067 = vmatpush.bf16.msrb.mxu2 %v6659_v52  ;;  %3080 = vmatpush.bf16.msrb.mxu3 %v6660_v55 }
 0x5c1   :  { %3042 = vmatpush.bf16.msrb.mxu0 %v6661_v59  ;;  %3055 = vmatpush.bf16.msra.mxu1 %v6662_v2 }
 0x5c3   :  { %3068 = vmatpush.bf16.msrb.mxu2 %v6665_v46  ;;  %3081 = vmatpush.bf16.msrb.mxu3 %v6666_v25 }
 0x5c5   :  { %3087 = vmatpush.bf16.msra.mxu0 %v6663_v31  ;;  %3100 = vmatpush.bf16.msrb.mxu1 %v6664_v45 }
 0x5c7   :  { %3113 = vmatpush.bf16.msra.mxu2 %v6667_v12  ;;  %3126 = vmatpush.bf16.msra.mxu3 %v6668_v10  ;;  %v6700_v12 = vld [vmem:[#allocation13_spill] sm:$0xff]  ;;  %v6701_v10 = vld [vmem:[#allocation16_spill] sm:$0xff] }
 0x5c9   :  { %3088 = vmatpush.bf16.msra.mxu0 %v6669_v4  ;;  %3101 = vmatpush.bf16.msrb.mxu1 %v6670_v3  ;;  %v296_v4 = vadd.f32 %v6701_v10, %v6700_v12  ;;  %v6702_v3 = vld [vmem:[#allocation34_spill] sm:$0xff]  ;;  %v6707_v10 = vld [vmem:[#allocation20_spill] sm:$0xff] }
 0x5cb   :  { %3114 = vmatpush.bf16.msra.mxu2 %v6671_v22  ;;  %3127 = vmatpush.bf16.msra.mxu3 %v6672_v8  ;;  %v6703_v22 = vld [vmem:[#allocation96_spill] sm:$0xff] }
 0x5cc   :  { %v325_v8 = vadd.f32 %v6703_v22, %v6702_v3 }
 0x5cd   :  { %3089 = vmatpush.bf16.msra.mxu0 %v6673_v9  ;;  %3102 = vmatpush.bf16.msrb.mxu1 %v6674_v37 }
 0x5cf   :  { %3115 = vmatpush.bf16.msra.mxu2 %v6675_v7  ;;  %3128 = vmatpush.bf16.msra.mxu3 %v6676_v62 }
 0x5d1   :  { %3090 = vmatpush.bf16.msra.mxu0 %v6677_v11  ;;  %3103 = vmatpush.bf16.msrb.mxu1 %v6678_v21 }
 0x5d3   :  { %3116 = vmatpush.bf16.msra.mxu2 %v6679_v51  ;;  %3129 = vmatpush.bf16.msra.mxu3 %v6680_v60 }
 0x5d5   :  { %3091 = vmatpush.bf16.msra.mxu0 %v6681_v35  ;;  %3104 = vmatpush.bf16.msrb.mxu1 %v6682_v49 }
 0x5d7   :  { %3117 = vmatpush.bf16.msra.mxu2 %v6683_v58  ;;  %3130 = vmatpush.bf16.msra.mxu3 %v6684_v24  ;;  %v6704_v58 = vld [vmem:[#allocation15_spill] sm:$0xff] }
 0x5d9   :  { %3092 = vmatpush.bf16.msra.mxu0 %v6685_v6  ;;  %3105 = vmatpush.bf16.msrb.mxu1 %v6686_v61  ;;  %v6705_v61 = vld [vmem:[#allocation21_spill] sm:$0xff] }
 0x5db   :  { %3118 = vmatpush.bf16.msra.mxu2 %v6687_v40  ;;  %3131 = vmatpush.bf16.msra.mxu3 %v6688_v38  ;;  %v6706_v40 = vld [vmem:[#allocation85_spill] sm:$0xff] }
 0x5dc   :  { %v383_v38 = vadd.f32 %v6706_v40, %v6705_v61 }
 0x5dd   :  { %3093 = vmatpush.bf16.msra.mxu0 %v6689_v5  ;;  %3106 = vmatpush.bf16.msrb.mxu1 %v6690_v20 }
 0x5df   :  { %3119 = vmatpush.bf16.msra.mxu2 %v6691_v48  ;;  %3132 = vmatpush.bf16.msra.mxu3 %v6692_v56 }
 0x5e1   :  { %3094 = vmatpush.bf16.msra.mxu0 %v6693_v18  ;;  %3107 = vmatpush.bf16.msrb.mxu1 %v6694_v19 }
 0x5e3   :  { %3120 = vmatpush.bf16.msra.mxu2 %v6695_v26  ;;  %3133 = vmatpush.bf16.msra.mxu3 %v6696_v36 }
 0x600   :  { %v2752_v30 = vpop.f32.mrf.mxu0  ;;  %v2765_v27 = vpop.f32.mrf.mxu1 }
 0x607   :  { %v2778_v32 = vpop.f32.mrf.mxu2  ;;  %v2791_v39 = vpop.f32.mrf.mxu3 }
 0x608   :  { %v2754_v43 = vpop.f32.mrf.mxu0  ;;  %v2767_v44 = vpop.f32.mrf.mxu1 }
 0x60f   :  { %v2780_v50 = vpop.f32.mrf.mxu2  ;;  %v2793_v53 = vpop.f32.mrf.mxu3 }
 0x610   :  { %v2804_v54 = vpop.f32.mrf.mxu0  ;;  %v2817_v57 = vpop.f32.mrf.mxu1 }
 0x611   :  { %v2805_v63 = vadd.f32 %v2804_v54, %v2752_v30  ;;  %v2818_v0 = vadd.f32 %v2817_v57, %v2765_v27 }
 0x613   :  { %v2847_v13 = vadd.f32 %v2805_v63, %v6697_v1  ;;  %v2848_v15 = vadd.f32 %v2818_v0, %v6698_v14 }
 0x615   :  { %v3773_v16 = vmul.f32 -1.442695, %v2847_v13  ;;  %v3774_v23 = vmul.f32 -1.442695, %v2848_v15 }
 0x617   :  { %4142 = vpow2.f32 %v3773_v16  ;;  %v2830_v28 = vpop.f32.mrf.mxu2  ;;  %v2843_v33 = vpop.f32.mrf.mxu3 }
 0x618   :  { %4144 = vpow2.f32 %v3774_v23  ;;  %v2844_v34 = vadd.f32 %v2843_v33, %v2791_v39  ;;  %v2806_v41 = vpop.f32.mrf.mxu0  ;;  %v2819_v42 = vpop.f32.mrf.mxu1  ;;  %v2831_v7 = vadd.f32 %v2830_v28, %v2778_v32 }
 0x61a   :  { %v2850_v52 = vadd.f32 %v2844_v34, %v6699_v47  ;;  %v2849_v24 = vadd.f32 %v2831_v7, %v6704_v58 }
 0x61c   :  { %v3775_v55 = vmul.f32 -1.442695, %v2850_v52 }
 0x61d   :  { %v4143_v59 = vpop.eup %4142 }
 0x61e   :  { %v4145_v2 = vpop.eup %4144  ;;  %v2854_v31 = vadd.f32 1.0, %v4143_v59  ;;  %4146 = vpow2.f32 %v3775_v55 }
 0x61f   :  { %v5873_v45 = vadd.f32 1.0, %v4145_v2  ;;  %v2832_v46 = vpop.f32.mrf.mxu2  ;;  %v2845_v25 = vpop.f32.mrf.mxu3 }
 0x620   :  { %4148 = vrcp.f32 %v2854_v31  ;;  %v2864_v27 = vand.u32 2147483647, %v2854_v31  ;;  %v2866_v32 = vand.u32 2147483648, %v2854_v31  ;;  %vm2860_vm15 = vweird.f32 %v2854_v31 }
 0x621   :  { %4150 = vrcp.f32 %v5873_v45  ;;  %v2923_v9 = vpop.f32.mrf.mxu0  ;;  %v2936_v37 = vpop.f32.mrf.mxu1  ;;  %v2885_v39 = vand.u32 2147483648, %v5873_v45  ;;  %v2883_v54 = vand.u32 2147483647, %v5873_v45  ;;  %vm2879_vm0 = vweird.f32 %v5873_v45 }
 0x622   :  { %v2966_v62 = vadd.f32 %v2923_v9, %v296_v4  ;;  %v2967_v11 = vadd.f32 %v2936_v37, %v325_v8  ;;  %vm2865_vm2 = vcmp.eq.f32.partialorder %v2864_v27, 8.507059e+37  ;;  %v2867_v15 = vor.u32 1.1754944e-38, %v2866_v32  ;;  %v6708_v4 = vld [vmem:[#allocation82_spill] sm:$0xff] }
 0x623   :  { %v2886_v28 = vor.u32 1.1754944e-38, %v2885_v39  ;;  %vm2884_vm4 = vcmp.eq.f32.partialorder %v2883_v54, 8.507059e+37  ;;  %v354_v3 = vadd.f32 %v6708_v4, %v6707_v10  ;;  %v3923_v4 = vld [vmem:[%s5977_s7 + $0x28] sm:$0xff] }
 0x624   :  { %v4147_v21 = vpop.eup %4146  ;;  %v3776_v51 = vmul.f32 -1.442695, %v2966_v62  ;;  %v3777_v60 = vmul.f32 -1.442695, %v2967_v11 }
 0x625   :  { %v5880_v35 = vadd.f32 1.0, %v4147_v21 }
 0x626   :  { %v4149_v49 = vpop.eup %4148  ;;  %4152 = vpow2.f32 %v3776_v51 }
 0x627   :  { %v4151_v6 = vpop.eup %4150  ;;  %v2856_v5 = vmul.f32 %v4149_v49, %v2854_v31  ;;  %4154 = vrcp.f32 %v5880_v35  ;;  %vm2861_vm13 = vweird.f32 %v4149_v49  ;;  %v2905_v37 = vand.u32 2147483648, %v5880_v35 }
 0x628   :  { %v2875_v20 = vmul.f32 %v4151_v6, %v5873_v45  ;;  %4156 = vpow2.f32 %v3777_v60  ;;  %vm2880_vm14 = vweird.f32 %v4151_v6  ;;  %vm2862_vm1 = vmor %vm2860_vm15, %vm2861_vm13  ;;  %vm2899_vm6 = vweird.f32 %v5880_v35 }
 0x629   :  { %v2949_v48 = vpop.f32.mrf.mxu2  ;;  %v2962_v56 = vpop.f32.mrf.mxu3  ;;  %v2857_v18 = vsub.f32 1.0, %v2856_v5  ;;  %4158 = vtanh.f32 %v2849_v24  ;;  %vm2881_vm3 = vmor %vm2879_vm0, %vm2880_vm14  ;;  %v2903_v21 = vand.u32 2147483647, %v5880_v35  ;;  %v2906_v61 = vor.u32 1.1754944e-38, %v2905_v37 }
 0x62a   :  { %v2969_v19 = vadd.f32 %v2962_v56, %v383_v38  ;;  %v2925_v26 = vpop.f32.mrf.mxu0  ;;  %v2938_v36 = vpop.f32.mrf.mxu1  ;;  %v2876_v30 = vsub.f32 1.0, %v2875_v20  ;;  %v2968_v7 = vadd.f32 %v2949_v48, %v354_v3 }
 0x62b   :  { %v2858_v43 = vmul.f32 %v4149_v49, %v2857_v18  ;;  %vm2904_vm10 = vcmp.eq.f32.partialorder %v2903_v21, 8.507059e+37 }
 0x62c   :  { %v3778_v44 = vmul.f32 -1.442695, %v2969_v19  ;;  %v4153_v50 = vpop.eup %4152  ;;  %v2877_v53 = vmul.f32 %v4151_v6, %v2876_v30 }
 0x62d   :  { %v5889_v57 = vpop.eup %4154  ;;  %v2859_v63 = vadd.f32 %v4149_v49, %v2858_v43  ;;  %v5892_v0 = vadd.f32 1.0, %v4153_v50 }
 0x62e   :  { %4160 = vpow2.f32 %v3778_v44  ;;  %v4157_v13 = vpop.eup %4156  ;;  %v2878_v16 = vadd.f32 %v4151_v6, %v2877_v53  ;;  %v2895_v23 = vmul.f32 %v5889_v57, %v5880_v35  ;;  %vm2900_vm5 = vweird.f32 %v5889_v57 }
 0x62f   :  { %v2863_v33 = vsel %vm2862_vm1, %v4149_v49, %v2859_v63  ;;  %4162 = vrcp.f32 %v5892_v0  ;;  %v5897_v34 = vadd.f32 1.0, %v4157_v13  ;;  %v4159_v41 = vpop.eup %4158  ;;  %vm5917_vm7 = vmor %vm2899_vm6, %vm2900_vm5  ;;  %v2985_v24 = vand.u32 2147483648, %v5892_v0 }
 0x630   :  { %v2868_v42 = vsel %vm2865_vm2, %v2867_v15, %v2863_v33  ;;  %v2882_v52 = vsel %vm2881_vm3, %v4151_v6, %v2878_v16  ;;  %v2896_v55 = vsub.f32 1.0, %v2895_v23  ;;  %v2983_v35 = vand.u32 2147483647, %v5892_v0 }
 0x631   :  { %v2951_v59 = vpop.f32.mrf.mxu2  ;;  %v2964_v2 = vpop.f32.mrf.mxu3  ;;  %v2887_v31 = vsel %vm2884_vm4, %v2886_v28, %v2882_v52  ;;  %v2910_v45 = vmul.f32 %v4159_v41, %v2868_v42  ;;  %4164 = vrcp.f32 %v5897_v34  ;;  %v3004_v5 = vand.u32 2147483648, %v5897_v34 }
 0x632   :  { %v2909_v46 = vmul.f32 %v2887_v31, %v5739_v29  ;;  %v2897_v25 = vmul.f32 %v5889_v57, %v2896_v55  ;;  %vm2979_vm9 = vweird.f32 %v5892_v0  ;;  %v3002_v20 = vand.u32 2147483647, %v5897_v34  ;;  %v3925_v31 = vld [vmem:[%s5977_s7 + $0x38] sm:$0xff] }
 0x633   :  { %vm2998_vm12 = vweird.f32 %v5897_v34  ;;  %v2986_v36 = vor.u32 1.1754944e-38, %v2985_v24  ;;  %vm2984_vm14 = vcmp.eq.f32.partialorder %v2983_v35, 8.507059e+37  ;;  %v3005_v44 = vor.u32 1.1754944e-38, %v3004_v5  ;;  %v3920_v24 = vld [vmem:[%s5977_s7 + $0x10] sm:$0xff] }
 0x634   :  { %v4161_v12 = vpop.eup %4160  ;;  %v5904_v22 = vadd.f32 %v2910_v45, %v2909_v46  ;;  %v2898_v62 = vadd.f32 %v5889_v57, %v2897_v25  ;;  %vm3003_vm0 = vcmp.eq.f32.partialorder %v3002_v20, 8.507059e+37  ;;  %v3924_v25 = vld [vmem:[%s5977_s7 + $0x30] sm:$0xff] }
 0x635   :  { %v5906_v8 = vadd.f32 1.0, %v4161_v12  ;;  %v4163_v9 = vpop.eup %4162 }
 0x636   :  { %4166 = vtanh.f32 %v5904_v22  ;;  %v2975_v29 = vmul.f32 %v4163_v9, %v5892_v0  ;;  %v2902_v6 = vsel %vm5917_vm7, %v5889_v57, %v2898_v62  ;;  %vm2980_vm8 = vweird.f32 %v4163_v9 }
 0x637   :  { %v4165_v11 = vpop.eup %4164  ;;  %4168 = vrcp.f32 %v5906_v8  ;;  %v2907_v19 = vsel %vm2904_vm10, %v2906_v61, %v2902_v6  ;;  %vm2981_vm13 = vmor %vm2979_vm9, %vm2980_vm8  ;;  %v3024_v28 = vand.u32 2147483648, %v5906_v8  ;;  %vm3018_vm2 = vweird.f32 %v5906_v8 }
 0x638   :  { %v2976_v51 = vsub.f32 1.0, %v2975_v29  ;;  %v2994_v60 = vmul.f32 %v4165_v11, %v5897_v34  ;;  %4170 = vtanh.f32 %v2968_v7  ;;  %vm2999_vm11 = vweird.f32 %v4165_v11 }
 0x639   :  { %vm3000_vm15 = vmor %vm2998_vm12, %vm2999_vm11  ;;  %v3022_v33 = vand.u32 2147483647, %v5906_v8  ;;  %v3025_v41 = vor.u32 1.1754944e-38, %v3024_v28 }
 0x63a   :  { %v2995_v40 = vsub.f32 1.0, %v2994_v60  ;;  %v2977_v38 = vmul.f32 %v4163_v9, %v2976_v51  ;;  %v3921_v51 = vld [vmem:[%s5977_s7 + $0x18] sm:$0xff] }
 0x63b   :  { %vm3023_vm4 = vcmp.eq.f32.partialorder %v3022_v33, 8.507059e+37 }
 0x63c   :  { %v4167_v48 = vpop.eup %4166  ;;  %v2996_v56 = vmul.f32 %v4165_v11, %v2995_v40  ;;  %v2978_v18 = vadd.f32 %v4163_v9, %v2977_v38 }
 0x63d   :  { %v4169_v26 = vpop.eup %4168  ;;  %v2913_v30 = vmul.f32 %v4167_v48, %v2907_v19  ;;  %v3918_v48 = vld [vmem:[%s5977_s7] sm:$0xff] }
 0x63e   :  { %v2982_v27 = vsel %vm2981_vm13, %v4163_v9, %v2978_v18  ;;  %v2997_v32 = vadd.f32 %v4165_v11, %v2996_v56  ;;  %v3014_v39 = vmul.f32 %v4169_v26, %v5906_v8  ;;  %v4171_v43 = vpop.eup %4170  ;;  %vm3019_vm1 = vweird.f32 %v4169_v26  ;;  %v3922_v9 = vld [vmem:[%s5977_s7 + $0x20] sm:$0xff] }
 0x63f   :  { %v2987_v50 = vsel %vm2984_vm14, %v2986_v36, %v2982_v27  ;;  %v3034_v53 = vpack.c.bf16 %v2913_v30, %v2913_v30  ;;  %vm3020_vm3 = vmor %vm3018_vm2, %vm3019_vm1 }
 0x640   :  { %v3001_v54 = vsel %vm3000_vm15, %v4165_v11, %v2997_v32  ;;  %v3029_v57 = vmul.f32 %v4171_v43, %v2987_v50  ;;  %v3015_v63 = vsub.f32 1.0, %v3014_v39 }
 0x641   :  { %v3006_v0 = vsel %vm3003_vm0, %v3005_v44, %v3001_v54  ;;  %3043 = vmatmul.bf16.vlgmr.msrb.gmra.mxu0 %v3034_v53  ;;  %3056 = vmatmul.bf16.vlgmr.msra.gmra.mxu1 %v3034_v53 }
 0x642   :  { %v3028_v13 = vmul.f32 %v3006_v0, %v5770_v17  ;;  %v3016_v15 = vmul.f32 %v4169_v26, %v3015_v63  ;;  %3069 = vmatmul.bf16.vlgmr.msrb.gmra.mxu2 %v3034_v53  ;;  %3082 = vmatmul.bf16.vlgmr.msrb.gmra.mxu3 %v3034_v53 }
 0x643   :  { %3282 = vmatpush.bf16.msrb.mxu0 %v3925_v31 }
 0x644   :  { %v3030_v16 = vadd.f32 %v3029_v57, %v3028_v13  ;;  %v3017_v23 = vadd.f32 %v4169_v26, %v3016_v15 }
 0x646   :  { %4172 = vtanh.f32 %v3030_v16  ;;  %v3021_v34 = vsel %vm3020_vm3, %v4169_v26, %v3017_v23 }
 0x647   :  { %v3026_v52 = vsel %vm3023_vm4, %v3025_v41, %v3021_v34  ;;  %3283 = vmatpush.bf16.msrb.mxu0 %v3924_v25 }
 0x64b   :  { %3284 = vmatpush.bf16.msrb.mxu0 %v3923_v4 }
 0x64c   :  { %v4173_v42 = vpop.eup %4172 }
 0x64d   :  { %v3032_v17 = vmul.f32 %v4173_v42, %v3026_v52 }
 0x64f   :  { %v3033_v55 = vpack.c.bf16 %v3032_v17, %v3032_v17  ;;  %3285 = vmatpush.bf16.msrb.mxu0 %v3922_v9 }
 0x651   :  { %3095 = vmatmul.bf16.vlgmr.msra.gmra.mxu0 %v3033_v55  ;;  %3108 = vmatmul.bf16.vlgmr.msrb.gmra.mxu1 %v3033_v55 }
 0x652   :  { %3121 = vmatmul.bf16.vlgmr.msra.gmra.mxu2 %v3033_v55  ;;  %3134 = vmatmul.bf16.vlgmr.msra.gmra.mxu3 %v3033_v55 }
 0x653   :  { %3286 = vmatpush.bf16.msrb.mxu0 %v3921_v51 }
 0x657   :  { %3287 = vmatpush.bf16.msrb.mxu0 %v3920_v24 }
 0x6be   :  { %v3044_v59 = vpop.f32.mrf.mxu0  ;;  %v3057_v2 = vpop.f32.mrf.mxu1 }
 0x6c5   :  { %v3070_v45 = vpop.f32.mrf.mxu2  ;;  %v3083_v46 = vpop.f32.mrf.mxu3 }
 0x6c6   :  { %v3046_v12 = vpop.f32.mrf.mxu0  ;;  %v3059_v10 = vpop.f32.mrf.mxu1 }
 0x6cd   :  { %v3072_v3 = vpop.f32.mrf.mxu2  ;;  %v3085_v8 = vpop.f32.mrf.mxu3 }
 0x6ce   :  { %v3096_v37 = vpop.f32.mrf.mxu0  ;;  %v3109_v7 = vpop.f32.mrf.mxu1 }
 0x6cf   :  { %v3097_v62 = vadd.f32 %v3096_v37, %v3044_v59  ;;  %v3110_v29 = vadd.f32 %v3109_v7, %v3057_v2 }
 0x6d1   :  { %v3139_v11 = vadd.f32 %v3097_v62, %v6697_v1  ;;  %v3140_v21 = vadd.f32 %v3110_v29, %v6698_v14  ;;  %v3919_v14 = vld [vmem:[%s5977_s7 + $0x8] sm:$0xff] }
 0x6d2   :  { %3288 = vmatpush.bf16.msrb.mxu0 %v3919_v14 }
 0x6d3   :  { %v3779_v60 = vmul.f32 -1.442695, %v3139_v11  ;;  %v3780_v49 = vmul.f32 -1.442695, %v3140_v21 }
 0x6d5   :  { %4174 = vpow2.f32 %v3779_v60  ;;  %v3122_v6 = vpop.f32.mrf.mxu2  ;;  %v3135_v61 = vpop.f32.mrf.mxu3 }
 0x6d6   :  { %4176 = vpow2.f32 %v3780_v49  ;;  %v3136_v40 = vadd.f32 %v3135_v61, %v3083_v46  ;;  %v3098_v38 = vpop.f32.mrf.mxu0  ;;  %v3111_v1 = vpop.f32.mrf.mxu1  ;;  %3289 = vmatpush.bf16.msrb.mxu0 %v3918_v48  ;;  %v3123_v30 = vadd.f32 %v3122_v6, %v3070_v45 }
 0x6d8   :  { %v3142_v35 = vadd.f32 %v3136_v40, %v6699_v47  ;;  %v3141_v39 = vadd.f32 %v3123_v30, %v6704_v58 }
 0x6da   :  { %v3781_v5 = vmul.f32 -1.442695, %v3142_v35 }
 0x6db   :  { %v4175_v20 = vpop.eup %4174 }
 0x6dc   :  { %v4177_v56 = vpop.eup %4176  ;;  %v3146_v18 = vadd.f32 1.0, %v4175_v20  ;;  %4178 = vpow2.f32 %v3781_v5 }
 0x6dd   :  { %v3165_v19 = vadd.f32 1.0, %v4177_v56  ;;  %v3124_v26 = vpop.f32.mrf.mxu2  ;;  %v3137_v36 = vpop.f32.mrf.mxu3 }
 0x6de   :  { %4180 = vrcp.f32 %v3146_v18  ;;  %v3158_v57 = vand.u32 2147483648, %v3146_v18  ;;  %v3156_v13 = vand.u32 2147483647, %v3146_v18  ;;  %vm3152_vm7 = vweird.f32 %v3146_v18 }
 0x6df   :  { %4182 = vrcp.f32 %v3165_v19  ;;  %v3177_v63 = vand.u32 2147483648, %v3165_v19  ;;  %v3175_v16 = vand.u32 2147483647, %v3165_v19  ;;  %vm3171_vm8 = vweird.f32 %v3165_v19 }
 0x6e0   :  { %v3159_v58 = vor.u32 1.1754944e-38, %v3158_v57  ;;  %vm3157_vm11 = vcmp.eq.f32.partialorder %v3156_v13, 8.507059e+37 }
 0x6e1   :  { %v3178_v41 = vor.u32 1.1754944e-38, %v3177_v63  ;;  %vm3176_vm12 = vcmp.eq.f32.partialorder %v3175_v16, 8.507059e+37 }
 0x6e2   :  { %v4179_v27 = vpop.eup %4178 }
 0x6e3   :  { %v3185_v32 = vadd.f32 1.0, %v4179_v27 }
 0x6e4   :  { %v4181_v47 = vpop.eup %4180 }
 0x6e5   :  { %v4183_v43 = vpop.eup %4182  ;;  %v3148_v44 = vmul.f32 %v4181_v47, %v3146_v18  ;;  %4184 = vrcp.f32 %v3185_v32  ;;  %vm3153_vm5 = vweird.f32 %v4181_v47  ;;  %v3197_v10 = vand.u32 2147483648, %v3185_v32 }
 0x6e6   :  { %v3167_v50 = vmul.f32 %v4183_v43, %v3165_v19  ;;  %4186 = vtanh.f32 %v3141_v39  ;;  %vm3172_vm6 = vweird.f32 %v4183_v43  ;;  %vm3154_vm9 = vmor %vm3152_vm7, %vm3153_vm5  ;;  %vm3191_vm14 = vweird.f32 %v3185_v32 }
 0x6e7   :  { %v3149_v53 = vsub.f32 1.0, %v3148_v44  ;;  %vm3173_vm10 = vmor %vm3171_vm8, %vm3172_vm6  ;;  %v3195_v4 = vand.u32 2147483647, %v3185_v32  ;;  %v3198_v8 = vor.u32 1.1754944e-38, %v3197_v10 }
 0x6e8   :  { %v3168_v54 = vsub.f32 1.0, %v3167_v50 }
 0x6e9   :  { %v3150_v0 = vmul.f32 %v4181_v47, %v3149_v53  ;;  %vm3196_vm0 = vcmp.eq.f32.partialorder %v3195_v4, 8.507059e+37 }
 0x6ea   :  { %v3169_v15 = vmul.f32 %v4183_v43, %v3168_v54 }
 0x6eb   :  { %v4185_v23 = vpop.eup %4184  ;;  %v3151_v28 = vadd.f32 %v4181_v47, %v3150_v0 }
 0x6ec   :  { %v3170_v33 = vadd.f32 %v4183_v43, %v3169_v15  ;;  %v3187_v34 = vmul.f32 %v4185_v23, %v3185_v32  ;;  %v4187_v52 = vpop.eup %4186  ;;  %vm3192_vm13 = vweird.f32 %v4185_v23 }
 0x6ed   :  { %v3155_v42 = vsel %vm3154_vm9, %v4181_v47, %v3151_v28  ;;  %vm3193_vm15 = vmor %vm3191_vm14, %vm3192_vm13 }
 0x6ee   :  { %v3160_v17 = vsel %vm3157_vm11, %v3159_v58, %v3155_v42  ;;  %v3174_v55 = vsel %vm3173_vm10, %v4183_v43, %v3170_v33  ;;  %v3188_v59 = vsub.f32 1.0, %v3187_v34 }
 0x6ef   :  { %v3179_v2 = vsel %vm3176_vm12, %v3178_v41, %v3174_v55  ;;  %v3202_v31 = vmul.f32 %v4187_v52, %v3160_v17 }
 0x6f0   :  { %v3201_v45 = vmul.f32 %v3179_v2, %v5904_v22  ;;  %v3189_v46 = vmul.f32 %v4185_v23, %v3188_v59  ;;  %v3933_v22 = vld [vmem:[%s5978_s8] ss:$0 sm:$0xff] }
 0x6f2   :  { %v3203_v25 = vadd.f32 %v3202_v31, %v3201_v45  ;;  %v3190_v12 = vadd.f32 %v4185_v23, %v3189_v46 }
 0x6f4   :  { %4188 = vtanh.f32 %v3203_v25  ;;  %v3194_v3 = vsel %vm3193_vm15, %v4185_v23, %v3190_v12 }
 0x6f5   :  { %v3199_v37 = vsel %vm3196_vm0, %v3198_v8, %v3194_v3 }
 0x6fa   :  { %v4189_v9 = vpop.eup %4188 }
 0x6fb   :  { %v3205_v7 = vmul.f32 %v4189_v9, %v3199_v37 }
 0x6fd   :  { %v3213_v62 = vpack.c.bf16 %v3205_v7, %v3205_v7 }
 0x6ff   :  { %3290 = vmatmul.bf16.vlgmr.msrb.gmra.mxu0 %v3213_v62 }
 0x77c   :  { %v3291_v29 = vpop.f32.mrf.mxu0 }
 0x77d   :  { %v3292_v11 = vadd.f32 %v3933_v22, %v3291_v29 }
 0x77f   :  { %3295 = vst [vmem:[%s5979_s9] sm:$0xff] %v3292_v11 }
 0x784   :  { %v3293_v21 = vpop.f32.mrf.mxu0 }
 0x785   :  { %3300 = vsyncpa [#allocation7], 1 }
 0x786   :  { %3301 = vsyncpa [#allocation9], 1 }

</bundles_post_ra>
